<compile_context>
chip_gen: v7x
topology: tpu7x:2x2x1
jax: 0.10.0
libtpu: 0.0.40
codegen_flags: <defaults>
</compile_context>

<pallas_src>
import jax
import jax.numpy as jnp
from jax.experimental import pallas as pl
from jax.experimental.pallas import tpu as pltpu


# ----------------------------------------------------------------------------
# Pallas kernels
# ----------------------------------------------------------------------------
def _conv_relu_pool_kernel(p00_ref, p01_ref, p10_ref, p11_ref, w_ref, b_ref,
                           o_ref):
    """Fused conv(matmul) + bias + ReLU + 2x2/2 max-pool.

    Each p??_ref is the im2col patch matrix for one position inside the 2x2
    pooling window (identical row ordering), so the pooled+activated output is
        relu(max_d(patches_d @ W) + b).
    """
    w = w_ref[...]
    z = jnp.dot(p00_ref[...], w, preferred_element_type=jnp.float32)
    z = jnp.maximum(z, jnp.dot(p01_ref[...], w,
                               preferred_element_type=jnp.float32))
    z = jnp.maximum(z, jnp.dot(p10_ref[...], w,
                               preferred_element_type=jnp.float32))
    z = jnp.maximum(z, jnp.dot(p11_ref[...], w,
                               preferred_element_type=jnp.float32))
    z = jnp.maximum(z + b_ref[...], 0.0)
    o_ref[...] = z.astype(o_ref.dtype)


def _mlp_kernel(x_ref, w1_ref, b1_ref, w2_ref, b2_ref, w3_ref, b3_ref, o_ref):
    """fc1+ReLU -> fc2+ReLU -> fc3, fully fused; activations stay on-chip."""
    h = jnp.dot(x_ref[...], w1_ref[...], preferred_element_type=jnp.float32)
    h = jnp.maximum(h + b1_ref[...], 0.0).astype(w2_ref.dtype)
    h = jnp.dot(h, w2_ref[...], preferred_element_type=jnp.float32)
    h = jnp.maximum(h + b2_ref[...], 0.0).astype(w3_ref.dtype)
    h = jnp.dot(h, w3_ref[...], preferred_element_type=jnp.float32)
    o_ref[...] = (h + b3_ref[...]).astype(o_ref.dtype)


# ----------------------------------------------------------------------------
# Wrappers
# ----------------------------------------------------------------------------
def conv_relu_pool(x_nhwc, w_mat, b_row, kh=5, kw=5, block_m=512):
    """x_nhwc: (N,H,W,C) bf16; w_mat: (kh*kw*C, O) bf16 with column order
    (i, j, c); b_row: (1, O) f32.  Valid conv (stride 1) + ReLU + 2x2/2 max
    pool, returning (N, OH//2, OW//2, O) bf16, channels-last."""
    N, H, W, C = x_nhwc.shape
    OH, OW = H - kh + 1, W - kw + 1
    PH, PW = OH // 2, OW // 2
    K = kh * kw * C
    O = w_mat.shape[1]
    M = N * PH * PW

    # Build the four pooled im2col matrices directly from strided slices:
    # for pool offset (dh, dw) and kernel tap (i, j), pooled pixel (ph, pw)
    # reads x[:, 2*ph + dh + i, 2*pw + dw + j, :].  Column order is (i, j, c),
    # matching w_mat.
    mats = []
    for dh in range(2):
        for dw in range(2):
            taps = []
            for i in range(kh):
                for j in range(kw):
                    taps.append(x_nhwc[:, dh + i: dh + i + 2 * PH: 2,
                                          dw + j: dw + j + 2 * PW: 2, :])
            q = jnp.stack(taps, axis=3).reshape(N, PH, PW, K)
            mats.append(q.reshape(M, K))

    # Row tiling: full-array block for small problems, 512-row tiles otherwise
    # (keeps VMEM bounded and lets megacore shard the independent row tiles).
    tm = M if M <= block_m else block_m
    grid = (pl.cdiv(M, tm),)

    out = pl.pallas_call(
        _conv_relu_pool_kernel,
        out_shape=jax.ShapeDtypeStruct((M, O), jnp.bfloat16),
        grid=grid,
        in_specs=[
            pl.BlockSpec((tm, K), lambda i: (i, 0)),
            pl.BlockSpec((tm, K), lambda i: (i, 0)),
            pl.BlockSpec((tm, K), lambda i: (i, 0)),
            pl.BlockSpec((tm, K), lambda i: (i, 0)),
            pl.BlockSpec((K, O), lambda i: (0, 0)),   # weights stay resident
            pl.BlockSpec((1, O), lambda i: (0, 0)),
        ],
        out_specs=pl.BlockSpec((tm, O), lambda i: (i, 0)),
        compiler_params=pltpu.CompilerParams(
            dimension_semantics=("parallel",)),
    )(*mats, w_mat, b_row)
    return out.reshape(N, PH, PW, O)


def mlp(x, w1, b1, w2, b2, w3, b3, block_n=512):
    """Fused fc1+ReLU -> fc2+ReLU -> fc3.  x: (N, 400) bf16 -> (N, 10) f32."""
    N, K1 = x.shape
    F1, F2, F3 = w1.shape[1], w2.shape[1], w3.shape[1]
    tn = N if N <= block_n else block_n
    grid = (pl.cdiv(N, tn),)
    return pl.pallas_call(
        _mlp_kernel,
        out_shape=jax.ShapeDtypeStruct((N, F3), jnp.float32),
        grid=grid,
        in_specs=[
            pl.BlockSpec((tn, K1), lambda i: (i, 0)),
            pl.BlockSpec((K1, F1), lambda i: (0, 0)),
            pl.BlockSpec((1, F1), lambda i: (0, 0)),
            pl.BlockSpec((F1, F2), lambda i: (0, 0)),
            pl.BlockSpec((1, F2), lambda i: (0, 0)),
            pl.BlockSpec((F2, F3), lambda i: (0, 0)),
            pl.BlockSpec((1, F3), lambda i: (0, 0)),
        ],
        out_specs=pl.BlockSpec((tn, F3), lambda i: (i, 0)),
        compiler_params=pltpu.CompilerParams(
            dimension_semantics=("parallel",)),
    )(x, w1, b1, w2, b2, w3, b3)


# ----------------------------------------------------------------------------
# Parameters: PyTorch-layout init + one-time kernel-layout preparation
# ----------------------------------------------------------------------------
def init_params(key):
    ks = jax.random.split(key, 10)

    def u(k, shape, fan_in):
        bound = 1.0 / jnp.sqrt(jnp.float32(fan_in))
        return jax.random.uniform(k, shape, jnp.float32, -bound, bound)

    return {
        "conv1_w": u(ks[0], (12, 3, 5, 5), 3 * 25),
        "conv1_b": u(ks[1], (12,), 3 * 25),
        "conv2_w": u(ks[2], (16, 12, 5, 5), 12 * 25),
        "conv2_b": u(ks[3], (16,), 12 * 25),
        "fc1_w": u(ks[4], (120, 16 * 5 * 5), 16 * 5 * 5),
        "fc1_b": u(ks[5], (120,), 16 * 5 * 5),
        "fc2_w": u(ks[6], (84, 120), 120),
        "fc2_b": u(ks[7], (84,), 120),
        "fc3_w": u(ks[8], (10, 84), 84),
        "fc3_b": u(ks[9], (10,), 84),
    }


def prepare_params(p):
    """One-time reformat of PyTorch-layout params into kernel layout (outside
    the jitted forward): conv weights -> (kh*kw*C, O) with (i, j, c) column
    order, fc1 columns permuted so the channels-last (h, w, c) flatten matches
    PyTorch's x.view(-1, 400) on NCHW exactly, bf16 weights, (1, F) f32 biases."""
    def conv_w(w):   # (O, C, KH, KW) -> (KH*KW*C, O), row index (i*KW+j)*C+c
        O, C, KH, KW = w.shape
        return w.transpose(2, 3, 1, 0).reshape(KH * KW * C, O).astype(jnp.bfloat16)

    def row(b):
        return b.reshape(1, -1).astype(jnp.float32)

    # fc1 consumes the channels-last flatten (h, w, c); PyTorch flattens (c, h, w).
    fc1 = p["fc1_w"].reshape(120, 16, 5, 5).transpose(0, 2, 3, 1)
    fc1 = fc1.reshape(120, 400).T.astype(jnp.bfloat16)           # (400, 120)

    return {
        "conv1_w": conv_w(p["conv1_w"]), "conv1_b": row(p["conv1_b"]),
        "conv2_w": conv_w(p["conv2_w"]), "conv2_b": row(p["conv2_b"]),
        "fc1_w": fc1, "fc1_b": row(p["fc1_b"]),
        "fc2_w": p["fc2_w"].T.astype(jnp.bfloat16), "fc2_b": row(p["fc2_b"]),
        "fc3_w": p["fc3_w"].T.astype(jnp.bfloat16), "fc3_b": row(p["fc3_b"]),
    }


# ----------------------------------------------------------------------------
# Forward pass (3 Pallas launches)
# ----------------------------------------------------------------------------
@jax.jit
def net_forward(kp, x):
    # NCHW f32 (PyTorch semantics) -> channels-last bf16, once, at the boundary.
    x = x.transpose(0, 2, 3, 1).astype(jnp.bfloat16)             # (N, 32, 32, 3)
    # conv1 + ReLU + pool:  (N,32,32,3) -> (N,14,14,12)   channels-last
    x = conv_relu_pool(x, kp["conv1_w"], kp["conv1_b"])
    # conv2 + ReLU + pool:  -> (N,5,5,16)                  channels-last
    x = conv_relu_pool(x, kp["conv2_w"], kp["conv2_b"])
    # (h, w, c) flatten; fc1 weights were permuted at init to match
    # PyTorch's x.view(-1, 16*5*5) on NCHW exactly.
    x = x.reshape(x.shape[0], 16 * 5 * 5)                        # (N, 400) bf16
    # fused fc1 -> fc2 -> fc3
    return mlp(x, kp["fc1_w"], kp["fc1_b"],
               kp["fc2_w"], kp["fc2_b"],
               kp["fc3_w"], kp["fc3_b"])                         # (N, 10) f32


if __name__ == "__main__":
    key = jax.random.PRNGKey(0)
    pkey, xkey = jax.random.split(key)
    params = init_params(pkey)
    kparams = prepare_params(params)     # hoisted: runs once, not per forward
    # The forward pass implies 32x32 spatial input: 32 -> 28 -> 14 -> 10 -> 5.
    x = jax.random.normal(xkey, (2, 3, 32, 32), jnp.float32)
    out = net_forward(kparams, x)
    out = jax.block_until_ready(out)
    assert out.shape == (2, 10) and out.dtype == jnp.float32
    print("KERNEL_OK")
</pallas_src>

<mosaic_0001>
module attributes {stable_mosaic.version = 11 : i64} {
  func.func @_conv_relu_pool_kernel(%arg0: i32, %arg1: memref<392x75xbf16, #tpu.memory_space<vmem>>, %arg2: memref<392x75xbf16, #tpu.memory_space<vmem>>, %arg3: memref<392x75xbf16, #tpu.memory_space<vmem>>, %arg4: memref<392x75xbf16, #tpu.memory_space<vmem>>, %arg5: memref<75x12xbf16, #tpu.memory_space<vmem>>, %arg6: memref<1x12xf32, #tpu.memory_space<vmem>>, %arg7: memref<392x12xbf16, #tpu.memory_space<vmem>>) attributes {dimension_semantics = [#tpu.dimension_semantics<parallel>], iteration_bounds = array<i64: 1>, scalar_prefetch = 0 : i64, scratch_operands = 0 : i64, tpu.core_type = #tpu.core_type<tc>, window_params = [{transform_indices = @transform_0, window_bounds = array<i64: 392, 75>}, {transform_indices = @transform_1, window_bounds = array<i64: 392, 75>}, {transform_indices = @transform_2, window_bounds = array<i64: 392, 75>}, {transform_indices = @transform_3, window_bounds = array<i64: 392, 75>}, {pipeline_mode = #tpu.pipeline_mode<synchronous>, transform_indices = @transform_4, window_bounds = array<i64: 75, 12>}, {pipeline_mode = #tpu.pipeline_mode<synchronous>, transform_indices = @transform_5, window_bounds = array<i64: 1, 12>}, {transform_indices = @transform_6, window_bounds = array<i64: 392, 12>}]} {
    %c0 = arith.constant 0 : index
    %c0_0 = arith.constant 0 : index
    %0 = vector.load %arg5[%c0, %c0_0] : memref<75x12xbf16, #tpu.memory_space<vmem>>, vector<75x12xbf16>
    %c0_1 = arith.constant 0 : index
    %c0_2 = arith.constant 0 : index
    %1 = vector.load %arg1[%c0_1, %c0_2] : memref<392x75xbf16, #tpu.memory_space<vmem>>, vector<392x75xbf16>
    %cst = arith.constant dense<0.000000e+00> : vector<392x12xf32>
    %2 = tpu.matmul %1, %0, %cst {dimension_numbers = #tpu.dot_dimension_numbers<[1], [0], [0], [1], [0, 0, 1, 1], [], []>} : vector<392x75xbf16>, vector<75x12xbf16>, vector<392x12xf32> -> vector<392x12xf32>
    %c0_3 = arith.constant 0 : index
    %c0_4 = arith.constant 0 : index
    %3 = vector.load %arg2[%c0_3, %c0_4] : memref<392x75xbf16, #tpu.memory_space<vmem>>, vector<392x75xbf16>
    %cst_5 = arith.constant dense<0.000000e+00> : vector<392x12xf32>
    %4 = tpu.matmul %3, %0, %cst_5 {dimension_numbers = #tpu.dot_dimension_numbers<[1], [0], [0], [1], [0, 0, 1, 1], [], []>} : vector<392x75xbf16>, vector<75x12xbf16>, vector<392x12xf32> -> vector<392x12xf32>
    %5 = arith.maximumf %2, %4 : vector<392x12xf32>
    %c0_6 = arith.constant 0 : index
    %c0_7 = arith.constant 0 : index
    %6 = vector.load %arg3[%c0_6, %c0_7] : memref<392x75xbf16, #tpu.memory_space<vmem>>, vector<392x75xbf16>
    %cst_8 = arith.constant dense<0.000000e+00> : vector<392x12xf32>
    %7 = tpu.matmul %6, %0, %cst_8 {dimension_numbers = #tpu.dot_dimension_numbers<[1], [0], [0], [1], [0, 0, 1, 1], [], []>} : vector<392x75xbf16>, vector<75x12xbf16>, vector<392x12xf32> -> vector<392x12xf32>
    %8 = arith.maximumf %5, %7 : vector<392x12xf32>
    %c0_9 = arith.constant 0 : index
    %c0_10 = arith.constant 0 : index
    %9 = vector.load %arg4[%c0_9, %c0_10] : memref<392x75xbf16, #tpu.memory_space<vmem>>, vector<392x75xbf16>
    %cst_11 = arith.constant dense<0.000000e+00> : vector<392x12xf32>
    %10 = tpu.matmul %9, %0, %cst_11 {dimension_numbers = #tpu.dot_dimension_numbers<[1], [0], [0], [1], [0, 0, 1, 1], [], []>} : vector<392x75xbf16>, vector<75x12xbf16>, vector<392x12xf32> -> vector<392x12xf32>
    %11 = arith.maximumf %8, %10 : vector<392x12xf32>
    %c0_12 = arith.constant 0 : index
    %c0_13 = arith.constant 0 : index
    %12 = vector.load %arg6[%c0_12, %c0_13] : memref<1x12xf32, #tpu.memory_space<vmem>>, vector<1x12xf32>
    %13 = vector.broadcast %12 : vector<1x12xf32> to vector<392x12xf32>
    %14 = arith.addf %11, %13 : vector<392x12xf32>
    %cst_14 = arith.constant 0.000000e+00 : f32
    %15 = vector.broadcast %cst_14 : f32 to vector<392x12xf32>
    %16 = arith.maximumf %14, %15 : vector<392x12xf32>
    %17 = arith.truncf %16 : vector<392x12xf32> to vector<392x12xbf16>
    %c0_15 = arith.constant 0 : index
    %c0_16 = arith.constant 0 : index
    %18 = vector.load %arg7[%c0_15, %c0_16] : memref<392x12xbf16, #tpu.memory_space<vmem>>, vector<392x12xbf16>
    tpu.vector_store %arg7[%c0_15, %c0_16], %17 {strides = array<i32>} : memref<392x12xbf16, #tpu.memory_space<vmem>>, vector<392x12xbf16>,
    return
  }
  func.func @transform_0(%arg0: i32) -> (i32, i32) {
    %c0_i32 = arith.constant 0 : i32
    %c0_i32_0 = arith.constant 0 : i32
    return %arg0, %c0_i32 : i32, i32
  }
  func.func @transform_1(%arg0: i32) -> (i32, i32) {
    %c0_i32 = arith.constant 0 : i32
    %c0_i32_0 = arith.constant 0 : i32
    return %arg0, %c0_i32 : i32, i32
  }
  func.func @transform_2(%arg0: i32) -> (i32, i32) {
    %c0_i32 = arith.constant 0 : i32
    %c0_i32_0 = arith.constant 0 : i32
    return %arg0, %c0_i32 : i32, i32
  }
  func.func @transform_3(%arg0: i32) -> (i32, i32) {
    %c0_i32 = arith.constant 0 : i32
    %c0_i32_0 = arith.constant 0 : i32
    return %arg0, %c0_i32 : i32, i32
  }
  func.func @transform_4(%arg0: i32) -> (i32, i32) {
    %c0_i32 = arith.constant 0 : i32
    %c0_i32_0 = arith.constant 0 : i32
    %c0_i32_1 = arith.constant 0 : i32
    return %c0_i32, %c0_i32_0 : i32, i32
  }
  func.func @transform_5(%arg0: i32) -> (i32, i32) {
    %c0_i32 = arith.constant 0 : i32
    %c0_i32_0 = arith.constant 0 : i32
    %c0_i32_1 = arith.constant 0 : i32
    return %c0_i32, %c0_i32_0 : i32, i32
  }
  func.func @transform_6(%arg0: i32) -> (i32, i32) {
    %c0_i32 = arith.constant 0 : i32
    %c0_i32_0 = arith.constant 0 : i32
    return %arg0, %c0_i32 : i32, i32
  }
}

module attributes {stable_mosaic.version = 11 : i64} {
  func.func @_conv_relu_pool_kernel(%arg0: i32, %arg1: memref<50x300xbf16, #tpu.memory_space<vmem>>, %arg2: memref<50x300xbf16, #tpu.memory_space<vmem>>, %arg3: memref<50x300xbf16, #tpu.memory_space<vmem>>, %arg4: memref<50x300xbf16, #tpu.memory_space<vmem>>, %arg5: memref<300x16xbf16, #tpu.memory_space<vmem>>, %arg6: memref<1x16xf32, #tpu.memory_space<vmem>>, %arg7: memref<50x16xbf16, #tpu.memory_space<vmem>>) attributes {dimension_semantics = [#tpu.dimension_semantics<parallel>], iteration_bounds = array<i64: 1>, scalar_prefetch = 0 : i64, scratch_operands = 0 : i64, tpu.core_type = #tpu.core_type<tc>, window_params = [{transform_indices = @transform_0, window_bounds = array<i64: 50, 300>}, {transform_indices = @transform_1, window_bounds = array<i64: 50, 300>}, {transform_indices = @transform_2, window_bounds = array<i64: 50, 300>}, {transform_indices = @transform_3, window_bounds = array<i64: 50, 300>}, {pipeline_mode = #tpu.pipeline_mode<synchronous>, transform_indices = @transform_4, window_bounds = array<i64: 300, 16>}, {pipeline_mode = #tpu.pipeline_mode<synchronous>, transform_indices = @transform_5, window_bounds = array<i64: 1, 16>}, {transform_indices = @transform_6, window_bounds = array<i64: 50, 16>}]} {
    %c0 = arith.constant 0 : index
    %c0_0 = arith.constant 0 : index
    %0 = vector.load %arg5[%c0, %c0_0] : memref<300x16xbf16, #tpu.memory_space<vmem>>, vector<300x16xbf16>
    %c0_1 = arith.constant 0 : index
    %c0_2 = arith.constant 0 : index
    %1 = vector.load %arg1[%c0_1, %c0_2] : memref<50x300xbf16, #tpu.memory_space<vmem>>, vector<50x300xbf16>
    %cst = arith.constant dense<0.000000e+00> : vector<50x16xf32>
    %2 = tpu.matmul %1, %0, %cst {dimension_numbers = #tpu.dot_dimension_numbers<[1], [0], [0], [1], [0, 0, 1, 1], [], []>} : vector<50x300xbf16>, vector<300x16xbf16>, vector<50x16xf32> -> vector<50x16xf32>
    %c0_3 = arith.constant 0 : index
    %c0_4 = arith.constant 0 : index
    %3 = vector.load %arg2[%c0_3, %c0_4] : memref<50x300xbf16, #tpu.memory_space<vmem>>, vector<50x300xbf16>
    %cst_5 = arith.constant dense<0.000000e+00> : vector<50x16xf32>
    %4 = tpu.matmul %3, %0, %cst_5 {dimension_numbers = #tpu.dot_dimension_numbers<[1], [0], [0], [1], [0, 0, 1, 1], [], []>} : vector<50x300xbf16>, vector<300x16xbf16>, vector<50x16xf32> -> vector<50x16xf32>
    %5 = arith.maximumf %2, %4 : vector<50x16xf32>
    %c0_6 = arith.constant 0 : index
    %c0_7 = arith.constant 0 : index
    %6 = vector.load %arg3[%c0_6, %c0_7] : memref<50x300xbf16, #tpu.memory_space<vmem>>, vector<50x300xbf16>
    %cst_8 = arith.constant dense<0.000000e+00> : vector<50x16xf32>
    %7 = tpu.matmul %6, %0, %cst_8 {dimension_numbers = #tpu.dot_dimension_numbers<[1], [0], [0], [1], [0, 0, 1, 1], [], []>} : vector<50x300xbf16>, vector<300x16xbf16>, vector<50x16xf32> -> vector<50x16xf32>
    %8 = arith.maximumf %5, %7 : vector<50x16xf32>
    %c0_9 = arith.constant 0 : index
    %c0_10 = arith.constant 0 : index
    %9 = vector.load %arg4[%c0_9, %c0_10] : memref<50x300xbf16, #tpu.memory_space<vmem>>, vector<50x300xbf16>
    %cst_11 = arith.constant dense<0.000000e+00> : vector<50x16xf32>
    %10 = tpu.matmul %9, %0, %cst_11 {dimension_numbers = #tpu.dot_dimension_numbers<[1], [0], [0], [1], [0, 0, 1, 1], [], []>} : vector<50x300xbf16>, vector<300x16xbf16>, vector<50x16xf32> -> vector<50x16xf32>
    %11 = arith.maximumf %8, %10 : vector<50x16xf32>
    %c0_12 = arith.constant 0 : index
    %c0_13 = arith.constant 0 : index
    %12 = vector.load %arg6[%c0_12, %c0_13] : memref<1x16xf32, #tpu.memory_space<vmem>>, vector<1x16xf32>
    %13 = vector.broadcast %12 : vector<1x16xf32> to vector<50x16xf32>
    %14 = arith.addf %11, %13 : vector<50x16xf32>
    %cst_14 = arith.constant 0.000000e+00 : f32
    %15 = vector.broadcast %cst_14 : f32 to vector<50x16xf32>
    %16 = arith.maximumf %14, %15 : vector<50x16xf32>
    %17 = arith.truncf %16 : vector<50x16xf32> to vector<50x16xbf16>
    %c0_15 = arith.constant 0 : index
    %c0_16 = arith.constant 0 : index
    %18 = vector.load %arg7[%c0_15, %c0_16] : memref<50x16xbf16, #tpu.memory_space<vmem>>, vector<50x16xbf16>
    tpu.vector_store %arg7[%c0_15, %c0_16], %17 {strides = array<i32>} : memref<50x16xbf16, #tpu.memory_space<vmem>>, vector<50x16xbf16>,
    return
  }
  func.func @transform_0(%arg0: i32) -> (i32, i32) {
    %c0_i32 = arith.constant 0 : i32
    %c0_i32_0 = arith.constant 0 : i32
    return %arg0, %c0_i32 : i32, i32
  }
  func.func @transform_1(%arg0: i32) -> (i32, i32) {
    %c0_i32 = arith.constant 0 : i32
    %c0_i32_0 = arith.constant 0 : i32
    return %arg0, %c0_i32 : i32, i32
  }
  func.func @transform_2(%arg0: i32) -> (i32, i32) {
    %c0_i32 = arith.constant 0 : i32
    %c0_i32_0 = arith.constant 0 : i32
    return %arg0, %c0_i32 : i32, i32
  }
  func.func @transform_3(%arg0: i32) -> (i32, i32) {
    %c0_i32 = arith.constant 0 : i32
    %c0_i32_0 = arith.constant 0 : i32
    return %arg0, %c0_i32 : i32, i32
  }
  func.func @transform_4(%arg0: i32) -> (i32, i32) {
    %c0_i32 = arith.constant 0 : i32
    %c0_i32_0 = arith.constant 0 : i32
    %c0_i32_1 = arith.constant 0 : i32
    return %c0_i32, %c0_i32_0 : i32, i32
  }
  func.func @transform_5(%arg0: i32) -> (i32, i32) {
    %c0_i32 = arith.constant 0 : i32
    %c0_i32_0 = arith.constant 0 : i32
    %c0_i32_1 = arith.constant 0 : i32
    return %c0_i32, %c0_i32_0 : i32, i32
  }
  func.func @transform_6(%arg0: i32) -> (i32, i32) {
    %c0_i32 = arith.constant 0 : i32
    %c0_i32_0 = arith.constant 0 : i32
    return %arg0, %c0_i32 : i32, i32
  }
}

module attributes {stable_mosaic.version = 11 : i64} {
  func.func @_mlp_kernel(%arg0: i32, %arg1: memref<2x400xbf16, #tpu.memory_space<vmem>>, %arg2: memref<400x120xbf16, #tpu.memory_space<vmem>>, %arg3: memref<1x120xf32, #tpu.memory_space<vmem>>, %arg4: memref<120x84xbf16, #tpu.memory_space<vmem>>, %arg5: memref<1x84xf32, #tpu.memory_space<vmem>>, %arg6: memref<84x10xbf16, #tpu.memory_space<vmem>>, %arg7: memref<1x10xf32, #tpu.memory_space<vmem>>, %arg8: memref<2x10xf32, #tpu.memory_space<vmem>>) attributes {dimension_semantics = [#tpu.dimension_semantics<parallel>], iteration_bounds = array<i64: 1>, scalar_prefetch = 0 : i64, scratch_operands = 0 : i64, tpu.core_type = #tpu.core_type<tc>, window_params = [{transform_indices = @transform_0, window_bounds = array<i64: 2, 400>}, {pipeline_mode = #tpu.pipeline_mode<synchronous>, transform_indices = @transform_1, window_bounds = array<i64: 400, 120>}, {pipeline_mode = #tpu.pipeline_mode<synchronous>, transform_indices = @transform_2, window_bounds = array<i64: 1, 120>}, {pipeline_mode = #tpu.pipeline_mode<synchronous>, transform_indices = @transform_3, window_bounds = array<i64: 120, 84>}, {pipeline_mode = #tpu.pipeline_mode<synchronous>, transform_indices = @transform_4, window_bounds = array<i64: 1, 84>}, {pipeline_mode = #tpu.pipeline_mode<synchronous>, transform_indices = @transform_5, window_bounds = array<i64: 84, 10>}, {pipeline_mode = #tpu.pipeline_mode<synchronous>, transform_indices = @transform_6, window_bounds = array<i64: 1, 10>}, {transform_indices = @transform_7, window_bounds = array<i64: 2, 10>}]} {
    %c0 = arith.constant 0 : index
    %c0_0 = arith.constant 0 : index
    %0 = vector.load %arg1[%c0, %c0_0] : memref<2x400xbf16, #tpu.memory_space<vmem>>, vector<2x400xbf16>
    %c0_1 = arith.constant 0 : index
    %c0_2 = arith.constant 0 : index
    %1 = vector.load %arg2[%c0_1, %c0_2] : memref<400x120xbf16, #tpu.memory_space<vmem>>, vector<400x120xbf16>
    %cst = arith.constant dense<0.000000e+00> : vector<2x120xf32>
    %2 = tpu.matmul %0, %1, %cst {dimension_numbers = #tpu.dot_dimension_numbers<[1], [0], [0], [1], [0, 0, 1, 1], [], []>} : vector<2x400xbf16>, vector<400x120xbf16>, vector<2x120xf32> -> vector<2x120xf32>
    %c0_3 = arith.constant 0 : index
    %c0_4 = arith.constant 0 : index
    %3 = vector.load %arg3[%c0_3, %c0_4] : memref<1x120xf32, #tpu.memory_space<vmem>>, vector<1x120xf32>
    %4 = vector.broadcast %3 : vector<1x120xf32> to vector<2x120xf32>
    %5 = arith.addf %2, %4 : vector<2x120xf32>
    %cst_5 = arith.constant 0.000000e+00 : f32
    %6 = vector.broadcast %cst_5 : f32 to vector<2x120xf32>
    %7 = arith.maximumf %5, %6 : vector<2x120xf32>
    %8 = arith.truncf %7 : vector<2x120xf32> to vector<2x120xbf16>
    %c0_6 = arith.constant 0 : index
    %c0_7 = arith.constant 0 : index
    %9 = vector.load %arg4[%c0_6, %c0_7] : memref<120x84xbf16, #tpu.memory_space<vmem>>, vector<120x84xbf16>
    %cst_8 = arith.constant dense<0.000000e+00> : vector<2x84xf32>
    %10 = tpu.matmul %8, %9, %cst_8 {dimension_numbers = #tpu.dot_dimension_numbers<[1], [0], [0], [1], [0, 0, 1, 1], [], []>} : vector<2x120xbf16>, vector<120x84xbf16>, vector<2x84xf32> -> vector<2x84xf32>
    %c0_9 = arith.constant 0 : index
    %c0_10 = arith.constant 0 : index
    %11 = vector.load %arg5[%c0_9, %c0_10] : memref<1x84xf32, #tpu.memory_space<vmem>>, vector<1x84xf32>
    %12 = vector.broadcast %11 : vector<1x84xf32> to vector<2x84xf32>
    %13 = arith.addf %10, %12 : vector<2x84xf32>
    %cst_11 = arith.constant 0.000000e+00 : f32
    %14 = vector.broadcast %cst_11 : f32 to vector<2x84xf32>
    %15 = arith.maximumf %13, %14 : vector<2x84xf32>
    %16 = arith.truncf %15 : vector<2x84xf32> to vector<2x84xbf16>
    %c0_12 = arith.constant 0 : index
    %c0_13 = arith.constant 0 : index
    %17 = vector.load %arg6[%c0_12, %c0_13] : memref<84x10xbf16, #tpu.memory_space<vmem>>, vector<84x10xbf16>
    %cst_14 = arith.constant dense<0.000000e+00> : vector<2x10xf32>
    %18 = tpu.matmul %16, %17, %cst_14 {dimension_numbers = #tpu.dot_dimension_numbers<[1], [0], [0], [1], [0, 0, 1, 1], [], []>} : vector<2x84xbf16>, vector<84x10xbf16>, vector<2x10xf32> -> vector<2x10xf32>
    %c0_15 = arith.constant 0 : index
    %c0_16 = arith.constant 0 : index
    %19 = vector.load %arg7[%c0_15, %c0_16] : memref<1x10xf32, #tpu.memory_space<vmem>>, vector<1x10xf32>
    %20 = vector.broadcast %19 : vector<1x10xf32> to vector<2x10xf32>
    %21 = arith.addf %18, %20 : vector<2x10xf32>
    %c0_17 = arith.constant 0 : index
    %c0_18 = arith.constant 0 : index
    %22 = vector.load %arg8[%c0_17, %c0_18] : memref<2x10xf32, #tpu.memory_space<vmem>>, vector<2x10xf32>
    tpu.vector_store %arg8[%c0_17, %c0_18], %21 {strides = array<i32>} : memref<2x10xf32, #tpu.memory_space<vmem>>, vector<2x10xf32>,
    return
  }
  func.func @transform_0(%arg0: i32) -> (i32, i32) {
    %c0_i32 = arith.constant 0 : i32
    %c0_i32_0 = arith.constant 0 : i32
    return %arg0, %c0_i32 : i32, i32
  }
  func.func @transform_1(%arg0: i32) -> (i32, i32) {
    %c0_i32 = arith.constant 0 : i32
    %c0_i32_0 = arith.constant 0 : i32
    %c0_i32_1 = arith.constant 0 : i32
    return %c0_i32, %c0_i32_0 : i32, i32
  }
  func.func @transform_2(%arg0: i32) -> (i32, i32) {
    %c0_i32 = arith.constant 0 : i32
    %c0_i32_0 = arith.constant 0 : i32
    %c0_i32_1 = arith.constant 0 : i32
    return %c0_i32, %c0_i32_0 : i32, i32
  }
  func.func @transform_3(%arg0: i32) -> (i32, i32) {
    %c0_i32 = arith.constant 0 : i32
    %c0_i32_0 = arith.constant 0 : i32
    %c0_i32_1 = arith.constant 0 : i32
    return %c0_i32, %c0_i32_0 : i32, i32
  }
  func.func @transform_4(%arg0: i32) -> (i32, i32) {
    %c0_i32 = arith.constant 0 : i32
    %c0_i32_0 = arith.constant 0 : i32
    %c0_i32_1 = arith.constant 0 : i32
    return %c0_i32, %c0_i32_0 : i32, i32
  }
  func.func @transform_5(%arg0: i32) -> (i32, i32) {
    %c0_i32 = arith.constant 0 : i32
    %c0_i32_0 = arith.constant 0 : i32
    %c0_i32_1 = arith.constant 0 : i32
    return %c0_i32, %c0_i32_0 : i32, i32
  }
  func.func @transform_6(%arg0: i32) -> (i32, i32) {
    %c0_i32 = arith.constant 0 : i32
    %c0_i32_0 = arith.constant 0 : i32
    %c0_i32_1 = arith.constant 0 : i32
    return %c0_i32, %c0_i32_0 : i32, i32
  }
  func.func @transform_7(%arg0: i32) -> (i32, i32) {
    %c0_i32 = arith.constant 0 : i32
    %c0_i32_0 = arith.constant 0 : i32
    return %arg0, %c0_i32 : i32, i32
  }
}

</mosaic_0001>

<bundles_post_ra>
// kernel: net_forward.3
= control target key start
LH: loop header
LB: loop body
LE: loop exit
PB: predicated region body
PF: predicated region fallthrough
CT: control target
= control target key end

     0   :  { %v4833_v0 = vmov 0.0   ;;  %vm3463_vm0 = vmmov 0   ;;  %vm311_vm1 = vcmask 1044480   ;;  %vm312_vm2 = vcmask 1045504   ;;  %s4826_s4 = inlined_call_operand.vmem [shape: bf16[75,12], index: 4, kind: input, shape index: {}]   ;;  %s4827_s0 = inlined_call_operand.vmem [shape: bf16[392,75], index: 0, kind: input, shape index: {}]   ;;  %s4828_s1 = inlined_call_operand.vmem [shape: bf16[392,75], index: 1, kind: input, shape index: {}]   ;;  %s4829_s2 = inlined_call_operand.vmem [shape: bf16[392,75], index: 2, kind: input, shape index: {}]   ;;  %s4830_s3 = inlined_call_operand.vmem [shape: bf16[392,75], index: 3, kind: input, shape index: {}]   ;;  %s4831_s5 = inlined_call_operand.vmem [shape: f32[1,12], index: 5, kind: input, shape index: {}]   ;;  %s4832_s6 = inlined_call_operand.vmem [shape: bf16[392,12], index: 6, kind: output, shape index: {}]  }
   0x1   :  { %2914 = vmatprep.subr.bf16.mxu0 %v4833_v0  ;;  %3024 = vmatprep.subr.bf16.mxu1 %v4833_v0  ;;  %v3357_v1 = vld [vmem:[%s4826_s4] sm:$0xff]   ;;  %v3358_v2 = vld [vmem:[%s4826_s4 + $0x8] sm:$0xff]   ;;  %v3359_v3 = vld [vmem:[%s4826_s4 + $0x10] sm:$0xff]   ;;  %v3464_v4 = vmov 65535   ;;  %vm235_vm3 = vcmask 613376   ;;  %vm2436_vm4 = vcmask 93184  }
   0x2   :  { %2915 = vmatpush3.bf16.msra.mxu0 %v3357_v1  ;;  %3025 = vmatpush3.bf16.msra.mxu1 %v3357_v1  ;;  %v313_v5 = vsel %vm311_vm1, 4294967295, %v3464_v4  ;;  %v3360_v6 = vld [vmem:[%s4826_s4 + $0x18] sm:$0xff]   ;;  %v3361_v7 = vld [vmem:[%s4826_s4 + $0x20] sm:$0x3f]   ;;  %v3364_v12 = vld [vmem:[%s4827_s0 + $0x8] sm:$0xff]  }
   0x3   :  { %2916 = vmatprep.subr.bf16.mxu0 %v4833_v0  ;;  %3026 = vmatprep.subr.bf16.mxu1 %v4833_v0  ;;  %v314_v8 = vsel %vm312_vm2, %v313_v5, 0  ;;  %v3362_v10 = vld [vmem:[%s4827_s0] sm:$0xff]   ;;  %v3365_v13 = vld [vmem:[%s4828_s1 + $0x8] sm:$0xff]   ;;  %v3366_v14 = vld [vmem:[%s4827_s0 + $0x10] sm:$0xff]  }
   0x4   :  { %2924 = vmatprep.mubr.msk.bf16.mxu0 %vm3463_vm0, %v4833_v0  ;;  %3034 = vmatprep.mubr.msk.bf16.mxu1 %vm3463_vm0, %v4833_v0  ;;  %v316_v9 = vand.u32 %v3361_v7, %v314_v8  ;;  %v3363_v11 = vld [vmem:[%s4828_s1] sm:$0xff]   ;;  %v3367_v15 = vld [vmem:[%s4828_s1 + $0x10] sm:$0xff]   ;;  %v3368_v16 = vld [vmem:[%s4827_s0 + $0x18] sm:$0xff]  }
   0x5   :  { %v3369_v17 = vld [vmem:[%s4828_s1 + $0x18] sm:$0xff]   ;;  %v3370_v18 = vld [vmem:[%s4827_s0 + $0x20] sm:$0xff]   ;;  %v3372_v20 = vld [vmem:[%s4827_s0 + $0x28] sm:$0xff]  }
   0x6   :  { %2917 = vmatpush3.bf16.msra.mxu0 %v3358_v2  ;;  %3027 = vmatpush3.bf16.msra.mxu1 %v3358_v2  ;;  %v3371_v19 = vld [vmem:[%s4828_s1 + $0x20] sm:$0xff]   ;;  %v3373_v21 = vld [vmem:[%s4828_s1 + $0x28] sm:$0xff]   ;;  %v3374_v22 = vld [vmem:[%s4827_s0 + $0x30] sm:$0xff]  }
   0x7   :  { %2918 = vmatprep.subr.bf16.mxu0 %v4833_v0  ;;  %3028 = vmatprep.subr.bf16.mxu1 %v4833_v0  ;;  %v3375_v23 = vld [vmem:[%s4828_s1 + $0x30] sm:$0xff]   ;;  %v3376_v24 = vld [vmem:[%s4827_s0 + $0x38] sm:$0xff]   ;;  %v3378_v26 = vld [vmem:[%s4827_s0 + $0x40] sm:$0xff]  }
   0x8   :  { %v3377_v25 = vld [vmem:[%s4828_s1 + $0x38] sm:$0xff]   ;;  %v3379_v27 = vld [vmem:[%s4828_s1 + $0x40] sm:$0xff]   ;;  %v3380_v28 = vld [vmem:[%s4827_s0 + $0x48] sm:$0xff]  }
   0x9   :  { %v3381_v29 = vld [vmem:[%s4828_s1 + $0x48] sm:$0xff]   ;;  %v3382_v30 = vld [vmem:[%s4827_s0 + $0x50] sm:$0xff]   ;;  %v3384_v32 = vld [vmem:[%s4827_s0 + $0x58] sm:$0xff]  }
   0xa   :  { %2919 = vmatpush3.bf16.msra.mxu0 %v3359_v3  ;;  %3029 = vmatpush3.bf16.msra.mxu1 %v3359_v3  ;;  %v3383_v31 = vld [vmem:[%s4828_s1 + $0x50] sm:$0xff]   ;;  %v3385_v33 = vld [vmem:[%s4828_s1 + $0x58] sm:$0xff]   ;;  %v3386_v34 = vld [vmem:[%s4827_s0 + $0x60] sm:$0xff]  }
   0xb   :  { %2920 = vmatprep.subr.bf16.mxu0 %v4833_v0  ;;  %3030 = vmatprep.subr.bf16.mxu1 %v4833_v0  ;;  %v3387_v35 = vld [vmem:[%s4828_s1 + $0x60] sm:$0xff]   ;;  %v3388_v36 = vld [vmem:[%s4827_s0 + $0x68] sm:$0xff]   ;;  %v3390_v38 = vld [vmem:[%s4827_s0 + $0x70] sm:$0xff]  }
   0xc   :  { %v3389_v37 = vld [vmem:[%s4828_s1 + $0x68] sm:$0xff]   ;;  %v3391_v39 = vld [vmem:[%s4828_s1 + $0x70] sm:$0xff]   ;;  %v3392_v40 = vld [vmem:[%s4827_s0 + $0x78] sm:$0xff]  }
   0xd   :  { %v3393_v41 = vld [vmem:[%s4828_s1 + $0x78] sm:$0xff]   ;;  %v3394_v42 = vld [vmem:[%s4827_s0 + $0x80] sm:$0xff]   ;;  %v3396_v44 = vld [vmem:[%s4827_s0 + $0x88] sm:$0xff]  }
   0xe   :  { %2921 = vmatpush3.bf16.msra.mxu0 %v3360_v6  ;;  %3031 = vmatpush3.bf16.msra.mxu1 %v3360_v6  ;;  %v3395_v43 = vld [vmem:[%s4828_s1 + $0x80] sm:$0xff]   ;;  %v3397_v45 = vld [vmem:[%s4828_s1 + $0x88] sm:$0xff]   ;;  %v3398_v46 = vld [vmem:[%s4827_s0 + $0x90] sm:$0xff]  }
   0xf   :  { %2922 = vmatprep.subr.bf16.mxu0 %v4833_v0  ;;  %3032 = vmatprep.subr.bf16.mxu1 %v4833_v0  ;;  %v3399_v47 = vld [vmem:[%s4828_s1 + $0x90] sm:$0xff]   ;;  %v3400_v48 = vld [vmem:[%s4827_s0 + $0x98] sm:$0xff]   ;;  %v3402_v50 = vld [vmem:[%s4827_s0 + $0xa0] sm:$0xff]  }
  0x10   :  { %v3401_v49 = vld [vmem:[%s4828_s1 + $0x98] sm:$0xff]   ;;  %v3403_v51 = vld [vmem:[%s4828_s1 + $0xa0] sm:$0xff]   ;;  %v3404_v52 = vld [vmem:[%s4827_s0 + $0xa8] sm:$0xff]  }
  0x11   :  { %v3405_v53 = vld [vmem:[%s4828_s1 + $0xa8] sm:$0xff]   ;;  %v3406_v54 = vld [vmem:[%s4827_s0 + $0xb0] sm:$0xff]   ;;  %v3408_v56 = vld [vmem:[%s4827_s0 + $0xb8] sm:$0xff]  }
  0x12   :  { %2923 = vmatpush3.bf16.msra.mxu0 %v316_v9  ;;  %3033 = vmatpush3.bf16.msra.mxu1 %v316_v9  ;;  %v3407_v55 = vld [vmem:[%s4828_s1 + $0xb0] sm:$0xff]   ;;  %v3409_v57 = vld [vmem:[%s4828_s1 + $0xb8] sm:$0xff]   ;;  %v3410_v58 = vld [vmem:[%s4827_s0 + $0xc0] ss:$0 sps:$4 sm:$0xff]  }
  0x13   :  { %3134 = vmatprep.subr.bf16.mxu0 %v4833_v0  ;;  %3244 = vmatprep.subr.bf16.mxu1 %v4833_v0  ;;  %v3411_v59 = vld [vmem:[%s4828_s1 + $0xc0] ss:$0 sps:$4 sm:$0xff]   ;;  %v3414_v62 = vld [vmem:[%s4829_s2 + $0x8] sm:$0xff]   ;;  %v3417_v7 = vld [vmem:[%s4830_s3 + $0x10] sm:$0xff]  }
  0x14   :  { %v3412_v60 = vld [vmem:[%s4829_s2] sm:$0xff]   ;;  %v3415_v63 = vld [vmem:[%s4830_s3 + $0x8] sm:$0xff]  }
  0x15   :  { %2925 = vmatmul.mubr.msk.bf16.vlgmr.msra.gmra.mrb[0].mxu0 %vm235_vm3, %v3362_v10  ;;  %3035 = vmatmul.mubr.msk.bf16.vlgmr.msra.gmra.mrb[0].mxu1 %vm235_vm3, %v3363_v11  ;;  %v3413_v61 = vld [vmem:[%s4830_s3] sm:$0xff]  }
  0x16   :  { %3135 = vmatpush3.bf16.msra.mxu0 %v3357_v1  ;;  %3245 = vmatpush3.bf16.msra.mxu1 %v3357_v1 }
  0x17   :  { %2928 = vmatprep.mubr.msk.bf16.mxu0 %vm3463_vm0, %v4833_v0  ;;  %3038 = vmatprep.mubr.msk.bf16.mxu1 %vm3463_vm0, %v4833_v0 }
  0x18   :  { %3136 = vmatprep.subr.bf16.mxu0 %v4833_v0  ;;  %3246 = vmatprep.subr.bf16.mxu1 %v4833_v0 }
  0x1a   :  { %3137 = vmatpush3.bf16.msra.mxu0 %v3358_v2  ;;  %3247 = vmatpush3.bf16.msra.mxu1 %v3358_v2 }
  0x1b   :  { %3138 = vmatprep.subr.bf16.mxu0 %v4833_v0  ;;  %3248 = vmatprep.subr.bf16.mxu1 %v4833_v0 }
  0x1d   :  { %2929 = vmatmul.mubr.msk.bf16.gmra.mrb[4].mxu0 %vm235_vm3, %v3364_v12  ;;  %3039 = vmatmul.mubr.msk.bf16.gmra.mrb[4].mxu1 %vm235_vm3, %v3365_v13 }
  0x1e   :  { %2932 = vmatprep.mubr.msk.bf16.mxu0 %vm3463_vm0, %v4833_v0  ;;  %3042 = vmatprep.mubr.msk.bf16.mxu1 %vm3463_vm0, %v4833_v0 }
  0x1f   :  { %3139 = vmatpush3.bf16.msra.mxu0 %v3359_v3  ;;  %3249 = vmatpush3.bf16.msra.mxu1 %v3359_v3 }
  0x20   :  { %3140 = vmatprep.subr.bf16.mxu0 %v4833_v0  ;;  %3250 = vmatprep.subr.bf16.mxu1 %v4833_v0 }
  0x23   :  { %3141 = vmatpush3.bf16.msra.mxu0 %v3360_v6  ;;  %3251 = vmatpush3.bf16.msra.mxu1 %v3360_v6  ;;  %v3416_v6 = vld [vmem:[%s4829_s2 + $0x10] sm:$0xff]  }
  0x24   :  { %3142 = vmatprep.subr.bf16.mxu0 %v4833_v0  ;;  %3252 = vmatprep.subr.bf16.mxu1 %v4833_v0 }
  0x25   :  { %2933 = vmatmul.mubr.msk.bf16.gmra.mrb[8].mxu0 %vm235_vm3, %v3366_v14  ;;  %3043 = vmatmul.mubr.msk.bf16.gmra.mrb[8].mxu1 %vm235_vm3, %v3367_v15 }
  0x26   :  { %2936 = vmatprep.mubr.msk.bf16.mxu0 %vm3463_vm0, %v4833_v0  ;;  %3046 = vmatprep.mubr.msk.bf16.mxu1 %vm3463_vm0, %v4833_v0 }
  0x27   :  { %3143 = vmatpush3.bf16.msra.mxu0 %v316_v9  ;;  %3253 = vmatpush3.bf16.msra.mxu1 %v316_v9 }
  0x2d   :  { %2937 = vmatmul.mubr.msk.bf16.gmra.mrb[12].mxu0 %vm235_vm3, %v3368_v16  ;;  %3047 = vmatmul.mubr.msk.bf16.gmra.mrb[12].mxu1 %vm235_vm3, %v3369_v17 }
  0x2e   :  { %2940 = vmatprep.mubr.msk.bf16.mxu0 %vm3463_vm0, %v4833_v0  ;;  %3050 = vmatprep.mubr.msk.bf16.mxu1 %vm3463_vm0, %v4833_v0 }
  0x35   :  { %2941 = vmatmul.mubr.msk.bf16.gmra.mrb[16].mxu0 %vm235_vm3, %v3370_v18  ;;  %3051 = vmatmul.mubr.msk.bf16.gmra.mrb[16].mxu1 %vm235_vm3, %v3371_v19  ;;  %v3418_v18 = vld [vmem:[%s4829_s2 + $0x18] sm:$0xff]  }
  0x36   :  { %2944 = vmatprep.mubr.msk.bf16.mxu0 %vm3463_vm0, %v4833_v0  ;;  %3054 = vmatprep.mubr.msk.bf16.mxu1 %vm3463_vm0, %v4833_v0  ;;  %v3419_v19 = vld [vmem:[%s4830_s3 + $0x18] sm:$0xff]  }
  0x3d   :  { %2945 = vmatmul.mubr.msk.bf16.gmra.mrb[20].mxu0 %vm235_vm3, %v3372_v20  ;;  %3055 = vmatmul.mubr.msk.bf16.gmra.mrb[20].mxu1 %vm235_vm3, %v3373_v21 }
  0x3e   :  { %2948 = vmatprep.mubr.msk.bf16.mxu0 %vm3463_vm0, %v4833_v0  ;;  %3058 = vmatprep.mubr.msk.bf16.mxu1 %vm3463_vm0, %v4833_v0 }
  0x45   :  { %2949 = vmatmul.mubr.msk.bf16.gmra.mrb[24].mxu0 %vm235_vm3, %v3374_v22  ;;  %3059 = vmatmul.mubr.msk.bf16.gmra.mrb[24].mxu1 %vm235_vm3, %v3375_v23 }
  0x46   :  { %2952 = vmatprep.mubr.msk.bf16.mxu0 %vm3463_vm0, %v4833_v0  ;;  %3062 = vmatprep.mubr.msk.bf16.mxu1 %vm3463_vm0, %v4833_v0 }
  0x4d   :  { %2953 = vmatmul.mubr.msk.bf16.gmra.mrb[28].mxu0 %vm235_vm3, %v3376_v24  ;;  %3063 = vmatmul.mubr.msk.bf16.gmra.mrb[28].mxu1 %vm235_vm3, %v3377_v25 }
  0x4e   :  { %2956 = vmatprep.mubr.msk.bf16.mxu0 %vm3463_vm0, %v4833_v0  ;;  %3066 = vmatprep.mubr.msk.bf16.mxu1 %vm3463_vm0, %v4833_v0 }
  0x55   :  { %2957 = vmatmul.mubr.msk.bf16.gmra.mrb[32].mxu0 %vm235_vm3, %v3378_v26  ;;  %3067 = vmatmul.mubr.msk.bf16.gmra.mrb[32].mxu1 %vm235_vm3, %v3379_v27 }
  0x56   :  { %2960 = vmatprep.mubr.msk.bf16.mxu0 %vm3463_vm0, %v4833_v0  ;;  %3070 = vmatprep.mubr.msk.bf16.mxu1 %vm3463_vm0, %v4833_v0 }
  0x5d   :  { %2961 = vmatmul.mubr.msk.bf16.gmra.mrb[36].mxu0 %vm235_vm3, %v3380_v28  ;;  %3071 = vmatmul.mubr.msk.bf16.gmra.mrb[36].mxu1 %vm235_vm3, %v3381_v29 }
  0x5e   :  { %2964 = vmatprep.mubr.msk.bf16.mxu0 %vm3463_vm0, %v4833_v0  ;;  %3074 = vmatprep.mubr.msk.bf16.mxu1 %vm3463_vm0, %v4833_v0 }
  0x65   :  { %2965 = vmatmul.mubr.msk.bf16.gmra.mrb[40].mxu0 %vm235_vm3, %v3382_v30  ;;  %3075 = vmatmul.mubr.msk.bf16.gmra.mrb[40].mxu1 %vm235_vm3, %v3383_v31  ;;  %v3420_v30 = vld [vmem:[%s4829_s2 + $0x20] sm:$0xff]  }
  0x66   :  { %2968 = vmatprep.mubr.msk.bf16.mxu0 %vm3463_vm0, %v4833_v0  ;;  %3078 = vmatprep.mubr.msk.bf16.mxu1 %vm3463_vm0, %v4833_v0  ;;  %v3421_v31 = vld [vmem:[%s4830_s3 + $0x20] sm:$0xff]  }
  0x6d   :  { %2969 = vmatmul.mubr.msk.bf16.gmra.mrb[44].mxu0 %vm235_vm3, %v3384_v32  ;;  %3079 = vmatmul.mubr.msk.bf16.gmra.mrb[44].mxu1 %vm235_vm3, %v3385_v33 }
  0x6e   :  { %2972 = vmatprep.mubr.msk.bf16.mxu0 %vm3463_vm0, %v4833_v0  ;;  %3082 = vmatprep.mubr.msk.bf16.mxu1 %vm3463_vm0, %v4833_v0 }
  0x75   :  { %2973 = vmatmul.mubr.msk.bf16.gmra.mrb[48].mxu0 %vm235_vm3, %v3386_v34  ;;  %3083 = vmatmul.mubr.msk.bf16.gmra.mrb[48].mxu1 %vm235_vm3, %v3387_v35 }
  0x76   :  { %2976 = vmatprep.mubr.msk.bf16.mxu0 %vm3463_vm0, %v4833_v0  ;;  %3086 = vmatprep.mubr.msk.bf16.mxu1 %vm3463_vm0, %v4833_v0 }
  0x7d   :  { %2977 = vmatmul.mubr.msk.bf16.gmra.mrb[52].mxu0 %vm235_vm3, %v3388_v36  ;;  %3087 = vmatmul.mubr.msk.bf16.gmra.mrb[52].mxu1 %vm235_vm3, %v3389_v37 }
  0x7e   :  { %2980 = vmatprep.mubr.msk.bf16.mxu0 %vm3463_vm0, %v4833_v0  ;;  %3090 = vmatprep.mubr.msk.bf16.mxu1 %vm3463_vm0, %v4833_v0 }
  0x85   :  { %2981 = vmatmul.mubr.msk.bf16.gmra.mrb[56].mxu0 %vm235_vm3, %v3390_v38  ;;  %3091 = vmatmul.mubr.msk.bf16.gmra.mrb[56].mxu1 %vm235_vm3, %v3391_v39 }
  0x86   :  { %2984 = vmatprep.mubr.msk.bf16.mxu0 %vm3463_vm0, %v4833_v0  ;;  %3094 = vmatprep.mubr.msk.bf16.mxu1 %vm3463_vm0, %v4833_v0 }
  0x8d   :  { %2985 = vmatmul.mubr.msk.bf16.gmra.mrb[60].mxu0 %vm235_vm3, %v3392_v40  ;;  %3095 = vmatmul.mubr.msk.bf16.gmra.mrb[60].mxu1 %vm235_vm3, %v3393_v41 }
  0x8e   :  { %2988 = vmatprep.mubr.msk.bf16.mxu0 %vm3463_vm0, %v4833_v0  ;;  %3098 = vmatprep.mubr.msk.bf16.mxu1 %vm3463_vm0, %v4833_v0 }
  0x95   :  { %2989 = vmatmul.mubr.msk.bf16.gmra.mrb[64].mxu0 %vm235_vm3, %v3394_v42  ;;  %3099 = vmatmul.mubr.msk.bf16.gmra.mrb[64].mxu1 %vm235_vm3, %v3395_v43  ;;  %v3422_v42 = vld [vmem:[%s4829_s2 + $0x28] sm:$0xff]  }
  0x96   :  { %2992 = vmatprep.mubr.msk.bf16.mxu0 %vm3463_vm0, %v4833_v0  ;;  %3102 = vmatprep.mubr.msk.bf16.mxu1 %vm3463_vm0, %v4833_v0  ;;  %v3423_v43 = vld [vmem:[%s4830_s3 + $0x28] sm:$0xff]  }
  0x9d   :  { %2993 = vmatmul.mubr.msk.bf16.gmra.mrb[68].mxu0 %vm235_vm3, %v3396_v44  ;;  %3103 = vmatmul.mubr.msk.bf16.gmra.mrb[68].mxu1 %vm235_vm3, %v3397_v45 }
  0x9e   :  { %2996 = vmatprep.mubr.msk.bf16.mxu0 %vm3463_vm0, %v4833_v0  ;;  %3106 = vmatprep.mubr.msk.bf16.mxu1 %vm3463_vm0, %v4833_v0 }
  0xa5   :  { %2997 = vmatmul.mubr.msk.bf16.gmra.mrb[72].mxu0 %vm235_vm3, %v3398_v46  ;;  %3107 = vmatmul.mubr.msk.bf16.gmra.mrb[72].mxu1 %vm235_vm3, %v3399_v47 }
  0xa6   :  { %3000 = vmatprep.mubr.msk.bf16.mxu0 %vm3463_vm0, %v4833_v0  ;;  %3110 = vmatprep.mubr.msk.bf16.mxu1 %vm3463_vm0, %v4833_v0 }
  0xad   :  { %3001 = vmatmul.mubr.msk.bf16.gmra.mrb[76].mxu0 %vm235_vm3, %v3400_v48  ;;  %3111 = vmatmul.mubr.msk.bf16.gmra.mrb[76].mxu1 %vm235_vm3, %v3401_v49 }
  0xae   :  { %3004 = vmatprep.mubr.msk.bf16.mxu0 %vm3463_vm0, %v4833_v0  ;;  %3114 = vmatprep.mubr.msk.bf16.mxu1 %vm3463_vm0, %v4833_v0 }
  0xb5   :  { %3005 = vmatmul.mubr.msk.bf16.gmra.mrb[80].mxu0 %vm235_vm3, %v3402_v50  ;;  %3115 = vmatmul.mubr.msk.bf16.gmra.mrb[80].mxu1 %vm235_vm3, %v3403_v51 }
  0xb6   :  { %3008 = vmatprep.mubr.msk.bf16.mxu0 %vm3463_vm0, %v4833_v0  ;;  %3118 = vmatprep.mubr.msk.bf16.mxu1 %vm3463_vm0, %v4833_v0 }
  0xbd   :  { %3009 = vmatmul.mubr.msk.bf16.gmra.mrb[84].mxu0 %vm235_vm3, %v3404_v52  ;;  %3119 = vmatmul.mubr.msk.bf16.gmra.mrb[84].mxu1 %vm235_vm3, %v3405_v53 }
  0xbe   :  { %3012 = vmatprep.mubr.msk.bf16.mxu0 %vm3463_vm0, %v4833_v0  ;;  %3122 = vmatprep.mubr.msk.bf16.mxu1 %vm3463_vm0, %v4833_v0 }
  0xc5   :  { %3013 = vmatmul.mubr.msk.bf16.gmra.mrb[88].mxu0 %vm235_vm3, %v3406_v54  ;;  %3123 = vmatmul.mubr.msk.bf16.gmra.mrb[88].mxu1 %vm235_vm3, %v3407_v55  ;;  %v3424_v54 = vld [vmem:[%s4829_s2 + $0x30] sm:$0xff]  }
  0xc6   :  { %3016 = vmatprep.mubr.msk.bf16.mxu0 %vm3463_vm0, %v4833_v0  ;;  %3126 = vmatprep.mubr.msk.bf16.mxu1 %vm3463_vm0, %v4833_v0  ;;  %v3425_v55 = vld [vmem:[%s4830_s3 + $0x30] sm:$0xff]  }
  0xcd   :  { %3017 = vmatmul.mubr.msk.bf16.gmra.mrb[92].mxu0 %vm235_vm3, %v3408_v56  ;;  %3127 = vmatmul.mubr.msk.bf16.gmra.mrb[92].mxu1 %vm235_vm3, %v3409_v57 }
  0xce   :  { %3020 = vmatprep.mubr.msk.bf16.mxu0 %vm3463_vm0, %v4833_v0  ;;  %3130 = vmatprep.mubr.msk.bf16.mxu1 %vm3463_vm0, %v4833_v0 }
  0xd5   :  { %3021 = vmatmul.mubr.msk.bf16.gmra.mrb[96].mxu0 %vm235_vm3, %v3410_v58  ;;  %3131 = vmatmul.mubr.msk.bf16.gmra.mrb[96].mxu1 %vm235_vm3, %v3411_v59 }
  0xd6   :  { %3144 = vmatprep.mubr.msk.bf16.mxu0 %vm3463_vm0, %v4833_v0  ;;  %3254 = vmatprep.mubr.msk.bf16.mxu1 %vm3463_vm0, %v4833_v0 }
  0xdd   :  { %3145 = vmatmul.mubr.msk.bf16.vlgmr.msra.gmra.mrb[100].mxu0 %vm235_vm3, %v3412_v60  ;;  %3255 = vmatmul.mubr.msk.bf16.vlgmr.msra.gmra.mrb[100].mxu1 %vm235_vm3, %v3413_v61 }
  0xde   :  { %3148 = vmatprep.mubr.msk.bf16.mxu0 %vm3463_vm0, %v4833_v0  ;;  %3258 = vmatprep.mubr.msk.bf16.mxu1 %vm3463_vm0, %v4833_v0 }
  0xe5   :  { %3149 = vmatmul.mubr.msk.bf16.gmra.mrb[104].mxu0 %vm235_vm3, %v3414_v62  ;;  %3259 = vmatmul.mubr.msk.bf16.gmra.mrb[104].mxu1 %vm235_vm3, %v3415_v63 }
  0xe6   :  { %3152 = vmatprep.mubr.msk.bf16.mxu0 %vm3463_vm0, %v4833_v0  ;;  %3262 = vmatprep.mubr.msk.bf16.mxu1 %vm3463_vm0, %v4833_v0 }
  0xe8   :  { %v3863_v1 = vpop.f32.mrb[0].mxu0  ;;  %v3865_v2 = vpop.f32.mrb[0].mxu1 }
  0xe9   :  { %v2926_v4 = vpop.f32.mrb[1].mxu0  ;;  %v3036_v5 = vpop.f32.mrb[1].mxu1 }
  0xea   :  { %v3875_v8 = vpop.f32.mrb[2].mxu0  ;;  %v3877_v9 = vpop.f32.mrb[2].mxu1 }
  0xeb   :  { %v2927_v11 = vpop.f32.mrb[3].mxu0  ;;  %v3037_v12 = vpop.f32.mrb[3].mxu1 }
  0xed   :  { %3153 = vmatmul.mubr.msk.bf16.gmra.mrb[108].mxu0 %vm235_vm3, %v3416_v6  ;;  %3263 = vmatmul.mubr.msk.bf16.gmra.mrb[108].mxu1 %vm235_vm3, %v3417_v7  ;;  %v3426_v6 = vld [vmem:[%s4829_s2 + $0x38] sm:$0xff]  }
  0xee   :  { %3156 = vmatprep.mubr.msk.bf16.mxu0 %vm3463_vm0, %v4833_v0  ;;  %3266 = vmatprep.mubr.msk.bf16.mxu1 %vm3463_vm0, %v4833_v0  ;;  %v3427_v7 = vld [vmem:[%s4830_s3 + $0x38] sm:$0xff]  }
  0xf0   :  { %v3887_v13 = vpop.f32.mrb[4].mxu0  ;;  %v3889_v14 = vpop.f32.mrb[4].mxu1 }
  0xf1   :  { %v2930_v16 = vpop.f32.mrb[5].mxu0  ;;  %v3040_v17 = vpop.f32.mrb[5].mxu1 }
  0xf2   :  { %v3899_v20 = vpop.f32.mrb[6].mxu0  ;;  %v3901_v21 = vpop.f32.mrb[6].mxu1 }
  0xf3   :  { %v2931_v23 = vpop.f32.mrb[7].mxu0  ;;  %v3041_v24 = vpop.f32.mrb[7].mxu1 }
  0xf5   :  { %3157 = vmatmul.mubr.msk.bf16.gmra.mrb[112].mxu0 %vm235_vm3, %v3418_v18  ;;  %3267 = vmatmul.mubr.msk.bf16.gmra.mrb[112].mxu1 %vm235_vm3, %v3419_v19 }
  0xf6   :  { %3160 = vmatprep.mubr.msk.bf16.mxu0 %vm3463_vm0, %v4833_v0  ;;  %3270 = vmatprep.mubr.msk.bf16.mxu1 %vm3463_vm0, %v4833_v0 }
  0xf8   :  { %v3911_v25 = vpop.f32.mrb[8].mxu0  ;;  %v3913_v26 = vpop.f32.mrb[8].mxu1 }
  0xf9   :  { %v2934_v28 = vpop.f32.mrb[9].mxu0  ;;  %v3044_v29 = vpop.f32.mrb[9].mxu1 }
  0xfa   :  { %v3923_v32 = vpop.f32.mrb[10].mxu0  ;;  %v3925_v33 = vpop.f32.mrb[10].mxu1 }
  0xfb   :  { %v2935_v35 = vpop.f32.mrb[11].mxu0  ;;  %v3045_v36 = vpop.f32.mrb[11].mxu1 }
  0xfd   :  { %3161 = vmatmul.mubr.msk.bf16.gmra.mrb[116].mxu0 %vm235_vm3, %v3420_v30  ;;  %3271 = vmatmul.mubr.msk.bf16.gmra.mrb[116].mxu1 %vm235_vm3, %v3421_v31  ;;  %v3428_v30 = vld [vmem:[%s4829_s2 + $0x40] sm:$0xff]  }
  0xfe   :  { %3164 = vmatprep.mubr.msk.bf16.mxu0 %vm3463_vm0, %v4833_v0  ;;  %3274 = vmatprep.mubr.msk.bf16.mxu1 %vm3463_vm0, %v4833_v0  ;;  %v3429_v31 = vld [vmem:[%s4830_s3 + $0x40] sm:$0xff]  }
 0x100   :  { %v3935_v37 = vpop.f32.mrb[12].mxu0  ;;  %v3937_v38 = vpop.f32.mrb[12].mxu1 }
 0x101   :  { %v2938_v40 = vpop.f32.mrb[13].mxu0  ;;  %v3048_v41 = vpop.f32.mrb[13].mxu1 }
 0x102   :  { %v3947_v44 = vpop.f32.mrb[14].mxu0  ;;  %v3949_v45 = vpop.f32.mrb[14].mxu1 }
 0x103   :  { %v2939_v47 = vpop.f32.mrb[15].mxu0  ;;  %v3049_v48 = vpop.f32.mrb[15].mxu1 }
 0x105   :  { %3165 = vmatmul.mubr.msk.bf16.gmra.mrb[120].mxu0 %vm235_vm3, %v3422_v42  ;;  %3275 = vmatmul.mubr.msk.bf16.gmra.mrb[120].mxu1 %vm235_vm3, %v3423_v43 }
 0x106   :  { %3168 = vmatprep.mubr.msk.bf16.mxu0 %vm3463_vm0, %v4833_v0  ;;  %3278 = vmatprep.mubr.msk.bf16.mxu1 %vm3463_vm0, %v4833_v0 }
 0x108   :  { %v3959_v49 = vpop.f32.mrb[16].mxu0  ;;  %v3961_v50 = vpop.f32.mrb[16].mxu1 }
 0x109   :  { %v2942_v52 = vpop.f32.mrb[17].mxu0  ;;  %v3052_v53 = vpop.f32.mrb[17].mxu1 }
 0x10a   :  { %v3971_v56 = vpop.f32.mrb[18].mxu0  ;;  %v3973_v57 = vpop.f32.mrb[18].mxu1 }
 0x10b   :  { %v2943_v59 = vpop.f32.mrb[19].mxu0  ;;  %v3053_v60 = vpop.f32.mrb[19].mxu1 }
 0x10d   :  { %3169 = vmatmul.mubr.msk.bf16.gmra.mrb[124].mxu0 %vm235_vm3, %v3424_v54  ;;  %3279 = vmatmul.mubr.msk.bf16.gmra.mrb[124].mxu1 %vm235_vm3, %v3425_v55  ;;  %v3430_v54 = vld [vmem:[%s4829_s2 + $0x48] sm:$0xff]  }
 0x10e   :  { %3172 = vmatprep.mubr.msk.bf16.mxu0 %vm3463_vm0, %v4833_v0  ;;  %3282 = vmatprep.mubr.msk.bf16.mxu1 %vm3463_vm0, %v4833_v0  ;;  %v3431_v55 = vld [vmem:[%s4830_s3 + $0x48] sm:$0xff]  }
 0x110   :  { %v3983_v61 = vpop.f32.mrb[20].mxu0  ;;  %v3985_v62 = vpop.f32.mrb[20].mxu1 }
 0x111   :  { %v2946_v4 = vpop.f32.mrb[21].mxu0  ;;  %v3056_v5 = vpop.f32.mrb[21].mxu1 }
 0x112   :  { %v3995_v11 = vpop.f32.mrb[22].mxu0  ;;  %v3997_v12 = vpop.f32.mrb[22].mxu1 }
 0x113   :  { %v2947_v17 = vpop.f32.mrb[23].mxu0  ;;  %v3057_v18 = vpop.f32.mrb[23].mxu1 }
 0x115   :  { %3173 = vmatmul.mubr.msk.bf16.gmra.mrb[128].mxu0 %vm235_vm3, %v3426_v6  ;;  %3283 = vmatmul.mubr.msk.bf16.gmra.mrb[128].mxu1 %vm235_vm3, %v3427_v7 }
 0x116   :  { %3176 = vmatprep.mubr.msk.bf16.mxu0 %vm3463_vm0, %v4833_v0  ;;  %3286 = vmatprep.mubr.msk.bf16.mxu1 %vm3463_vm0, %v4833_v0 }
 0x118   :  { %v4007_v19 = vpop.f32.mrb[24].mxu0  ;;  %v4009_v23 = vpop.f32.mrb[24].mxu1 }
 0x119   :  { %v2950_v28 = vpop.f32.mrb[25].mxu0  ;;  %v3060_v29 = vpop.f32.mrb[25].mxu1 }
 0x11a   :  { %v4019_v35 = vpop.f32.mrb[26].mxu0  ;;  %v4021_v36 = vpop.f32.mrb[26].mxu1 }
 0x11b   :  { %v2951_v41 = vpop.f32.mrb[27].mxu0  ;;  %v3061_v42 = vpop.f32.mrb[27].mxu1 }
 0x11d   :  { %3177 = vmatmul.mubr.msk.bf16.gmra.mrb[132].mxu0 %vm235_vm3, %v3428_v30  ;;  %3287 = vmatmul.mubr.msk.bf16.gmra.mrb[132].mxu1 %vm235_vm3, %v3429_v31  ;;  %v3432_v30 = vld [vmem:[%s4829_s2 + $0x50] sm:$0xff]  }
 0x11e   :  { %3180 = vmatprep.mubr.msk.bf16.mxu0 %vm3463_vm0, %v4833_v0  ;;  %3290 = vmatprep.mubr.msk.bf16.mxu1 %vm3463_vm0, %v4833_v0  ;;  %v3433_v31 = vld [vmem:[%s4830_s3 + $0x50] sm:$0xff]  }
 0x120   :  { %v4031_v43 = vpop.f32.mrb[28].mxu0  ;;  %v4033_v47 = vpop.f32.mrb[28].mxu1 }
 0x121   :  { %v2954_v52 = vpop.f32.mrb[29].mxu0  ;;  %v3064_v53 = vpop.f32.mrb[29].mxu1 }
 0x122   :  { %v4043_v59 = vpop.f32.mrb[30].mxu0  ;;  %v4045_v60 = vpop.f32.mrb[30].mxu1 }
 0x123   :  { %v2955_v5 = vpop.f32.mrb[31].mxu0  ;;  %v3065_v6 = vpop.f32.mrb[31].mxu1 }
 0x125   :  { %3181 = vmatmul.mubr.msk.bf16.gmra.mrb[136].mxu0 %vm235_vm3, %v3430_v54  ;;  %3291 = vmatmul.mubr.msk.bf16.gmra.mrb[136].mxu1 %vm235_vm3, %v3431_v55 }
 0x126   :  { %3184 = vmatprep.mubr.msk.bf16.mxu0 %vm3463_vm0, %v4833_v0  ;;  %3294 = vmatprep.mubr.msk.bf16.mxu1 %vm3463_vm0, %v4833_v0 }
 0x128   :  { %v4055_v7 = vpop.f32.mrb[32].mxu0  ;;  %v4057_v17 = vpop.f32.mrb[32].mxu1 }
 0x129   :  { %v2958_v28 = vpop.f32.mrb[33].mxu0  ;;  %v3068_v29 = vpop.f32.mrb[33].mxu1 }
 0x12a   :  { %v4067_v41 = vpop.f32.mrb[34].mxu0  ;;  %v4069_v42 = vpop.f32.mrb[34].mxu1 }
 0x12b   :  { %v2959_v53 = vpop.f32.mrb[35].mxu0  ;;  %v3069_v54 = vpop.f32.mrb[35].mxu1 }
 0x12d   :  { %3185 = vmatmul.mubr.msk.bf16.gmra.mrb[140].mxu0 %vm235_vm3, %v3432_v30  ;;  %3295 = vmatmul.mubr.msk.bf16.gmra.mrb[140].mxu1 %vm235_vm3, %v3433_v31  ;;  %v3434_v30 = vld [vmem:[%s4829_s2 + $0x58] sm:$0xff]  }
 0x12e   :  { %3188 = vmatprep.mubr.msk.bf16.mxu0 %vm3463_vm0, %v4833_v0  ;;  %3298 = vmatprep.mubr.msk.bf16.mxu1 %vm3463_vm0, %v4833_v0  ;;  %v3435_v31 = vld [vmem:[%s4830_s3 + $0x58] sm:$0xff]  }
 0x130   :  { %v4079_v55 = vpop.f32.mrb[36].mxu0  ;;  %v4081_v5 = vpop.f32.mrb[36].mxu1 }
 0x131   :  { %v2962_v28 = vpop.f32.mrb[37].mxu0  ;;  %v3072_v29 = vpop.f32.mrb[37].mxu1 }
 0x132   :  { %v4091_v53 = vpop.f32.mrb[38].mxu0  ;;  %v4093_v54 = vpop.f32.mrb[38].mxu1 }
 0x133   :  { %v2963_v18 = vpop.f32.mrb[39].mxu0  ;;  %v3073_v4 = vpop.f32.mrb[39].mxu1 }
 0x134   :  { %v3436_v4 = vld [vmem:[%s4829_s2 + $0x60] sm:$0xff]  }
 0x135   :  { %3189 = vmatmul.mubr.msk.bf16.gmra.mrb[144].mxu0 %vm235_vm3, %v3434_v30  ;;  %3299 = vmatmul.mubr.msk.bf16.gmra.mrb[144].mxu1 %vm235_vm3, %v3435_v31  ;;  %v3437_v30 = vld [vmem:[%s4830_s3 + $0x60] sm:$0xff]  }
 0x136   :  { %3192 = vmatprep.mubr.msk.bf16.mxu0 %vm3463_vm0, %v4833_v0  ;;  %3302 = vmatprep.mubr.msk.bf16.mxu1 %vm3463_vm0, %v4833_v0 }
 0x138   :  { %v4103_v28 = vpop.f32.mrb[40].mxu0  ;;  %v4105_v29 = vpop.f32.mrb[40].mxu1 }
 0x139   :  { %v2966_v52 = vpop.f32.mrb[41].mxu0  ;;  %v3076_v18 = vpop.f32.mrb[41].mxu1 }
 0x13a   :  { %v4115_v31 = vpop.f32.mrb[42].mxu0  ;;  %v4117_v48 = vpop.f32.mrb[42].mxu1 }
 0x13b   :  { %v2967_v24 = vpop.f32.mrb[43].mxu0  ;;  %v3077_v16 = vpop.f32.mrb[43].mxu1 }
 0x13c   :  { %v3438_v16 = vld [vmem:[%s4829_s2 + $0x68] sm:$0xff]  }
 0x13d   :  { %3193 = vmatmul.mubr.msk.bf16.gmra.mrb[148].mxu0 %vm235_vm3, %v3436_v4  ;;  %3303 = vmatmul.mubr.msk.bf16.gmra.mrb[148].mxu1 %vm235_vm3, %v3437_v30  ;;  %v3439_v4 = vld [vmem:[%s4830_s3 + $0x68] sm:$0xff]  }
 0x13e   :  { %3196 = vmatprep.mubr.msk.bf16.mxu0 %vm3463_vm0, %v4833_v0  ;;  %3306 = vmatprep.mubr.msk.bf16.mxu1 %vm3463_vm0, %v4833_v0 }
 0x140   :  { %v4127_v52 = vpop.f32.mrb[44].mxu0  ;;  %v4129_v18 = vpop.f32.mrb[44].mxu1 }
 0x141   :  { %v2970_v40 = vpop.f32.mrb[45].mxu0  ;;  %v3080_v24 = vpop.f32.mrb[45].mxu1 }
 0x142   :  { %v4139_v30 = vpop.f32.mrb[46].mxu0  ;;  %v4141_v63 = vpop.f32.mrb[46].mxu1 }
 0x143   :  { %4886 = vst [vmem:[#allocation2_spill] sm:$0xff] %v4141_v63  ;;  %v2971_v51 = vpop.f32.mrb[47].mxu0  ;;  %v3081_v46 = vpop.f32.mrb[47].mxu1 }
 0x144   :  { %v3440_v46 = vld [vmem:[%s4829_s2 + $0x70] sm:$0xff]  }
 0x145   :  { %3197 = vmatmul.mubr.msk.bf16.gmra.mrb[152].mxu0 %vm235_vm3, %v3438_v16  ;;  %3307 = vmatmul.mubr.msk.bf16.gmra.mrb[152].mxu1 %vm235_vm3, %v3439_v4  ;;  %v3441_v16 = vld [vmem:[%s4830_s3 + $0x70] sm:$0xff]  }
 0x146   :  { %3200 = vmatprep.mubr.msk.bf16.mxu0 %vm3463_vm0, %v4833_v0  ;;  %3310 = vmatprep.mubr.msk.bf16.mxu1 %vm3463_vm0, %v4833_v0 }
 0x148   :  { %v4151_v40 = vpop.f32.mrb[48].mxu0  ;;  %v4153_v24 = vpop.f32.mrb[48].mxu1 }
 0x149   :  { %4887 = vst [vmem:[#allocation3_spill] sm:$0xff] %v4151_v40  ;;  %4888 = vst [vmem:[#allocation4_spill] sm:$0xff] %v4153_v24  ;;  %v2974_v58 = vpop.f32.mrb[49].mxu0  ;;  %v3084_v51 = vpop.f32.mrb[49].mxu1 }
 0x14a   :  { %v4163_v4 = vpop.f32.mrb[50].mxu0  ;;  %v4165_v39 = vpop.f32.mrb[50].mxu1 }
 0x14b   :  { %4889 = vst [vmem:[#allocation5_spill] sm:$0xff] %v4163_v4  ;;  %4890 = vst [vmem:[#allocation6_spill] sm:$0xff] %v4165_v39  ;;  %v2975_v27 = vpop.f32.mrb[51].mxu0  ;;  %v3085_v22 = vpop.f32.mrb[51].mxu1 }
 0x14c   :  { %v3442_v22 = vld [vmem:[%s4829_s2 + $0x78] sm:$0xff]  }
 0x14d   :  { %3201 = vmatmul.mubr.msk.bf16.gmra.mrb[156].mxu0 %vm235_vm3, %v3440_v46  ;;  %3311 = vmatmul.mubr.msk.bf16.gmra.mrb[156].mxu1 %vm235_vm3, %v3441_v16  ;;  %v3443_v46 = vld [vmem:[%s4830_s3 + $0x78] sm:$0xff]  }
 0x14e   :  { %3204 = vmatprep.mubr.msk.bf16.mxu0 %vm3463_vm0, %v4833_v0  ;;  %3314 = vmatprep.mubr.msk.bf16.mxu1 %vm3463_vm0, %v4833_v0 }
 0x150   :  { %v4175_v58 = vpop.f32.mrb[52].mxu0  ;;  %v4177_v51 = vpop.f32.mrb[52].mxu1 }
 0x151   :  { %4891 = vst [vmem:[#allocation7_spill] sm:$0xff] %v4175_v58  ;;  %4892 = vst [vmem:[#allocation8_spill] sm:$0xff] %v4177_v51  ;;  %v2978_v34 = vpop.f32.mrb[53].mxu0  ;;  %v3088_v27 = vpop.f32.mrb[53].mxu1 }
 0x152   :  { %v4187_v16 = vpop.f32.mrb[54].mxu0  ;;  %v4189_v15 = vpop.f32.mrb[54].mxu1  ;;  %v4895_v34 = vmov 0.0  }
 0x153   :  { %4893 = vst [vmem:[#allocation9_spill] sm:$0xff] %v4187_v16  ;;  %4894 = vst [vmem:[#allocation10_spill] sm:$0xff] %v4189_v15  ;;  %v2979_v3 = vpop.f32.mrb[55].mxu0  ;;  %v3089_v0 = vpop.f32.mrb[55].mxu1 }
 0x154   :  { %v3444_v0 = vld [vmem:[%s4829_s2 + $0x80] sm:$0xff]  }
 0x155   :  { %3205 = vmatmul.mubr.msk.bf16.gmra.mrb[160].mxu0 %vm235_vm3, %v3442_v22  ;;  %3315 = vmatmul.mubr.msk.bf16.gmra.mrb[160].mxu1 %vm235_vm3, %v3443_v46  ;;  %v3445_v22 = vld [vmem:[%s4830_s3 + $0x80] sm:$0xff]  }
 0x156   :  { %3208 = vmatprep.mubr.msk.bf16.mxu0 %vm3463_vm0, %v4895_v34  ;;  %3318 = vmatprep.mubr.msk.bf16.mxu1 %vm3463_vm0, %v4895_v34 }
 0x158   :  { %v4199_v27 = vpop.f32.mrb[56].mxu0  ;;  %v4201_v6 = vpop.f32.mrb[56].mxu1 }
 0x159   :  { %4896 = vst [vmem:[#allocation11_spill] sm:$0xff] %v4199_v27  ;;  %4897 = vst [vmem:[#allocation12_spill] sm:$0xff] %v4201_v6  ;;  %v2982_v10 = vpop.f32.mrb[57].mxu0  ;;  %v3092_v3 = vpop.f32.mrb[57].mxu1 }
 0x15a   :  { %v4211_v46 = vpop.f32.mrb[58].mxu0  ;;  %v4213_v15 = vpop.f32.mrb[58].mxu1 }
 0x15b   :  { %4898 = vst [vmem:[#allocation13_spill] sm:$0xff] %v4211_v46  ;;  %4899 = vst [vmem:[#allocation14_spill] sm:$0xff] %v4213_v15  ;;  %v2983_v58 = vpop.f32.mrb[59].mxu0  ;;  %v3093_v39 = vpop.f32.mrb[59].mxu1 }
 0x15c   :  { %v3446_v39 = vld [vmem:[%s4829_s2 + $0x88] sm:$0xff]  }
 0x15d   :  { %3209 = vmatmul.mubr.msk.bf16.gmra.mrb[164].mxu0 %vm235_vm3, %v3444_v0  ;;  %3319 = vmatmul.mubr.msk.bf16.gmra.mrb[164].mxu1 %vm235_vm3, %v3445_v22  ;;  %v3447_v0 = vld [vmem:[%s4830_s3 + $0x88] sm:$0xff]  }
 0x15e   :  { %3212 = vmatprep.mubr.msk.bf16.mxu0 %vm3463_vm0, %v4895_v34  ;;  %3322 = vmatprep.mubr.msk.bf16.mxu1 %vm3463_vm0, %v4895_v34 }
 0x160   :  { %v4223_v10 = vpop.f32.mrb[60].mxu0  ;;  %v4225_v3 = vpop.f32.mrb[60].mxu1 }
 0x161   :  { %4900 = vst [vmem:[#allocation15_spill] sm:$0xff] %v4223_v10  ;;  %4901 = vst [vmem:[#allocation16_spill] sm:$0xff] %v4225_v3  ;;  %v2986_v16 = vpop.f32.mrb[61].mxu0  ;;  %v3096_v58 = vpop.f32.mrb[61].mxu1 }
 0x162   :  { %v4235_v22 = vpop.f32.mrb[62].mxu0  ;;  %v4237_v15 = vpop.f32.mrb[62].mxu1 }
 0x163   :  { %4902 = vst [vmem:[#allocation17_spill] sm:$0xff] %v4235_v22  ;;  %4903 = vst [vmem:[#allocation18_spill] sm:$0xff] %v4237_v15  ;;  %v2987_v6 = vpop.f32.mrb[63].mxu0  ;;  %v3097_v27 = vpop.f32.mrb[63].mxu1 }
 0x164   :  { %v3448_v27 = vld [vmem:[%s4829_s2 + $0x90] sm:$0xff]  }
 0x165   :  { %3213 = vmatmul.mubr.msk.bf16.gmra.mrb[168].mxu0 %vm235_vm3, %v3446_v39  ;;  %3323 = vmatmul.mubr.msk.bf16.gmra.mrb[168].mxu1 %vm235_vm3, %v3447_v0  ;;  %v3449_v39 = vld [vmem:[%s4830_s3 + $0x90] sm:$0xff]  }
 0x166   :  { %3216 = vmatprep.mubr.msk.bf16.mxu0 %vm3463_vm0, %v4895_v34  ;;  %3326 = vmatprep.mubr.msk.bf16.mxu1 %vm3463_vm0, %v4895_v34 }
 0x168   :  { %v4247_v16 = vpop.f32.mrb[64].mxu0  ;;  %v4249_v58 = vpop.f32.mrb[64].mxu1 }
 0x169   :  { %4904 = vst [vmem:[#allocation19_spill] sm:$0xff] %v4247_v16  ;;  %4905 = vst [vmem:[#allocation20_spill] sm:$0xff] %v4249_v58  ;;  %v2990_v46 = vpop.f32.mrb[65].mxu0  ;;  %v3100_v6 = vpop.f32.mrb[65].mxu1 }
 0x16a   :  { %v4259_v0 = vpop.f32.mrb[66].mxu0  ;;  %v4261_v15 = vpop.f32.mrb[66].mxu1 }
 0x16b   :  { %4906 = vst [vmem:[#allocation21_spill] sm:$0xff] %v4259_v0  ;;  %4907 = vst [vmem:[#allocation22_spill] sm:$0xff] %v4261_v15  ;;  %v2991_v3 = vpop.f32.mrb[67].mxu0  ;;  %v3101_v10 = vpop.f32.mrb[67].mxu1 }
 0x16c   :  { %v3450_v10 = vld [vmem:[%s4829_s2 + $0x98] sm:$0xff]  }
 0x16d   :  { %3217 = vmatmul.mubr.msk.bf16.gmra.mrb[172].mxu0 %vm235_vm3, %v3448_v27  ;;  %3327 = vmatmul.mubr.msk.bf16.gmra.mrb[172].mxu1 %vm235_vm3, %v3449_v39  ;;  %v3451_v27 = vld [vmem:[%s4830_s3 + $0x98] sm:$0xff]  }
 0x16e   :  { %3220 = vmatprep.mubr.msk.bf16.mxu0 %vm3463_vm0, %v4895_v34  ;;  %3330 = vmatprep.mubr.msk.bf16.mxu1 %vm3463_vm0, %v4895_v34 }
 0x170   :  { %v4271_v46 = vpop.f32.mrb[68].mxu0  ;;  %v4273_v6 = vpop.f32.mrb[68].mxu1 }
 0x171   :  { %4908 = vst [vmem:[#allocation23_spill] sm:$0xff] %v4271_v46  ;;  %4909 = vst [vmem:[#allocation24_spill] sm:$0xff] %v4273_v6  ;;  %v2994_v22 = vpop.f32.mrb[69].mxu0  ;;  %v3104_v3 = vpop.f32.mrb[69].mxu1 }
 0x172   :  { %v4283_v39 = vpop.f32.mrb[70].mxu0  ;;  %v4285_v15 = vpop.f32.mrb[70].mxu1 }
 0x173   :  { %4910 = vst [vmem:[#allocation25_spill] sm:$0xff] %v4283_v39  ;;  %4911 = vst [vmem:[#allocation26_spill] sm:$0xff] %v4285_v15  ;;  %v2995_v58 = vpop.f32.mrb[71].mxu0  ;;  %v3105_v16 = vpop.f32.mrb[71].mxu1 }
 0x174   :  { %v3452_v16 = vld [vmem:[%s4829_s2 + $0xa0] sm:$0xff]  }
 0x175   :  { %3221 = vmatmul.mubr.msk.bf16.gmra.mrb[176].mxu0 %vm235_vm3, %v3450_v10  ;;  %3331 = vmatmul.mubr.msk.bf16.gmra.mrb[176].mxu1 %vm235_vm3, %v3451_v27  ;;  %v3453_v10 = vld [vmem:[%s4830_s3 + $0xa0] sm:$0xff]  }
 0x176   :  { %3224 = vmatprep.mubr.msk.bf16.mxu0 %vm3463_vm0, %v4895_v34  ;;  %3334 = vmatprep.mubr.msk.bf16.mxu1 %vm3463_vm0, %v4895_v34 }
 0x178   :  { %v4295_v22 = vpop.f32.mrb[72].mxu0  ;;  %v4297_v3 = vpop.f32.mrb[72].mxu1 }
 0x179   :  { %4912 = vst [vmem:[#allocation27_spill] sm:$0xff] %v4295_v22  ;;  %4913 = vst [vmem:[#allocation28_spill] sm:$0xff] %v4297_v3  ;;  %v2998_v0 = vpop.f32.mrb[73].mxu0  ;;  %v3108_v58 = vpop.f32.mrb[73].mxu1 }
 0x17a   :  { %v4307_v27 = vpop.f32.mrb[74].mxu0  ;;  %v4309_v15 = vpop.f32.mrb[74].mxu1 }
 0x17b   :  { %4914 = vst [vmem:[#allocation29_spill] sm:$0xff] %v4307_v27  ;;  %4915 = vst [vmem:[#allocation30_spill] sm:$0xff] %v4309_v15  ;;  %v2999_v6 = vpop.f32.mrb[75].mxu0  ;;  %v3109_v46 = vpop.f32.mrb[75].mxu1 }
 0x17c   :  { %v3454_v46 = vld [vmem:[%s4829_s2 + $0xa8] sm:$0xff]  }
 0x17d   :  { %3225 = vmatmul.mubr.msk.bf16.gmra.mrb[180].mxu0 %vm235_vm3, %v3452_v16  ;;  %3335 = vmatmul.mubr.msk.bf16.gmra.mrb[180].mxu1 %vm235_vm3, %v3453_v10  ;;  %v3455_v16 = vld [vmem:[%s4830_s3 + $0xa8] sm:$0xff]  }
 0x17e   :  { %3228 = vmatprep.mubr.msk.bf16.mxu0 %vm3463_vm0, %v4895_v34  ;;  %3338 = vmatprep.mubr.msk.bf16.mxu1 %vm3463_vm0, %v4895_v34 }
 0x180   :  { %v4319_v0 = vpop.f32.mrb[76].mxu0  ;;  %v4321_v58 = vpop.f32.mrb[76].mxu1 }
 0x181   :  { %4916 = vst [vmem:[#allocation31_spill] sm:$0xff] %v4319_v0  ;;  %4917 = vst [vmem:[#allocation32_spill] sm:$0xff] %v4321_v58  ;;  %v3002_v39 = vpop.f32.mrb[77].mxu0  ;;  %v3112_v6 = vpop.f32.mrb[77].mxu1 }
 0x182   :  { %v4331_v10 = vpop.f32.mrb[78].mxu0  ;;  %v4333_v15 = vpop.f32.mrb[78].mxu1 }
 0x183   :  { %4918 = vst [vmem:[#allocation33_spill] sm:$0xff] %v4331_v10  ;;  %4919 = vst [vmem:[#allocation34_spill] sm:$0xff] %v4333_v15  ;;  %v3003_v3 = vpop.f32.mrb[79].mxu0  ;;  %v3113_v22 = vpop.f32.mrb[79].mxu1 }
 0x184   :  { %v3456_v22 = vld [vmem:[%s4829_s2 + $0xb0] sm:$0xff]  }
 0x185   :  { %3229 = vmatmul.mubr.msk.bf16.gmra.mrb[184].mxu0 %vm235_vm3, %v3454_v46  ;;  %3339 = vmatmul.mubr.msk.bf16.gmra.mrb[184].mxu1 %vm235_vm3, %v3455_v16  ;;  %v3457_v46 = vld [vmem:[%s4830_s3 + $0xb0] sm:$0xff]  }
 0x186   :  { %3232 = vmatprep.mubr.msk.bf16.mxu0 %vm3463_vm0, %v4895_v34  ;;  %3342 = vmatprep.mubr.msk.bf16.mxu1 %vm3463_vm0, %v4895_v34 }
 0x188   :  { %v4343_v39 = vpop.f32.mrb[80].mxu0  ;;  %v4345_v6 = vpop.f32.mrb[80].mxu1 }
 0x189   :  { %4920 = vst [vmem:[#allocation35_spill] sm:$0xff] %v4343_v39  ;;  %4921 = vst [vmem:[#allocation36_spill] sm:$0xff] %v4345_v6  ;;  %v3006_v27 = vpop.f32.mrb[81].mxu0  ;;  %v3116_v3 = vpop.f32.mrb[81].mxu1 }
 0x18a   :  { %v4355_v16 = vpop.f32.mrb[82].mxu0  ;;  %v4357_v15 = vpop.f32.mrb[82].mxu1 }
 0x18b   :  { %4922 = vst [vmem:[#allocation37_spill] sm:$0xff] %v4355_v16  ;;  %4923 = vst [vmem:[#allocation38_spill] sm:$0xff] %v4357_v15  ;;  %v3007_v58 = vpop.f32.mrb[83].mxu0  ;;  %v3117_v0 = vpop.f32.mrb[83].mxu1 }
 0x18c   :  { %v3458_v0 = vld [vmem:[%s4829_s2 + $0xb8] sm:$0xff]  }
 0x18d   :  { %3233 = vmatmul.mubr.msk.bf16.gmra.mrb[188].mxu0 %vm235_vm3, %v3456_v22  ;;  %3343 = vmatmul.mubr.msk.bf16.gmra.mrb[188].mxu1 %vm235_vm3, %v3457_v46  ;;  %v3459_v22 = vld [vmem:[%s4830_s3 + $0xb8] sm:$0xff]  }
 0x18e   :  { %3236 = vmatprep.mubr.msk.bf16.mxu0 %vm3463_vm0, %v4895_v34  ;;  %3346 = vmatprep.mubr.msk.bf16.mxu1 %vm3463_vm0, %v4895_v34 }
 0x190   :  { %v4367_v27 = vpop.f32.mrb[84].mxu0  ;;  %v4369_v3 = vpop.f32.mrb[84].mxu1 }
 0x191   :  { %4924 = vst [vmem:[#allocation39_spill] sm:$0xff] %v4367_v27  ;;  %4925 = vst [vmem:[#allocation40_spill] sm:$0xff] %v4369_v3  ;;  %v3010_v10 = vpop.f32.mrb[85].mxu0  ;;  %v3120_v58 = vpop.f32.mrb[85].mxu1 }
 0x192   :  { %v4379_v46 = vpop.f32.mrb[86].mxu0  ;;  %v4381_v15 = vpop.f32.mrb[86].mxu1 }
 0x193   :  { %4926 = vst [vmem:[#allocation41_spill] sm:$0xff] %v4379_v46  ;;  %4927 = vst [vmem:[#allocation42_spill] sm:$0xff] %v4381_v15  ;;  %v3011_v6 = vpop.f32.mrb[87].mxu0  ;;  %v3121_v39 = vpop.f32.mrb[87].mxu1 }
 0x194   :  { %v3460_v39 = vld [vmem:[%s4829_s2 + $0xc0] ss:$0 sps:$4 sm:$0xff]  }
 0x195   :  { %3237 = vmatmul.mubr.msk.bf16.gmra.mrb[192].mxu0 %vm235_vm3, %v3458_v0  ;;  %3347 = vmatmul.mubr.msk.bf16.gmra.mrb[192].mxu1 %vm235_vm3, %v3459_v22  ;;  %v3461_v0 = vld [vmem:[%s4830_s3 + $0xc0] ss:$0 sps:$4 sm:$0xff]  }
 0x196   :  { %3240 = vmatprep.mubr.msk.bf16.mxu0 %vm3463_vm0, %v4895_v34  ;;  %3350 = vmatprep.mubr.msk.bf16.mxu1 %vm3463_vm0, %v4895_v34 }
 0x198   :  { %v4391_v10 = vpop.f32.mrb[88].mxu0  ;;  %v4393_v58 = vpop.f32.mrb[88].mxu1 }
 0x199   :  { %4928 = vst [vmem:[#allocation43_spill] sm:$0xff] %v4391_v10  ;;  %4929 = vst [vmem:[#allocation44_spill] sm:$0xff] %v4393_v58  ;;  %v3014_v16 = vpop.f32.mrb[89].mxu0  ;;  %v3124_v6 = vpop.f32.mrb[89].mxu1 }
 0x19a   :  { %v4403_v22 = vpop.f32.mrb[90].mxu0  ;;  %v4405_v34 = vpop.f32.mrb[90].mxu1 }
 0x19b   :  { %4930 = vst [vmem:[#allocation45_spill] sm:$0xff] %v4403_v22  ;;  %4931 = vst [vmem:[#allocation46_spill] sm:$0xff] %v4405_v34  ;;  %v3015_v46 = vpop.f32.mrb[91].mxu0  ;;  %v3125_v3 = vpop.f32.mrb[91].mxu1 }
 0x19c   :  { %v4938_v3 = vmax.f32 %v3863_v1, %v3865_v2 }
 0x19d   :  { %3241 = vmatmul.mubr.msk.bf16.gmra.mrb[196].mxu0 %vm235_vm3, %v3460_v39  ;;  %3351 = vmatmul.mubr.msk.bf16.gmra.mrb[196].mxu1 %vm235_vm3, %v3461_v0 }
 0x1a0   :  { %v4411_v16 = vpop.f32.mrb[92].mxu0  ;;  %v4413_v6 = vpop.f32.mrb[92].mxu1 }
 0x1a1   :  { %4932 = vst [vmem:[#allocation47_spill] sm:$0xff] %v4411_v16  ;;  %4933 = vst [vmem:[#allocation48_spill] sm:$0xff] %v4413_v6  ;;  %v3018_v58 = vpop.f32.mrb[93].mxu0  ;;  %v3128_v10 = vpop.f32.mrb[93].mxu1 }
 0x1a2   :  { %v4417_v27 = vpop.f32.mrb[94].mxu0  ;;  %v4419_v4 = vpop.f32.mrb[94].mxu1 }
 0x1a3   :  { %4934 = vst [vmem:[#allocation49_spill] sm:$0xff] %v4417_v27  ;;  %4935 = vst [vmem:[#allocation50_spill] sm:$0xff] %v4419_v4  ;;  %v3019_v46 = vpop.f32.mrb[95].mxu0  ;;  %v3129_v39 = vpop.f32.mrb[95].mxu1  ;;  %v4435_v27 = vld [vmem:[%s4831_s5] ss:$0 sm:$0xff] }
 0x1a8   :  { %v4423_v15 = vpop.f32.mrb[96].mxu0  ;;  %v4425_v0 = vpop.f32.mrb[96].mxu1 }
 0x1a9   :  { %4936 = vst [vmem:[#allocation51_spill] sm:$0xff] %v4423_v15  ;;  %4937 = vst [vmem:[#allocation52_spill] sm:$0xff] %v4425_v0  ;;  %v3022_v22 = vpop.f32.mrb[97].mxu0  ;;  %v3132_v51 = vpop.f32.mrb[97].mxu1 }
 0x1aa   :  { %v547_v58 = vpop.f32.mrb[98].mxu0  ;;  %v1026_v10 = vpop.f32.mrb[98].mxu1 }
 0x1ab   :  { %v3023_v6 = vpop.f32.mrb[99].mxu0  ;;  %v3133_v16 = vpop.f32.mrb[99].mxu1 }
 0x1ac   :  { %v4939_v6 = vmax.f32 %v3875_v8, %v3877_v9 }
 0x1b0   :  { %v1359_v24 = vpop.f32.mrb[100].mxu0  ;;  %v1887_v40 = vpop.f32.mrb[100].mxu1 }
 0x1b1   :  { %v1557_v46 = vmax.f32 %v4938_v3, %v1359_v24  ;;  %v3146_v39 = vpop.f32.mrb[101].mxu0  ;;  %v3256_v4 = vpop.f32.mrb[101].mxu1 }
 0x1b2   :  { %v1362_v34 = vpop.f32.mrb[102].mxu0  ;;  %v1890_v22 = vpop.f32.mrb[102].mxu1 }
 0x1b3   :  { %v2085_v51 = vmax.f32 %v1557_v46, %v1887_v40  ;;  %v1558_v16 = vmax.f32 %v4939_v6, %v1362_v34  ;;  %v3147_v58 = vpop.f32.mrb[103].mxu0  ;;  %v3257_v10 = vpop.f32.mrb[103].mxu1  ;;  %v4940_v40 = vmax.f32 %v3887_v13, %v3889_v14 }
 0x1b5   :  { %v2141_v0 = vadd.f32 %v4435_v27, %v2085_v51  ;;  %v2086_v1 = vmax.f32 %v1558_v16, %v1890_v22  ;;  %v4941_v51 = vmax.f32 %v3899_v20, %v3901_v21  ;;  %v4942_v20 = vmax.f32 %v3911_v25, %v3913_v26 }
 0x1b7   :  { %v2190_v2 = vmax.f32 %v2141_v0, 0.0  ;;  %v2142_v24 = vadd.f32 %v4435_v27, %v2086_v1 }
 0x1b8   :  { %v1367_v4 = vpop.f32.mrb[104].mxu0  ;;  %v1895_v3 = vpop.f32.mrb[104].mxu1 }
 0x1b9   :  { %v2745_v39 = vpack.c.bf16 %v2190_v2, %v2190_v2  ;;  %v2191_v15 = vmax.f32 %v2142_v24, 0.0  ;;  %v1559_v46 = vmax.f32 %v4940_v40, %v1367_v4  ;;  %v3150_v63 = vpop.f32.mrb[105].mxu0  ;;  %v3260_v8 = vpop.f32.mrb[105].mxu1 }
 0x1ba   :  { %v1370_v9 = vpop.f32.mrb[106].mxu0  ;;  %v1898_v34 = vpop.f32.mrb[106].mxu1 }
 0x1bb   :  { %2437 = vst.msk [vmem:[%s4832_s6] sm:$0xf] %vm2436_vm4, %v2745_v39  ;;  %v2746_v0 = vpack.c.bf16 %v2191_v15, %v2191_v15  ;;  %v2087_v22 = vmax.f32 %v1559_v46, %v1895_v3  ;;  %v1560_v6 = vmax.f32 %v4941_v51, %v1370_v9  ;;  %v3151_v16 = vpop.f32.mrb[107].mxu0  ;;  %v3261_v58 = vpop.f32.mrb[107].mxu1  ;;  %v4943_v9 = vmax.f32 %v3923_v32, %v3925_v33 }
 0x1bc   :  { %v4944_v32 = vmax.f32 %v3935_v37, %v3937_v38 }
 0x1bd   :  { %2438 = vst.msk [vmem:[%s4832_s6 + $0x4] sm:$0xf] %vm2436_vm4, %v2746_v0  ;;  %v2143_v13 = vadd.f32 %v4435_v27, %v2087_v22  ;;  %v2088_v14 = vmax.f32 %v1560_v6, %v1898_v34 }
 0x1bf   :  { %v2192_v63 = vmax.f32 %v2143_v13, 0.0  ;;  %v2144_v10 = vadd.f32 %v4435_v27, %v2088_v14 }
 0x1c0   :  { %v1375_v1 = vpop.f32.mrb[108].mxu0  ;;  %v1903_v15 = vpop.f32.mrb[108].mxu1 }
 0x1c1   :  { %v2747_v2 = vpack.c.bf16 %v2192_v63, %v2192_v63  ;;  %v2193_v24 = vmax.f32 %v2144_v10, 0.0  ;;  %v1561_v21 = vmax.f32 %v4942_v20, %v1375_v1  ;;  %v3154_v4 = vpop.f32.mrb[109].mxu0  ;;  %v3264_v3 = vpop.f32.mrb[109].mxu1  ;;  %v4945_v20 = vmax.f32 %v3947_v44, %v3949_v45 }
 0x1c2   :  { %v1378_v39 = vpop.f32.mrb[110].mxu0  ;;  %v1906_v40 = vpop.f32.mrb[110].mxu1  ;;  %v4946_v44 = vmax.f32 %v3959_v49, %v3961_v50 }
 0x1c3   :  { %2439 = vst.msk [vmem:[%s4832_s6 + $0x8] sm:$0xf] %vm2436_vm4, %v2747_v2  ;;  %v2748_v46 = vpack.c.bf16 %v2193_v24, %v2193_v24  ;;  %v2089_v8 = vmax.f32 %v1561_v21, %v1903_v15  ;;  %v1562_v34 = vmax.f32 %v4943_v9, %v1378_v39  ;;  %v3155_v0 = vpop.f32.mrb[111].mxu0  ;;  %v3265_v22 = vpop.f32.mrb[111].mxu1 }
 0x1c5   :  { %2440 = vst.msk [vmem:[%s4832_s6 + $0xc] sm:$0xf] %vm2436_vm4, %v2748_v46  ;;  %v2145_v25 = vadd.f32 %v4435_v27, %v2089_v8  ;;  %v2090_v26 = vmax.f32 %v1562_v34, %v1906_v40 }
 0x1c7   :  { %v2194_v51 = vmax.f32 %v2145_v25, 0.0  ;;  %v2146_v6 = vadd.f32 %v4435_v27, %v2090_v26 }
 0x1c8   :  { %v1383_v16 = vpop.f32.mrb[112].mxu0  ;;  %v1911_v58 = vpop.f32.mrb[112].mxu1 }
 0x1c9   :  { %v2749_v13 = vpack.c.bf16 %v2194_v51, %v2194_v51  ;;  %v2195_v14 = vmax.f32 %v2146_v6, 0.0  ;;  %v1563_v33 = vmax.f32 %v4944_v32, %v1383_v16  ;;  %v3158_v63 = vpop.f32.mrb[113].mxu0  ;;  %v3268_v10 = vpop.f32.mrb[113].mxu1  ;;  %v4947_v16 = vmax.f32 %v3971_v56, %v3973_v57 }
 0x1ca   :  { %v1386_v1 = vpop.f32.mrb[114].mxu0  ;;  %v1914_v15 = vpop.f32.mrb[114].mxu1  ;;  %v4948_v56 = vmax.f32 %v3983_v61, %v3985_v62 }
 0x1cb   :  { %2441 = vst.msk [vmem:[%s4832_s6 + $0x10] sm:$0xf] %vm2436_vm4, %v2749_v13  ;;  %v2750_v2 = vpack.c.bf16 %v2195_v14, %v2195_v14  ;;  %v2091_v24 = vmax.f32 %v1563_v33, %v1911_v58  ;;  %v1564_v21 = vmax.f32 %v4945_v20, %v1386_v1  ;;  %v3159_v4 = vpop.f32.mrb[115].mxu0  ;;  %v3269_v3 = vpop.f32.mrb[115].mxu1 }
 0x1cd   :  { %2442 = vst.msk [vmem:[%s4832_s6 + $0x14] sm:$0xf] %vm2436_vm4, %v2750_v2  ;;  %v2147_v37 = vadd.f32 %v4435_v27, %v2091_v24  ;;  %v2092_v38 = vmax.f32 %v1564_v21, %v1914_v15 }
 0x1cf   :  { %v2196_v39 = vmax.f32 %v2147_v37, 0.0  ;;  %v2148_v40 = vadd.f32 %v4435_v27, %v2092_v38  ;;  %v4949_v37 = vmax.f32 %v3995_v11, %v3997_v12  ;;  %v4950_v11 = vmax.f32 %v4007_v19, %v4009_v23 }
 0x1d0   :  { %v1391_v46 = vpop.f32.mrb[116].mxu0  ;;  %v1919_v8 = vpop.f32.mrb[116].mxu1 }
 0x1d1   :  { %v2751_v9 = vpack.c.bf16 %v2196_v39, %v2196_v39  ;;  %v2197_v34 = vmax.f32 %v2148_v40, 0.0  ;;  %v1565_v45 = vmax.f32 %v4946_v44, %v1391_v46  ;;  %v3162_v0 = vpop.f32.mrb[117].mxu0  ;;  %v3272_v22 = vpop.f32.mrb[117].mxu1 }
 0x1d2   :  { %v1394_v25 = vpop.f32.mrb[118].mxu0  ;;  %v1922_v26 = vpop.f32.mrb[118].mxu1 }
 0x1d3   :  { %2443 = vst.msk [vmem:[%s4832_s6 + $0x18] sm:$0xf] %vm2436_vm4, %v2751_v9  ;;  %v2752_v51 = vpack.c.bf16 %v2197_v34, %v2197_v34  ;;  %v2093_v6 = vmax.f32 %v1565_v45, %v1919_v8  ;;  %v1566_v58 = vmax.f32 %v4947_v16, %v1394_v25  ;;  %v3163_v13 = vpop.f32.mrb[119].mxu0  ;;  %v3273_v14 = vpop.f32.mrb[119].mxu1  ;;  %v4951_v16 = vmax.f32 %v4019_v35, %v4021_v36 }
 0x1d4   :  { %v4952_v35 = vmax.f32 %v4031_v43, %v4033_v47 }
 0x1d5   :  { %2444 = vst.msk [vmem:[%s4832_s6 + $0x1c] sm:$0xf] %vm2436_vm4, %v2752_v51  ;;  %v2149_v49 = vadd.f32 %v4435_v27, %v2093_v6  ;;  %v2094_v50 = vmax.f32 %v1566_v58, %v1922_v26 }
 0x1d7   :  { %v2198_v32 = vmax.f32 %v2149_v49, 0.0  ;;  %v2150_v33 = vadd.f32 %v4435_v27, %v2094_v50 }
 0x1d8   :  { %v1399_v63 = vpop.f32.mrb[120].mxu0  ;;  %v1927_v10 = vpop.f32.mrb[120].mxu1 }
 0x1d9   :  { %v2753_v1 = vpack.c.bf16 %v2198_v32, %v2198_v32  ;;  %v2199_v15 = vmax.f32 %v2150_v33, 0.0  ;;  %v1567_v57 = vmax.f32 %v4948_v56, %v1399_v63  ;;  %v3166_v2 = vpop.f32.mrb[121].mxu0  ;;  %v3276_v24 = vpop.f32.mrb[121].mxu1 }
 0x1da   :  { %v1402_v20 = vpop.f32.mrb[122].mxu0  ;;  %v1930_v21 = vpop.f32.mrb[122].mxu1 }
 0x1db   :  { %2445 = vst.msk [vmem:[%s4832_s6 + $0x20] sm:$0xf] %vm2436_vm4, %v2753_v1  ;;  %v2754_v4 = vpack.c.bf16 %v2199_v15, %v2199_v15  ;;  %v2095_v3 = vmax.f32 %v1567_v57, %v1927_v10  ;;  %v1568_v38 = vmax.f32 %v4949_v37, %v1402_v20  ;;  %v3167_v39 = vpop.f32.mrb[123].mxu0  ;;  %v3277_v40 = vpop.f32.mrb[123].mxu1  ;;  %v4953_v20 = vmax.f32 %v4043_v59, %v4045_v60 }
 0x1dc   :  { %v4954_v59 = vmax.f32 %v4055_v7, %v4057_v17 }
 0x1dd   :  { %2446 = vst.msk [vmem:[%s4832_s6 + $0x24] sm:$0xf] %vm2436_vm4, %v2754_v4  ;;  %v2151_v61 = vadd.f32 %v4435_v27, %v2095_v3  ;;  %v2096_v62 = vmax.f32 %v1568_v38, %v1930_v21 }
 0x1df   :  { %v2200_v46 = vmax.f32 %v2151_v61, 0.0  ;;  %v2152_v8 = vadd.f32 %v4435_v27, %v2096_v62 }
 0x1e0   :  { %v1407_v9 = vpop.f32.mrb[124].mxu0  ;;  %v1935_v34 = vpop.f32.mrb[124].mxu1 }
 0x1e1   :  { %v2755_v44 = vpack.c.bf16 %v2200_v46, %v2200_v46  ;;  %v2201_v45 = vmax.f32 %v2152_v8, 0.0  ;;  %v1569_v12 = vmax.f32 %v4950_v11, %v1407_v9  ;;  %v3170_v0 = vpop.f32.mrb[125].mxu0  ;;  %v3280_v22 = vpop.f32.mrb[125].mxu1  ;;  %v4955_v11 = vmax.f32 %v4067_v41, %v4069_v42 }
 0x1e2   :  { %v1410_v25 = vpop.f32.mrb[126].mxu0  ;;  %v1938_v26 = vpop.f32.mrb[126].mxu1  ;;  %v4956_v41 = vmax.f32 %v4079_v55, %v4081_v5 }
 0x1e3   :  { %2447 = vst.msk [vmem:[%s4832_s6 + $0x28] sm:$0xf] %vm2436_vm4, %v2755_v44  ;;  %v2756_v51 = vpack.c.bf16 %v2201_v45, %v2201_v45  ;;  %v2097_v6 = vmax.f32 %v1569_v12, %v1935_v34  ;;  %v1570_v58 = vmax.f32 %v4951_v16, %v1410_v25  ;;  %v3171_v13 = vpop.f32.mrb[127].mxu0  ;;  %v3281_v14 = vpop.f32.mrb[127].mxu1 }
 0x1e5   :  { %2448 = vst.msk [vmem:[%s4832_s6 + $0x2c] sm:$0xf] %vm2436_vm4, %v2756_v51  ;;  %v2153_v19 = vadd.f32 %v4435_v27, %v2097_v6  ;;  %v2098_v23 = vmax.f32 %v1570_v58, %v1938_v26 }
 0x1e7   :  { %v2202_v49 = vmax.f32 %v2153_v19, 0.0  ;;  %v2154_v50 = vadd.f32 %v4435_v27, %v2098_v23 }
 0x1e8   :  { %v1415_v32 = vpop.f32.mrb[128].mxu0  ;;  %v1943_v33 = vpop.f32.mrb[128].mxu1 }
 0x1e9   :  { %v2757_v63 = vpack.c.bf16 %v2202_v49, %v2202_v49  ;;  %v2203_v10 = vmax.f32 %v2154_v50, 0.0  ;;  %v1571_v36 = vmax.f32 %v4952_v35, %v1415_v32  ;;  %v3174_v1 = vpop.f32.mrb[129].mxu0  ;;  %v3284_v15 = vpop.f32.mrb[129].mxu1  ;;  %v4957_v32 = vmax.f32 %v4091_v53, %v4093_v54 }
 0x1ea   :  { %v1418_v56 = vpop.f32.mrb[130].mxu0  ;;  %v1946_v57 = vpop.f32.mrb[130].mxu1  ;;  %v4958_v53 = vmax.f32 %v4103_v28, %v4105_v29 }
 0x1eb   :  { %2449 = vst.msk [vmem:[%s4832_s6 + $0x30] sm:$0xf] %vm2436_vm4, %v2757_v63  ;;  %v2758_v2 = vpack.c.bf16 %v2203_v10, %v2203_v10  ;;  %v2099_v24 = vmax.f32 %v1571_v36, %v1943_v33  ;;  %v1572_v21 = vmax.f32 %v4953_v20, %v1418_v56  ;;  %v3175_v4 = vpop.f32.mrb[131].mxu0  ;;  %v3285_v3 = vpop.f32.mrb[131].mxu1 }
 0x1ed   :  { %2450 = vst.msk [vmem:[%s4832_s6 + $0x34] sm:$0xf] %vm2436_vm4, %v2758_v2  ;;  %v2155_v43 = vadd.f32 %v4435_v27, %v2099_v24  ;;  %v2100_v47 = vmax.f32 %v1572_v21, %v1946_v57 }
 0x1ef   :  { %v2204_v37 = vmax.f32 %v2155_v43, 0.0  ;;  %v2156_v38 = vadd.f32 %v4435_v27, %v2100_v47  ;;  %v4959_v43 = vmax.f32 %v4115_v31, %v4117_v48  ;;  %v4960_v48 = vmax.f32 %v4127_v52, %v4129_v18 }
 0x1f0   :  { %v1423_v39 = vpop.f32.mrb[132].mxu0  ;;  %v1951_v40 = vpop.f32.mrb[132].mxu1 }
 0x1f1   :  { %v2759_v61 = vpack.c.bf16 %v2204_v37, %v2204_v37  ;;  %v2205_v62 = vmax.f32 %v2156_v38, 0.0  ;;  %v1573_v60 = vmax.f32 %v4954_v59, %v1423_v39  ;;  %v3178_v46 = vpop.f32.mrb[133].mxu0  ;;  %v3288_v8 = vpop.f32.mrb[133].mxu1 }
 0x1f2   :  { %v1426_v9 = vpop.f32.mrb[134].mxu0  ;;  %v1954_v34 = vpop.f32.mrb[134].mxu1 }
 0x1f3   :  { %2451 = vst.msk [vmem:[%s4832_s6 + $0x38] sm:$0xf] %vm2436_vm4, %v2759_v61  ;;  %v2760_v44 = vpack.c.bf16 %v2205_v62, %v2205_v62  ;;  %v2101_v45 = vmax.f32 %v1573_v60, %v1951_v40  ;;  %v1574_v12 = vmax.f32 %v4955_v11, %v1426_v9  ;;  %v3179_v0 = vpop.f32.mrb[135].mxu0  ;;  %v3289_v22 = vpop.f32.mrb[135].mxu1  ;;  %v4961_v11 = vld [vmem:[#allocation2_spill] sm:$0xff] }
 0x1f5   :  { %2452 = vst.msk [vmem:[%s4832_s6 + $0x3c] sm:$0xf] %vm2436_vm4, %v2760_v44  ;;  %v2157_v7 = vadd.f32 %v4435_v27, %v2101_v45  ;;  %v2102_v17 = vmax.f32 %v1574_v12, %v1954_v34  ;;  %v4962_v12 = vmax.f32 %v4139_v30, %v4961_v11  ;;  %v4964_v30 = vld [vmem:[#allocation4_spill] sm:$0xff] }
 0x1f7   :  { %v2206_v25 = vmax.f32 %v2157_v7, 0.0  ;;  %v2158_v26 = vadd.f32 %v4435_v27, %v2102_v17 }
 0x1f8   :  { %v1431_v51 = vpop.f32.mrb[136].mxu0  ;;  %v1959_v6 = vpop.f32.mrb[136].mxu1 }
 0x1f9   :  { %v2761_v16 = vpack.c.bf16 %v2206_v25, %v2206_v25  ;;  %v2207_v58 = vmax.f32 %v2158_v26, 0.0  ;;  %v1575_v42 = vmax.f32 %v4956_v41, %v1431_v51  ;;  %v3182_v13 = vpop.f32.mrb[137].mxu0  ;;  %v3292_v14 = vpop.f32.mrb[137].mxu1 }
 0x1fa   :  { %v1434_v19 = vpop.f32.mrb[138].mxu0  ;;  %v1962_v23 = vpop.f32.mrb[138].mxu1 }
 0x1fb   :  { %2453 = vst.msk [vmem:[%s4832_s6 + $0x40] sm:$0xf] %vm2436_vm4, %v2761_v16  ;;  %v2762_v49 = vpack.c.bf16 %v2207_v58, %v2207_v58  ;;  %v2103_v50 = vmax.f32 %v1575_v42, %v1959_v6  ;;  %v1576_v33 = vmax.f32 %v4957_v32, %v1434_v19  ;;  %v3183_v63 = vpop.f32.mrb[139].mxu0  ;;  %v3293_v10 = vpop.f32.mrb[139].mxu1  ;;  %v4963_v58 = vld [vmem:[#allocation3_spill] sm:$0xff]  ;;  %v4966_v32 = vld [vmem:[#allocation5_spill] sm:$0xff] }
 0x1fc   :  { %v4965_v41 = vmax.f32 %v4963_v58, %v4964_v30 }
 0x1fd   :  { %2454 = vst.msk [vmem:[%s4832_s6 + $0x44] sm:$0xf] %vm2436_vm4, %v2762_v49  ;;  %v2159_v55 = vadd.f32 %v4435_v27, %v2103_v50  ;;  %v2104_v5 = vmax.f32 %v1576_v33, %v1962_v23  ;;  %v4967_v33 = vld [vmem:[#allocation6_spill] sm:$0xff] }
 0x1fe   :  { %v4968_v63 = vmax.f32 %v4966_v32, %v4967_v33  ;;  %v4982_v32 = vld [vmem:[#allocation16_spill] sm:$0xff] }
 0x1ff   :  { %v2208_v35 = vmax.f32 %v2159_v55, 0.0  ;;  %v2160_v36 = vadd.f32 %v4435_v27, %v2104_v5 }
 0x200   :  { %v1439_v1 = vpop.f32.mrb[140].mxu0  ;;  %v1967_v15 = vpop.f32.mrb[140].mxu1 }
 0x201   :  { %v2763_v56 = vpack.c.bf16 %v2208_v35, %v2208_v35  ;;  %v2209_v57 = vmax.f32 %v2160_v36, 0.0  ;;  %v1577_v54 = vmax.f32 %v4958_v53, %v1439_v1  ;;  %v3186_v2 = vpop.f32.mrb[141].mxu0  ;;  %v3296_v24 = vpop.f32.mrb[141].mxu1 }
 0x202   :  { %v1442_v20 = vpop.f32.mrb[142].mxu0  ;;  %v1970_v21 = vpop.f32.mrb[142].mxu1  ;;  %v4969_v2 = vld [vmem:[#allocation7_spill] sm:$0xff]  ;;  %v4970_v24 = vld [vmem:[#allocation8_spill] sm:$0xff] }
 0x203   :  { %2455 = vst.msk [vmem:[%s4832_s6 + $0x48] sm:$0xf] %vm2436_vm4, %v2763_v56  ;;  %v2764_v4 = vpack.c.bf16 %v2209_v57, %v2209_v57  ;;  %v2105_v3 = vmax.f32 %v1577_v54, %v1967_v15  ;;  %v1578_v47 = vmax.f32 %v4959_v43, %v1442_v20  ;;  %v3187_v37 = vpop.f32.mrb[143].mxu0  ;;  %v3297_v38 = vpop.f32.mrb[143].mxu1  ;;  %v4971_v20 = vmax.f32 %v4969_v2, %v4970_v24 }
 0x205   :  { %2456 = vst.msk [vmem:[%s4832_s6 + $0x4c] sm:$0xf] %vm2436_vm4, %v2764_v4  ;;  %v2161_v28 = vadd.f32 %v4435_v27, %v2105_v3  ;;  %v2106_v29 = vmax.f32 %v1578_v47, %v1970_v21 }
 0x207   :  { %v2210_v39 = vmax.f32 %v2161_v28, 0.0  ;;  %v2162_v40 = vadd.f32 %v4435_v27, %v2106_v29  ;;  %v4972_v28 = vld [vmem:[#allocation9_spill] sm:$0xff]  ;;  %v4973_v29 = vld [vmem:[#allocation10_spill] sm:$0xff] }
 0x208   :  { %v1447_v61 = vpop.f32.mrb[144].mxu0  ;;  %v1975_v62 = vpop.f32.mrb[144].mxu1 }
 0x209   :  { %v2765_v59 = vpack.c.bf16 %v2210_v39, %v2210_v39  ;;  %v2211_v60 = vmax.f32 %v2162_v40, 0.0  ;;  %v1579_v31 = vmax.f32 %v4960_v48, %v1447_v61  ;;  %v3190_v46 = vpop.f32.mrb[145].mxu0  ;;  %v3300_v8 = vpop.f32.mrb[145].mxu1  ;;  %v4974_v39 = vmax.f32 %v4972_v28, %v4973_v29  ;;  %v4988_v28 = vld [vmem:[#allocation20_spill] sm:$0xff] }
 0x20a   :  { %v1450_v9 = vpop.f32.mrb[146].mxu0  ;;  %v1978_v34 = vpop.f32.mrb[146].mxu1 }
 0x20b   :  { %2457 = vst.msk [vmem:[%s4832_s6 + $0x50] sm:$0xf] %vm2436_vm4, %v2765_v59  ;;  %v2766_v44 = vpack.c.bf16 %v2211_v60, %v2211_v60  ;;  %v2107_v45 = vmax.f32 %v1579_v31, %v1975_v62  ;;  %v1580_v0 = vmax.f32 %v4962_v12, %v1450_v9  ;;  %v3191_v22 = vpop.f32.mrb[147].mxu0  ;;  %v3301_v7 = vpop.f32.mrb[147].mxu1 }
 0x20d   :  { %2458 = vst.msk [vmem:[%s4832_s6 + $0x54] sm:$0xf] %vm2436_vm4, %v2766_v44  ;;  %v2163_v52 = vadd.f32 %v4435_v27, %v2107_v45  ;;  %v2108_v18 = vmax.f32 %v1580_v0, %v1978_v34  ;;  %v4975_v44 = vld [vmem:[#allocation11_spill] sm:$0xff]  ;;  %v4976_v45 = vld [vmem:[#allocation12_spill] sm:$0xff] }
 0x20e   :  { %v4977_v11 = vmax.f32 %v4975_v44, %v4976_v45 }
 0x20f   :  { %v2212_v17 = vmax.f32 %v2163_v52, 0.0  ;;  %v2164_v25 = vadd.f32 %v4435_v27, %v2108_v18 }
 0x210   :  { %v1455_v26 = vpop.f32.mrb[148].mxu0  ;;  %v1983_v51 = vpop.f32.mrb[148].mxu1 }
 0x211   :  { %v2767_v6 = vpack.c.bf16 %v2212_v17, %v2212_v17  ;;  %v2213_v16 = vmax.f32 %v2164_v25, 0.0  ;;  %v1581_v42 = vmax.f32 %v4965_v41, %v1455_v26  ;;  %v3194_v13 = vpop.f32.mrb[149].mxu0  ;;  %v3304_v14 = vpop.f32.mrb[149].mxu1  ;;  %v4978_v25 = vld [vmem:[#allocation13_spill] sm:$0xff]  ;;  %v4979_v26 = vld [vmem:[#allocation14_spill] sm:$0xff] }
 0x212   :  { %v1458_v19 = vpop.f32.mrb[150].mxu0  ;;  %v1986_v23 = vpop.f32.mrb[150].mxu1 }
 0x213   :  { %2459 = vst.msk [vmem:[%s4832_s6 + $0x58] sm:$0xf] %vm2436_vm4, %v2767_v6  ;;  %v2768_v49 = vpack.c.bf16 %v2213_v16, %v2213_v16  ;;  %v2109_v50 = vmax.f32 %v1581_v42, %v1983_v51  ;;  %v1582_v10 = vmax.f32 %v4968_v63, %v1458_v19  ;;  %v3195_v55 = vpop.f32.mrb[151].mxu0  ;;  %v3305_v5 = vpop.f32.mrb[151].mxu1  ;;  %v4980_v51 = vmax.f32 %v4978_v25, %v4979_v26  ;;  %v4994_v25 = vld [vmem:[#allocation24_spill] sm:$0xff] }
 0x215   :  { %2460 = vst.msk [vmem:[%s4832_s6 + $0x5c] sm:$0xf] %vm2436_vm4, %v2768_v49  ;;  %v2165_v35 = vadd.f32 %v4435_v27, %v2109_v50  ;;  %v2110_v36 = vmax.f32 %v1582_v10, %v1986_v23  ;;  %v4981_v50 = vld [vmem:[#allocation15_spill] sm:$0xff] }
 0x216   :  { %v4983_v33 = vmax.f32 %v4981_v50, %v4982_v32 }
 0x217   :  { %v2214_v1 = vmax.f32 %v2165_v35, 0.0  ;;  %v2166_v15 = vadd.f32 %v4435_v27, %v2110_v36 }
 0x218   :  { %v1463_v56 = vpop.f32.mrb[152].mxu0  ;;  %v1991_v57 = vpop.f32.mrb[152].mxu1 }
 0x219   :  { %v2769_v53 = vpack.c.bf16 %v2214_v1, %v2214_v1  ;;  %v2215_v54 = vmax.f32 %v2166_v15, 0.0  ;;  %v1583_v21 = vmax.f32 %v4971_v20, %v1463_v56  ;;  %v3198_v4 = vpop.f32.mrb[153].mxu0  ;;  %v3308_v3 = vpop.f32.mrb[153].mxu1  ;;  %v4984_v15 = vld [vmem:[#allocation17_spill] sm:$0xff]  ;;  %v4985_v56 = vld [vmem:[#allocation18_spill] sm:$0xff] }
 0x21a   :  { %v1466_v43 = vpop.f32.mrb[154].mxu0  ;;  %v1994_v47 = vpop.f32.mrb[154].mxu1 }
 0x21b   :  { %2461 = vst.msk [vmem:[%s4832_s6 + $0x60] sm:$0xf] %vm2436_vm4, %v2769_v53  ;;  %v2770_v37 = vpack.c.bf16 %v2215_v54, %v2215_v54  ;;  %v2111_v38 = vmax.f32 %v1583_v21, %v1991_v57  ;;  %v1584_v40 = vmax.f32 %v4974_v39, %v1466_v43  ;;  %v3199_v61 = vpop.f32.mrb[155].mxu0  ;;  %v3309_v62 = vpop.f32.mrb[155].mxu1  ;;  %v4986_v57 = vmax.f32 %v4984_v15, %v4985_v56  ;;  %v5000_v15 = vld [vmem:[#allocation28_spill] sm:$0xff] }
 0x21d   :  { %2462 = vst.msk [vmem:[%s4832_s6 + $0x64] sm:$0xf] %vm2436_vm4, %v2770_v37  ;;  %v2167_v59 = vadd.f32 %v4435_v27, %v2111_v38  ;;  %v2112_v60 = vmax.f32 %v1584_v40, %v1994_v47  ;;  %v4987_v38 = vld [vmem:[#allocation19_spill] sm:$0xff] }
 0x21e   :  { %v4989_v29 = vmax.f32 %v4987_v38, %v4988_v28 }
 0x21f   :  { %v2216_v48 = vmax.f32 %v2167_v59, 0.0  ;;  %v2168_v31 = vadd.f32 %v4435_v27, %v2112_v60 }
 0x220   :  { %v1471_v46 = vpop.f32.mrb[156].mxu0  ;;  %v1999_v8 = vpop.f32.mrb[156].mxu1 }
 0x221   :  { %v2771_v9 = vpack.c.bf16 %v2216_v48, %v2216_v48  ;;  %v2217_v34 = vmax.f32 %v2168_v31, 0.0  ;;  %v1585_v12 = vmax.f32 %v4977_v11, %v1471_v46  ;;  %v3202_v0 = vpop.f32.mrb[157].mxu0  ;;  %v3312_v22 = vpop.f32.mrb[157].mxu1  ;;  %v4990_v31 = vld [vmem:[#allocation21_spill] sm:$0xff]  ;;  %v4991_v46 = vld [vmem:[#allocation22_spill] sm:$0xff] }
 0x222   :  { %v1474_v7 = vpop.f32.mrb[158].mxu0  ;;  %v2002_v52 = vpop.f32.mrb[158].mxu1 }
 0x223   :  { %2463 = vst.msk [vmem:[%s4832_s6 + $0x68] sm:$0xf] %vm2436_vm4, %v2771_v9  ;;  %v2772_v18 = vpack.c.bf16 %v2217_v34, %v2217_v34  ;;  %v2113_v17 = vmax.f32 %v1585_v12, %v1999_v8  ;;  %v1586_v6 = vmax.f32 %v4980_v51, %v1474_v7  ;;  %v3203_v16 = vpop.f32.mrb[159].mxu0  ;;  %v3313_v58 = vpop.f32.mrb[159].mxu1  ;;  %v4992_v8 = vmax.f32 %v4990_v31, %v4991_v46  ;;  %v5006_v31 = vld [vmem:[#allocation32_spill] sm:$0xff] }
 0x225   :  { %2464 = vst.msk [vmem:[%s4832_s6 + $0x6c] sm:$0xf] %vm2436_vm4, %v2772_v18  ;;  %v2169_v30 = vadd.f32 %v4435_v27, %v2113_v17  ;;  %v2114_v41 = vmax.f32 %v1586_v6, %v2002_v52  ;;  %v4993_v17 = vld [vmem:[#allocation23_spill] sm:$0xff] }
 0x226   :  { %v4995_v26 = vmax.f32 %v4993_v17, %v4994_v25 }
 0x227   :  { %v2218_v42 = vmax.f32 %v2169_v30, 0.0  ;;  %v2170_v13 = vadd.f32 %v4435_v27, %v2114_v41 }
 0x228   :  { %v1479_v14 = vpop.f32.mrb[160].mxu0  ;;  %v2007_v19 = vpop.f32.mrb[160].mxu1 }
 0x229   :  { %v2773_v23 = vpack.c.bf16 %v2218_v42, %v2218_v42  ;;  %v2219_v49 = vmax.f32 %v2170_v13, 0.0  ;;  %v1587_v63 = vmax.f32 %v4983_v33, %v1479_v14  ;;  %v3206_v10 = vpop.f32.mrb[161].mxu0  ;;  %v3316_v55 = vpop.f32.mrb[161].mxu1  ;;  %v4996_v13 = vld [vmem:[#allocation25_spill] sm:$0xff]  ;;  %v4997_v14 = vld [vmem:[#allocation26_spill] sm:$0xff] }
 0x22a   :  { %v1482_v5 = vpop.f32.mrb[162].mxu0  ;;  %v2010_v35 = vpop.f32.mrb[162].mxu1 }
 0x22b   :  { %2465 = vst.msk [vmem:[%s4832_s6 + $0x70] sm:$0xf] %vm2436_vm4, %v2773_v23  ;;  %v2774_v36 = vpack.c.bf16 %v2219_v49, %v2219_v49  ;;  %v2115_v1 = vmax.f32 %v1587_v63, %v2007_v19  ;;  %v1588_v53 = vmax.f32 %v4986_v57, %v1482_v5  ;;  %v3207_v54 = vpop.f32.mrb[163].mxu0  ;;  %v3317_v2 = vpop.f32.mrb[163].mxu1  ;;  %v4998_v19 = vmax.f32 %v4996_v13, %v4997_v14  ;;  %v5012_v13 = vld [vmem:[#allocation36_spill] sm:$0xff] }
 0x22d   :  { %2466 = vst.msk [vmem:[%s4832_s6 + $0x74] sm:$0xf] %vm2436_vm4, %v2774_v36  ;;  %v2171_v24 = vadd.f32 %v4435_v27, %v2115_v1  ;;  %v2116_v20 = vmax.f32 %v1588_v53, %v2010_v35  ;;  %v4999_v1 = vld [vmem:[#allocation27_spill] sm:$0xff] }
 0x22e   :  { %v5001_v56 = vmax.f32 %v4999_v1, %v5000_v15 }
 0x22f   :  { %v2220_v21 = vmax.f32 %v2171_v24, 0.0  ;;  %v2172_v4 = vadd.f32 %v4435_v27, %v2116_v20 }
 0x230   :  { %v1487_v3 = vpop.f32.mrb[164].mxu0  ;;  %v2015_v43 = vpop.f32.mrb[164].mxu1 }
 0x231   :  { %v2775_v47 = vpack.c.bf16 %v2220_v21, %v2220_v21  ;;  %v2221_v37 = vmax.f32 %v2172_v4, 0.0  ;;  %v1589_v39 = vmax.f32 %v4989_v29, %v1487_v3  ;;  %v3210_v40 = vpop.f32.mrb[165].mxu0  ;;  %v3320_v61 = vpop.f32.mrb[165].mxu1  ;;  %v5002_v4 = vld [vmem:[#allocation29_spill] sm:$0xff]  ;;  %v5003_v3 = vld [vmem:[#allocation30_spill] sm:$0xff] }
 0x232   :  { %v1490_v62 = vpop.f32.mrb[166].mxu0  ;;  %v2018_v59 = vpop.f32.mrb[166].mxu1 }
 0x233   :  { %2467 = vst.msk [vmem:[%s4832_s6 + $0x78] sm:$0xf] %vm2436_vm4, %v2775_v47  ;;  %v2776_v60 = vpack.c.bf16 %v2221_v37, %v2221_v37  ;;  %v2117_v48 = vmax.f32 %v1589_v39, %v2015_v43  ;;  %v1590_v9 = vmax.f32 %v4992_v8, %v1490_v62  ;;  %v3211_v34 = vpop.f32.mrb[167].mxu0  ;;  %v3321_v44 = vpop.f32.mrb[167].mxu1  ;;  %v5004_v43 = vmax.f32 %v5002_v4, %v5003_v3  ;;  %v5018_v4 = vld [vmem:[#allocation40_spill] sm:$0xff] }
 0x235   :  { %2468 = vst.msk [vmem:[%s4832_s6 + $0x7c] sm:$0xf] %vm2436_vm4, %v2776_v60  ;;  %v2173_v45 = vadd.f32 %v4435_v27, %v2117_v48  ;;  %v2118_v11 = vmax.f32 %v1590_v9, %v2018_v59  ;;  %v5005_v48 = vld [vmem:[#allocation31_spill] sm:$0xff] }
 0x236   :  { %v5007_v46 = vmax.f32 %v5005_v48, %v5006_v31 }
 0x237   :  { %v2222_v12 = vmax.f32 %v2173_v45, 0.0  ;;  %v2174_v0 = vadd.f32 %v4435_v27, %v2118_v11 }
 0x238   :  { %v1495_v22 = vpop.f32.mrb[168].mxu0  ;;  %v2023_v7 = vpop.f32.mrb[168].mxu1 }
 0x239   :  { %v2777_v52 = vpack.c.bf16 %v2222_v12, %v2222_v12  ;;  %v2223_v18 = vmax.f32 %v2174_v0, 0.0  ;;  %v1591_v51 = vmax.f32 %v4995_v26, %v1495_v22  ;;  %v3214_v6 = vpop.f32.mrb[169].mxu0  ;;  %v3324_v16 = vpop.f32.mrb[169].mxu1  ;;  %v5008_v0 = vld [vmem:[#allocation33_spill] sm:$0xff]  ;;  %v5009_v22 = vld [vmem:[#allocation34_spill] sm:$0xff] }
 0x23a   :  { %v1498_v58 = vpop.f32.mrb[170].mxu0  ;;  %v2026_v30 = vpop.f32.mrb[170].mxu1 }
 0x23b   :  { %2469 = vst.msk [vmem:[%s4832_s6 + $0x80] sm:$0xf] %vm2436_vm4, %v2777_v52  ;;  %v2778_v41 = vpack.c.bf16 %v2223_v18, %v2223_v18  ;;  %v2119_v42 = vmax.f32 %v1591_v51, %v2023_v7  ;;  %v1592_v23 = vmax.f32 %v4998_v19, %v1498_v58  ;;  %v3215_v49 = vpop.f32.mrb[171].mxu0  ;;  %v3325_v50 = vpop.f32.mrb[171].mxu1  ;;  %v5010_v7 = vmax.f32 %v5008_v0, %v5009_v22  ;;  %v5024_v0 = vld [vmem:[#allocation44_spill] sm:$0xff] }
 0x23d   :  { %2470 = vst.msk [vmem:[%s4832_s6 + $0x84] sm:$0xf] %vm2436_vm4, %v2778_v41  ;;  %v2175_v32 = vadd.f32 %v4435_v27, %v2119_v42  ;;  %v2120_v33 = vmax.f32 %v1592_v23, %v2026_v30  ;;  %v5011_v42 = vld [vmem:[#allocation35_spill] sm:$0xff] }
 0x23e   :  { %v5013_v14 = vmax.f32 %v5011_v42, %v5012_v13 }
 0x23f   :  { %v2224_v63 = vmax.f32 %v2175_v32, 0.0  ;;  %v2176_v10 = vadd.f32 %v4435_v27, %v2120_v33 }
 0x240   :  { %v1503_v55 = vpop.f32.mrb[172].mxu0  ;;  %v2031_v5 = vpop.f32.mrb[172].mxu1 }
 0x241   :  { %v2779_v35 = vpack.c.bf16 %v2224_v63, %v2224_v63  ;;  %v2225_v36 = vmax.f32 %v2176_v10, 0.0  ;;  %v1593_v57 = vmax.f32 %v5001_v56, %v1503_v55  ;;  %v3218_v53 = vpop.f32.mrb[173].mxu0  ;;  %v3328_v54 = vpop.f32.mrb[173].mxu1  ;;  %v5014_v10 = vld [vmem:[#allocation37_spill] sm:$0xff]  ;;  %v5015_v55 = vld [vmem:[#allocation38_spill] sm:$0xff] }
 0x242   :  { %v1506_v2 = vpop.f32.mrb[174].mxu0  ;;  %v2034_v24 = vpop.f32.mrb[174].mxu1 }
 0x243   :  { %2471 = vst.msk [vmem:[%s4832_s6 + $0x88] sm:$0xf] %vm2436_vm4, %v2779_v35  ;;  %v2780_v20 = vpack.c.bf16 %v2225_v36, %v2225_v36  ;;  %v2121_v21 = vmax.f32 %v1593_v57, %v2031_v5  ;;  %v1594_v47 = vmax.f32 %v5004_v43, %v1506_v2  ;;  %v3219_v37 = vpop.f32.mrb[175].mxu0  ;;  %v3329_v38 = vpop.f32.mrb[175].mxu1  ;;  %v5016_v5 = vmax.f32 %v5014_v10, %v5015_v55  ;;  %v5030_v10 = vld [vmem:[#allocation48_spill] sm:$0xff] }
 0x245   :  { %2472 = vst.msk [vmem:[%s4832_s6 + $0x8c] sm:$0xf] %vm2436_vm4, %v2780_v20  ;;  %v2177_v28 = vadd.f32 %v4435_v27, %v2121_v21  ;;  %v2122_v29 = vmax.f32 %v1594_v47, %v2034_v24  ;;  %v5017_v21 = vld [vmem:[#allocation39_spill] sm:$0xff] }
 0x246   :  { %v5019_v3 = vmax.f32 %v5017_v21, %v5018_v4 }
 0x247   :  { %v2226_v39 = vmax.f32 %v2177_v28, 0.0  ;;  %v2178_v40 = vadd.f32 %v4435_v27, %v2122_v29 }
 0x248   :  { %v1511_v61 = vpop.f32.mrb[176].mxu0  ;;  %v2039_v62 = vpop.f32.mrb[176].mxu1 }
 0x249   :  { %v2781_v59 = vpack.c.bf16 %v2226_v39, %v2226_v39  ;;  %v2227_v60 = vmax.f32 %v2178_v40, 0.0  ;;  %v1595_v8 = vmax.f32 %v5007_v46, %v1511_v61  ;;  %v3222_v9 = vpop.f32.mrb[177].mxu0  ;;  %v3332_v34 = vpop.f32.mrb[177].mxu1  ;;  %v5020_v40 = vld [vmem:[#allocation41_spill] sm:$0xff]  ;;  %v5021_v61 = vld [vmem:[#allocation42_spill] sm:$0xff] }
 0x24a   :  { %v1514_v44 = vpop.f32.mrb[178].mxu0  ;;  %v2042_v45 = vpop.f32.mrb[178].mxu1 }
 0x24b   :  { %2473 = vst.msk [vmem:[%s4832_s6 + $0x90] sm:$0xf] %vm2436_vm4, %v2781_v59  ;;  %v2782_v11 = vpack.c.bf16 %v2227_v60, %v2227_v60  ;;  %v2123_v12 = vmax.f32 %v1595_v8, %v2039_v62  ;;  %v1596_v52 = vmax.f32 %v5010_v7, %v1514_v44  ;;  %v3223_v18 = vpop.f32.mrb[179].mxu0  ;;  %v3333_v17 = vpop.f32.mrb[179].mxu1  ;;  %v5022_v62 = vmax.f32 %v5020_v40, %v5021_v61  ;;  %v5036_v40 = vld [vmem:[#allocation52_spill] sm:$0xff] }
 0x24d   :  { %2474 = vst.msk [vmem:[%s4832_s6 + $0x94] sm:$0xf] %vm2436_vm4, %v2782_v11  ;;  %v2179_v25 = vadd.f32 %v4435_v27, %v2123_v12  ;;  %v2124_v26 = vmax.f32 %v1596_v52, %v2042_v45  ;;  %v5023_v12 = vld [vmem:[#allocation43_spill] sm:$0xff] }
 0x24e   :  { %v5025_v22 = vmax.f32 %v5023_v12, %v5024_v0 }
 0x24f   :  { %v2228_v51 = vmax.f32 %v2179_v25, 0.0  ;;  %v2180_v6 = vadd.f32 %v4435_v27, %v2124_v26 }
 0x250   :  { %v1519_v16 = vpop.f32.mrb[180].mxu0  ;;  %v2047_v58 = vpop.f32.mrb[180].mxu1 }
 0x251   :  { %v2783_v30 = vpack.c.bf16 %v2228_v51, %v2228_v51  ;;  %v2229_v41 = vmax.f32 %v2180_v6, 0.0  ;;  %v1597_v19 = vmax.f32 %v5013_v14, %v1519_v16  ;;  %v3226_v23 = vpop.f32.mrb[181].mxu0  ;;  %v3336_v49 = vpop.f32.mrb[181].mxu1  ;;  %v5026_v6 = vld [vmem:[#allocation45_spill] sm:$0xff]  ;;  %v5027_v16 = vld [vmem:[#allocation46_spill] sm:$0xff] }
 0x252   :  { %v1522_v50 = vpop.f32.mrb[182].mxu0  ;;  %v2050_v32 = vpop.f32.mrb[182].mxu1 }
 0x253   :  { %2475 = vst.msk [vmem:[%s4832_s6 + $0x98] sm:$0xf] %vm2436_vm4, %v2783_v30  ;;  %v2784_v33 = vpack.c.bf16 %v2229_v41, %v2229_v41  ;;  %v2125_v63 = vmax.f32 %v1597_v19, %v2047_v58  ;;  %v1598_v35 = vmax.f32 %v5016_v5, %v1522_v50  ;;  %v3227_v36 = vpop.f32.mrb[183].mxu0  ;;  %v3337_v1 = vpop.f32.mrb[183].mxu1  ;;  %v5028_v58 = vmax.f32 %v5026_v6, %v5027_v16 }
 0x255   :  { %2476 = vst.msk [vmem:[%s4832_s6 + $0x9c] sm:$0xf] %vm2436_vm4, %v2784_v33  ;;  %v2181_v15 = vadd.f32 %v4435_v27, %v2125_v63  ;;  %v2126_v56 = vmax.f32 %v1598_v35, %v2050_v32  ;;  %v5029_v63 = vld [vmem:[#allocation47_spill] sm:$0xff] }
 0x256   :  { %v5031_v55 = vmax.f32 %v5029_v63, %v5030_v10 }
 0x257   :  { %v2230_v57 = vmax.f32 %v2181_v15, 0.0  ;;  %v2182_v53 = vadd.f32 %v4435_v27, %v2126_v56 }
 0x258   :  { %v1527_v54 = vpop.f32.mrb[184].mxu0  ;;  %v2055_v2 = vpop.f32.mrb[184].mxu1 }
 0x259   :  { %v2785_v24 = vpack.c.bf16 %v2230_v57, %v2230_v57  ;;  %v2231_v20 = vmax.f32 %v2182_v53, 0.0  ;;  %v1599_v43 = vmax.f32 %v5019_v3, %v1527_v54  ;;  %v3230_v47 = vpop.f32.mrb[185].mxu0  ;;  %v3340_v37 = vpop.f32.mrb[185].mxu1  ;;  %v5032_v53 = vld [vmem:[#allocation49_spill] sm:$0xff]  ;;  %v5033_v54 = vld [vmem:[#allocation50_spill] sm:$0xff] }
 0x25a   :  { %v1530_v38 = vpop.f32.mrb[186].mxu0  ;;  %v2058_v28 = vpop.f32.mrb[186].mxu1 }
 0x25b   :  { %2477 = vst.msk [vmem:[%s4832_s6 + $0xa0] sm:$0xf] %vm2436_vm4, %v2785_v24  ;;  %v2786_v29 = vpack.c.bf16 %v2231_v20, %v2231_v20  ;;  %v2127_v39 = vmax.f32 %v1599_v43, %v2055_v2  ;;  %v1600_v59 = vmax.f32 %v5022_v62, %v1530_v38  ;;  %v3231_v60 = vpop.f32.mrb[187].mxu0  ;;  %v3341_v48 = vpop.f32.mrb[187].mxu1  ;;  %v5034_v2 = vmax.f32 %v5032_v53, %v5033_v54 }
 0x25d   :  { %2478 = vst.msk [vmem:[%s4832_s6 + $0xa4] sm:$0xf] %vm2436_vm4, %v2786_v29  ;;  %v2183_v31 = vadd.f32 %v4435_v27, %v2127_v39  ;;  %v2128_v46 = vmax.f32 %v1600_v59, %v2058_v28  ;;  %v5035_v39 = vld [vmem:[#allocation51_spill] sm:$0xff] }
 0x25e   :  { %v5037_v61 = vmax.f32 %v5035_v39, %v5036_v40 }
 0x25f   :  { %v2232_v8 = vmax.f32 %v2183_v31, 0.0  ;;  %v2184_v9 = vadd.f32 %v4435_v27, %v2128_v46 }
 0x260   :  { %v1535_v34 = vpop.f32.mrb[188].mxu0  ;;  %v2063_v44 = vpop.f32.mrb[188].mxu1 }
 0x261   :  { %v2787_v45 = vpack.c.bf16 %v2232_v8, %v2232_v8  ;;  %v2233_v11 = vmax.f32 %v2184_v9, 0.0  ;;  %v1601_v7 = vmax.f32 %v5025_v22, %v1535_v34  ;;  %v3234_v52 = vpop.f32.mrb[189].mxu0  ;;  %v3344_v18 = vpop.f32.mrb[189].mxu1 }
 0x262   :  { %v1538_v17 = vpop.f32.mrb[190].mxu0  ;;  %v2066_v25 = vpop.f32.mrb[190].mxu1 }
 0x263   :  { %2479 = vst.msk [vmem:[%s4832_s6 + $0xa8] sm:$0xf] %vm2436_vm4, %v2787_v45  ;;  %v2788_v26 = vpack.c.bf16 %v2233_v11, %v2233_v11  ;;  %v2129_v51 = vmax.f32 %v1601_v7, %v2063_v44  ;;  %v1602_v30 = vmax.f32 %v5028_v58, %v1538_v17  ;;  %v3235_v41 = vpop.f32.mrb[191].mxu0  ;;  %v3345_v42 = vpop.f32.mrb[191].mxu1 }
 0x265   :  { %2480 = vst.msk [vmem:[%s4832_s6 + $0xac] sm:$0xf] %vm2436_vm4, %v2788_v26  ;;  %v2185_v13 = vadd.f32 %v4435_v27, %v2129_v51  ;;  %v2130_v14 = vmax.f32 %v1602_v30, %v2066_v25 }
 0x267   :  { %v2234_v19 = vmax.f32 %v2185_v13, 0.0  ;;  %v2186_v23 = vadd.f32 %v4435_v27, %v2130_v14 }
 0x268   :  { %v1543_v49 = vpop.f32.mrb[192].mxu0  ;;  %v2071_v50 = vpop.f32.mrb[192].mxu1 }
 0x269   :  { %v2789_v32 = vpack.c.bf16 %v2234_v19, %v2234_v19  ;;  %v2235_v33 = vmax.f32 %v2186_v23, 0.0  ;;  %v1603_v5 = vmax.f32 %v5031_v55, %v1543_v49  ;;  %v3238_v35 = vpop.f32.mrb[193].mxu0  ;;  %v3348_v36 = vpop.f32.mrb[193].mxu1 }
 0x26a   :  { %v1546_v1 = vpop.f32.mrb[194].mxu0  ;;  %v2074_v15 = vpop.f32.mrb[194].mxu1 }
 0x26b   :  { %2481 = vst.msk [vmem:[%s4832_s6 + $0xb0] sm:$0xf] %vm2436_vm4, %v2789_v32  ;;  %v2790_v56 = vpack.c.bf16 %v2235_v33, %v2235_v33  ;;  %v2131_v57 = vmax.f32 %v1603_v5, %v2071_v50  ;;  %v1604_v24 = vmax.f32 %v5034_v2, %v1546_v1  ;;  %v3239_v20 = vpop.f32.mrb[195].mxu0  ;;  %v3349_v21 = vpop.f32.mrb[195].mxu1 }
 0x26d   :  { %2482 = vst.msk [vmem:[%s4832_s6 + $0xb4] sm:$0xf] %vm2436_vm4, %v2790_v56  ;;  %v2187_v4 = vadd.f32 %v4435_v27, %v2131_v57  ;;  %v2132_v3 = vmax.f32 %v1604_v24, %v2074_v15 }
 0x26f   :  { %v2236_v43 = vmax.f32 %v2187_v4, 0.0  ;;  %v2188_v47 = vadd.f32 %v4435_v27, %v2132_v3 }
 0x270   :  { %v1551_v37 = vpop.f32.mrb[196].mxu0  ;;  %v2079_v38 = vpop.f32.mrb[196].mxu1 }
 0x271   :  { %v2791_v28 = vpack.c.bf16 %v2236_v43, %v2236_v43  ;;  %v2237_v29 = vmax.f32 %v2188_v47, 0.0  ;;  %v1605_v62 = vmax.f32 %v5037_v61, %v1551_v37  ;;  %v3242_v59 = vpop.f32.mrb[197].mxu0  ;;  %v3352_v60 = vpop.f32.mrb[197].mxu1 }
 0x272   :  { %v1554_v48 = vpop.f32.mrb[198].mxu0  ;;  %v2082_v31 = vpop.f32.mrb[198].mxu1 }
 0x273   :  { %2483 = vst.msk [vmem:[%s4832_s6 + $0xb8] sm:$0xf] %vm2436_vm4, %v2791_v28  ;;  %v2792_v46 = vpack.c.bf16 %v2237_v29, %v2237_v29  ;;  %v2133_v8 = vmax.f32 %v1605_v62, %v2079_v38  ;;  %v3243_v9 = vpop.f32.mrb[199].mxu0  ;;  %v3353_v34 = vpop.f32.mrb[199].mxu1 }
 0x275   :  { %2484 = vst.msk [vmem:[%s4832_s6 + $0xbc] sm:$0xf] %vm2436_vm4, %v2792_v46  ;;  %v2189_v44 = vadd.f32 %v4435_v27, %v2133_v8 }
 0x277   :  { %v2238_v45 = vmax.f32 %v2189_v44, 0.0 }
 0x279   :  { %v2793_v11 = vpack.c.bf16 %v2238_v45, %v2238_v45 }
 0x27b   :  { %2485 = vst.msk [vmem:[%s4832_s6 + $0xc0] sm:$0xf] %vm2436_vm4, %v2793_v11 }

// kernel: net_forward.4
= control target key start
LH: loop header
LB: loop body
LE: loop exit
PB: predicated region body
PF: predicated region fallthrough
CT: control target
= control target key end

     0   :  { %vm257_vm0 = vcmask 1045504   ;;  %vm244_vm1 = vcmask 359424   ;;  %vm1087_vm2 = vcmask 125952   ;;  %vm1094_vm3 = vcmask 122880   ;;  %s1962_s4 = inlined_call_operand.vmem [shape: bf16[300,16], index: 4, kind: input, shape index: {}]   ;;  %s1963_s0 = inlined_call_operand.vmem [shape: bf16[50,300], index: 0, kind: input, shape index: {}]   ;;  %s1964_s1 = inlined_call_operand.vmem [shape: bf16[50,300], index: 1, kind: input, shape index: {}]   ;;  %s1965_s2 = inlined_call_operand.vmem [shape: bf16[50,300], index: 2, kind: input, shape index: {}]   ;;  %s1966_s3 = inlined_call_operand.vmem [shape: bf16[50,300], index: 3, kind: input, shape index: {}]   ;;  %s1967_s5 = inlined_call_operand.vmem [shape: f32[1,16], index: 5, kind: input, shape index: {}]   ;;  %s1968_s6 = inlined_call_operand.vmem [shape: bf16[50,16], index: 6, kind: output, shape index: {}]  }
   0x1   :  { %v1563_v0 = vld [vmem:[%s1962_s4 + $0x40] sm:$0xff]   ;;  %v1575_v2 = vld [vmem:[%s1962_s4 + $0x48] sm:$0xff]   ;;  %v1589_v4 = vld [vmem:[%s1962_s4 + $0x50] sm:$0xff]  }
   0x2   :  { %v1568_v1 = vld [vmem:[%s1962_s4] sm:$0xff]   ;;  %1198 = vmatprep.subr.bf16.mxu0 %v1563_v0  ;;  %1245 = vmatprep.subr.bf16.mxu1 %v1563_v0  ;;  %v1582_v3 = vld [vmem:[%s1962_s4 + $0x8] sm:$0xff]   ;;  %v1596_v5 = vld [vmem:[%s1962_s4 + $0x10] sm:$0xff]  }
   0x3   :  { %1199 = vmatpush3.bf16.msra.mxu0 %v1568_v1  ;;  %1246 = vmatpush3.bf16.msra.mxu1 %v1568_v1  ;;  %v1603_v6 = vld [vmem:[%s1962_s4 + $0x58] sm:$0xff]   ;;  %v1617_v8 = vld [vmem:[%s1962_s4 + $0x60] sm:$0xff]   ;;  %v1631_v10 = vld [vmem:[%s1962_s4 + $0x68] sm:$0xff]  }
   0x4   :  { %1200 = vmatprep.subr.bf16.mxu0 %v1575_v2  ;;  %1247 = vmatprep.subr.bf16.mxu1 %v1575_v2  ;;  %v1610_v7 = vld [vmem:[%s1962_s4 + $0x18] sm:$0xff]   ;;  %v1624_v9 = vld [vmem:[%s1962_s4 + $0x20] sm:$0xff]   ;;  %v1644_v13 = vld [vmem:[%s1962_s4 + $0x28] sm:$0xff]  }
   0x5   :  { %v1464_v11 = vld [vmem:[%s1963_s0 + $0x4] ss:$12 sps:$4 sm:$0xff]   ;;  %v1665_v16 = vld [vmem:[%s1962_s4 + $0x78] sm:$0xff]   ;;  %v1462_v19 = vld [vmem:[%s1963_s0] ss:$12 sps:$4 sm:$0xff]  }
   0x6   :  { %v1467_v12 = vld [vmem:[%s1964_s1 + $0x4] ss:$12 sps:$4 sm:$0xff]   ;;  %293 = vmatprep.mubr.bf16.mxu0 %v1464_v11  ;;  %v1672_v17 = vld [vmem:[%s1962_s4 + $0x38] sm:$0xff]   ;;  %v1465_v20 = vld [vmem:[%s1964_s1] ss:$12 sps:$4 sm:$0xff]  }
   0x7   :  { %1201 = vmatpush3.bf16.msra.mxu0 %v1582_v3  ;;  %1248 = vmatpush3.bf16.msra.mxu1 %v1582_v3  ;;  %v1651_v14 = vld [vmem:[%s1962_s4 + $0x70] sm:$0xff]   ;;  %v1679_v18 = vld [vmem:[%s1962_s4 + $0x80] sm:$0xff]   ;;  %v1469_v21 = vld [vmem:[%s1963_s0 + $0x1c] ss:$12 sps:$4 sm:$0xff]  }
   0x8   :  { %1202 = vmatprep.subr.bf16.mxu0 %v1589_v4  ;;  %1249 = vmatprep.subr.bf16.mxu1 %v1589_v4  ;;  %v1658_v15 = vld [vmem:[%s1962_s4 + $0x30] sm:$0xff]   ;;  %v1471_v22 = vld [vmem:[%s1964_s1 + $0x1c] ss:$12 sps:$4 sm:$0xff]   ;;  %v1473_v25 = vld [vmem:[%s1963_s0 + $0x18] ss:$12 sps:$4 sm:$0xff]  }
   0x9   :  { %502 = vmatprep.mubr.bf16.mxu1 %v1467_v12  ;;  %v1700_v23 = vld [vmem:[%s1962_s4 + $0x88] sm:$0xff]   ;;  %v1708_v24 = vld [vmem:[%s1962_s4 + $0x90] sm:$0x3f]   ;;  %v1474_v26 = vld [vmem:[%s1964_s1 + $0x18] ss:$12 sps:$4 sm:$0xff]  }
   0xa   :  { %v1476_v27 = vld [vmem:[%s1963_s0 + $0x34] ss:$12 sps:$4 sm:$0xff]   ;;  %v1730_v29 = vsel %vm257_vm0, %v1708_v24, 0  ;;  %v74_v30 = vld [vmem:[%s1963_s0 + $0x48] sm:$0x11] }
   0xb   :  { %1203 = vmatpush3.bf16.msra.mxu0 %v1596_v5  ;;  %1250 = vmatpush3.bf16.msra.mxu1 %v1596_v5  ;;  %v1478_v28 = vld [vmem:[%s1964_s1 + $0x34] ss:$12 sps:$4 sm:$0xff]   ;;  %v1480_v31 = vld [vmem:[%s1963_s0 + $0x30] ss:$12 sps:$4 sm:$0xff]   ;;  %v401_v32 = vld [vmem:[%s1964_s1 + $0x48] sm:$0x11]  ;;  %v1110_v34 = vcombine.high %v74_v30, %v74_v30  ;;  %v1109_v36 = vcombine.low %v74_v30, %v74_v30 }
   0xc   :  { %1204 = vmatprep.subr.bf16.mxu0 %v1603_v6  ;;  %1251 = vmatprep.subr.bf16.mxu1 %v1603_v6  ;;  %v1481_v33 = vld [vmem:[%s1964_s1 + $0x30] ss:$12 sps:$4 sm:$0xff]   ;;  %v1145_v35 = vcombine.high %v401_v32, %v401_v32  ;;  %v1144_v37 = vcombine.low %v401_v32, %v401_v32  ;;  %v1487_v38 = vld [vmem:[%s1963_s0 + $0x8] ss:$12 sps:$4 sm:$0xff]   ;;  %v1488_v40 = vld [vmem:[%s1965_s2] ss:$12 sps:$4 sm:$0xff]  }
   0xd   :  { %v1490_v39 = vld [vmem:[%s1965_s2 + $0x4] ss:$12 sps:$4 sm:$0xff]   ;;  %v1491_v41 = vld [vmem:[%s1963_s0 + $0x20] ss:$12 sps:$4 sm:$0xff]   ;;  %v1493_v43 = vld [vmem:[%s1965_s2 + $0x1c] ss:$12 sps:$4 sm:$0xff]  }
   0xe   :  { %v1492_v42 = vld [vmem:[%s1963_s0 + $0x38] ss:$12 sps:$4 sm:$0xff]   ;;  %v1495_v44 = vld [vmem:[%s1963_s0 + $0x50] ss:$0 sps:$4 sm:$0x11]  }
   0xf   :  { %1205 = vmatpush3.bf16.msra.mxu0 %v1610_v7  ;;  %1252 = vmatpush3.bf16.msra.mxu1 %v1610_v7  ;;  %v1496_v45 = vld [vmem:[%s1965_s2 + $0x18] ss:$12 sps:$4 sm:$0xff]   ;;  %v1497_v46 = vld [vmem:[%s1964_s1 + $0x8] ss:$12 sps:$4 sm:$0xff]   ;;  %v1500_v48 = vld [vmem:[%s1964_s1 + $0x20] ss:$12 sps:$4 sm:$0xff]  }
  0x10   :  { %1206 = vmatprep.subr.bf16.mxu0 %v1617_v8  ;;  %1253 = vmatprep.subr.bf16.mxu1 %v1617_v8  ;;  %v1498_v47 = vld [vmem:[%s1965_s2 + $0x34] ss:$12 sps:$4 sm:$0xff]   ;;  %v1501_v49 = vld [vmem:[%s1965_s2 + $0x30] ss:$12 sps:$4 sm:$0xff]   ;;  %v617_v50 = vld [vmem:[%s1965_s2 + $0x48] sm:$0x11] }
  0x11   :  { %v1502_v51 = vld [vmem:[%s1964_s1 + $0x38] ss:$12 sps:$4 sm:$0xff]   ;;  %v1161_v52 = vcombine.high %v617_v50, %v617_v50  ;;  %v1504_v53 = vld [vmem:[%s1964_s1 + $0x50] ss:$0 sps:$4 sm:$0x11]   ;;  %v1160_v54 = vcombine.low %v617_v50, %v617_v50 }
  0x12   :  { %v1506_v55 = vld [vmem:[%s1965_s2 + $0x8] ss:$12 sps:$4 sm:$0xff]   ;;  %v1509_v56 = vld [vmem:[%s1966_s3 + $0x4] ss:$12 sps:$4 sm:$0xff]   ;;  %v1507_v57 = vld [vmem:[%s1966_s3] ss:$12 sps:$4 sm:$0xff]  }
  0x13   :  { %1207 = vmatpush3.bf16.msra.mxu0 %v1624_v9  ;;  %1254 = vmatpush3.bf16.msra.mxu1 %v1624_v9  ;;  %v1510_v58 = vld [vmem:[%s1965_s2 + $0x20] ss:$12 sps:$4 sm:$0xff]   ;;  %v1511_v59 = vld [vmem:[%s1965_s2 + $0x38] ss:$12 sps:$4 sm:$0xff]   ;;  %v1512_v60 = vld [vmem:[%s1966_s3 + $0x1c] ss:$12 sps:$4 sm:$0xff]  }
  0x14   :  { %1208 = vmatprep.subr.bf16.mxu0 %v1631_v10  ;;  %1255 = vmatprep.subr.bf16.mxu1 %v1631_v10  ;;  %v1514_v61 = vld [vmem:[%s1965_s2 + $0x50] ss:$0 sps:$4 sm:$0x11]   ;;  %v1515_v62 = vld [vmem:[%s1966_s3 + $0x18] ss:$12 sps:$4 sm:$0xff]  }
  0x15   :  { %v1516_v63 = vld [vmem:[%s1966_s3 + $0x34] ss:$12 sps:$4 sm:$0xff]  }
  0x17   :  { %1209 = vmatpush3.bf16.msra.mxu0 %v1644_v13  ;;  %1256 = vmatpush3.bf16.msra.mxu1 %v1644_v13 }
  0x18   :  { %1210 = vmatprep.subr.bf16.mxu0 %v1651_v14  ;;  %1257 = vmatprep.subr.bf16.mxu1 %v1651_v14 }
  0x1b   :  { %1211 = vmatpush3.bf16.msra.mxu0 %v1658_v15  ;;  %1258 = vmatpush3.bf16.msra.mxu1 %v1658_v15 }
  0x1c   :  { %1212 = vmatprep.subr.bf16.mxu0 %v1665_v16  ;;  %1259 = vmatprep.subr.bf16.mxu1 %v1665_v16 }
  0x1f   :  { %1213 = vmatpush3.bf16.msra.mxu0 %v1672_v17  ;;  %1260 = vmatpush3.bf16.msra.mxu1 %v1672_v17 }
  0x20   :  { %1386 = vmatprep.subr.bf16.mxu0 %v1679_v18  ;;  %1292 = vmatprep.subr.bf16.mxu1 %v1563_v0 }
  0x22   :  { %294 = vmatmul.mubr.bf16.vlgmr.msra.gmra.mrb[0].mxu0 %v1462_v19  ;;  %503 = vmatmul.mubr.bf16.vlgmr.msra.gmra.mrb[0].mxu1 %v1465_v20 }
  0x23   :  { %1387 = vmatpush3.bf16.msra.mxu0 %v1679_v18  ;;  %1293 = vmatpush3.bf16.msra.mxu1 %v1568_v1 }
  0x24   :  { %1294 = vmatprep.subr.bf16.mxu1 %v1575_v2  ;;  %301 = vmatprep.mubr.bf16.mxu0 %v1469_v21 }
  0x25   :  { %510 = vmatprep.mubr.bf16.mxu1 %v1471_v22  ;;  %1388 = vmatprep.subr.bf16.mxu0 %v1700_v23 }
  0x27   :  { %1295 = vmatpush3.bf16.msra.mxu1 %v1582_v3  ;;  %1389 = vmatpush3.bf16.msra.mxu0 %v1700_v23 }
  0x28   :  { %1296 = vmatprep.subr.bf16.mxu1 %v1589_v4  ;;  %1442 = vmatprep.subr.msk.bf16.mxu0 %vm257_vm0, %v1708_v24 }
  0x2a   :  { %302 = vmatmul.mubr.bf16.gmra.mrb[4].mxu0 %v1473_v25  ;;  %511 = vmatmul.mubr.bf16.gmra.mrb[4].mxu1 %v1474_v26 }
  0x2b   :  { %1297 = vmatpush3.bf16.msra.mxu1 %v1596_v5  ;;  %309 = vmatprep.mubr.bf16.mxu0 %v1476_v27 }
  0x2c   :  { %1298 = vmatprep.subr.bf16.mxu1 %v1603_v6  ;;  %518 = vmatprep.mubr.bf16.mxu1 %v1478_v28 }
  0x2d   :  { %1391 = vmatpush3.bf16.msra.mxu0 %v1730_v29 }
  0x2e   :  { %1400 = vmatprep.subr.bf16.mxu0 %v1679_v18 }
  0x2f   :  { %1299 = vmatpush3.bf16.msra.mxu1 %v1610_v7 }
  0x30   :  { %1300 = vmatprep.subr.bf16.mxu1 %v1617_v8 }
  0x32   :  { %310 = vmatmul.mubr.bf16.gmra.mrb[8].mxu0 %v1480_v31  ;;  %519 = vmatmul.mubr.bf16.gmra.mrb[8].mxu1 %v1481_v33 }
  0x33   :  { %1301 = vmatpush3.bf16.msra.mxu1 %v1624_v9  ;;  %317 = vmatprep.mubr.bf16.mxu0 %v1110_v34 }
  0x34   :  { %1302 = vmatprep.subr.bf16.mxu1 %v1631_v10  ;;  %526 = vmatprep.mubr.bf16.mxu1 %v1145_v35 }
  0x37   :  { %1303 = vmatpush3.bf16.msra.mxu1 %v1644_v13 }
  0x38   :  { %1304 = vmatprep.subr.bf16.mxu1 %v1651_v14 }
  0x3a   :  { %318 = vmatmul.mubr.bf16.gmra.mrb[12].mxu0 %v1109_v36  ;;  %527 = vmatmul.mubr.bf16.gmra.mrb[12].mxu1 %v1144_v37 }
  0x3b   :  { %1305 = vmatpush3.bf16.msra.mxu1 %v1658_v15  ;;  %1392 = vmatprep.mubr.msk.bf16.mxu0 %vm244_vm1, %v1487_v38 }
  0x3c   :  { %1306 = vmatprep.subr.bf16.mxu1 %v1665_v16  ;;  %718 = vmatprep.mubr.bf16.mxu1 %v1490_v39 }
  0x3f   :  { %1307 = vmatpush3.bf16.msra.mxu1 %v1672_v17 }
  0x40   :  { %1339 = vmatprep.subr.bf16.mxu1 %v1563_v0  ;;  %v1518_v0 = vld [vmem:[%s1966_s3 + $0x8] ss:$12 sps:$4 sm:$0xff]  }
  0x42   :  { %1393 = vmatmul.mubr.msk.bf16.vlgmr.msra.gmra.mrb[16].mxu0 %vm244_vm1, %v1491_v41  ;;  %719 = vmatmul.mubr.bf16.vlgmr.msra.gmra.mrb[16].mxu1 %v1488_v40 }
  0x43   :  { %1401 = vmatpush3.bf16.msra.mxu0 %v1679_v18  ;;  %1340 = vmatpush3.bf16.msra.mxu1 %v1568_v1  ;;  %v833_v1 = vld [vmem:[%s1966_s3 + $0x48] sm:$0x11] }
  0x44   :  { %1341 = vmatprep.subr.bf16.mxu1 %v1575_v2  ;;  %1402 = vmatprep.subr.bf16.mxu0 %v1700_v23  ;;  %v1519_v2 = vld [vmem:[%s1966_s3 + $0x30] ss:$12 sps:$4 sm:$0xff]  }
  0x45   :  { %1396 = vmatprep.mubr.msk.bf16.mxu0 %vm244_vm1, %v1492_v42  ;;  %726 = vmatprep.mubr.bf16.mxu1 %v1493_v43 }
  0x47   :  { %1342 = vmatpush3.bf16.msra.mxu1 %v1582_v3  ;;  %1403 = vmatpush3.bf16.msra.mxu0 %v1700_v23  ;;  %v1520_v3 = vld [vmem:[%s1966_s3 + $0x20] ss:$12 sps:$4 sm:$0xff]  }
  0x48   :  { %1343 = vmatprep.subr.bf16.mxu1 %v1589_v4  ;;  %1443 = vmatprep.subr.msk.bf16.mxu0 %vm257_vm0, %v1708_v24  ;;  %v1177_v4 = vcombine.high %v833_v1, %v833_v1 }
  0x4a   :  { %1397 = vmatmul.mubr.msk.bf16.gmra.mrb[20].mxu0 %vm244_vm1, %v1495_v44  ;;  %727 = vmatmul.mubr.bf16.gmra.mrb[20].mxu1 %v1496_v45 }
  0x4b   :  { %1344 = vmatpush3.bf16.msra.mxu1 %v1596_v5  ;;  %1405 = vmatpush3.bf16.msra.mxu0 %v1730_v29  ;;  %v1522_v5 = vld [vmem:[%s1966_s3 + $0x38] ss:$12 sps:$4 sm:$0xff]  }
  0x4c   :  { %1345 = vmatprep.subr.bf16.mxu1 %v1603_v6  ;;  %1406 = vmatprep.mubr.msk.bf16.mxu0 %vm244_vm1, %v1497_v46  ;;  %v1176_v6 = vcombine.low %v833_v1, %v833_v1 }
  0x4d   :  { %734 = vmatprep.mubr.bf16.mxu1 %v1498_v47  ;;  %1414 = vmatprep.subr.bf16.mxu0 %v1679_v18 }
  0x4f   :  { %1346 = vmatpush3.bf16.msra.mxu1 %v1610_v7  ;;  %v1524_v7 = vld [vmem:[%s1966_s3 + $0x50] ss:$0 sps:$4 sm:$0x11]  }
  0x50   :  { %1347 = vmatprep.subr.bf16.mxu1 %v1617_v8 }
  0x52   :  { %1407 = vmatmul.mubr.msk.bf16.vlgmr.msra.gmra.mrb[24].mxu0 %vm244_vm1, %v1500_v48  ;;  %735 = vmatmul.mubr.bf16.gmra.mrb[24].mxu1 %v1501_v49 }
  0x53   :  { %1415 = vmatpush3.bf16.msra.mxu0 %v1679_v18  ;;  %1348 = vmatpush3.bf16.msra.mxu1 %v1624_v9 }
  0x54   :  { %1349 = vmatprep.subr.bf16.mxu1 %v1631_v10  ;;  %1416 = vmatprep.subr.bf16.mxu0 %v1700_v23 }
  0x55   :  { %1410 = vmatprep.mubr.msk.bf16.mxu0 %vm244_vm1, %v1502_v51  ;;  %742 = vmatprep.mubr.bf16.mxu1 %v1161_v52 }
  0x57   :  { %1350 = vmatpush3.bf16.msra.mxu1 %v1644_v13  ;;  %1417 = vmatpush3.bf16.msra.mxu0 %v1700_v23 }
  0x58   :  { %1351 = vmatprep.subr.bf16.mxu1 %v1651_v14  ;;  %1444 = vmatprep.subr.msk.bf16.mxu0 %vm257_vm0, %v1708_v24 }
  0x5a   :  { %1411 = vmatmul.mubr.msk.bf16.gmra.mrb[28].mxu0 %vm244_vm1, %v1504_v53  ;;  %743 = vmatmul.mubr.bf16.gmra.mrb[28].mxu1 %v1160_v54 }
  0x5b   :  { %1352 = vmatpush3.bf16.msra.mxu1 %v1658_v15  ;;  %1419 = vmatpush3.bf16.msra.mxu0 %v1730_v29 }
  0x5c   :  { %1353 = vmatprep.subr.bf16.mxu1 %v1665_v16  ;;  %1420 = vmatprep.mubr.msk.bf16.mxu0 %vm244_vm1, %v1506_v55 }
  0x5d   :  { %934 = vmatprep.mubr.bf16.mxu1 %v1509_v56  ;;  %1428 = vmatprep.subr.bf16.mxu0 %v1679_v18 }
  0x5f   :  { %1354 = vmatpush3.bf16.msra.mxu1 %v1672_v17 }
  0x62   :  { %1421 = vmatmul.mubr.msk.bf16.vlgmr.msra.gmra.mrb[32].mxu0 %vm244_vm1, %v1510_v58  ;;  %935 = vmatmul.mubr.bf16.vlgmr.msra.gmra.mrb[32].mxu1 %v1507_v57 }
  0x63   :  { %1429 = vmatpush3.bf16.msra.mxu0 %v1679_v18  ;;  %1424 = vmatprep.mubr.msk.bf16.mxu0 %vm244_vm1, %v1511_v59 }
  0x64   :  { %1430 = vmatprep.subr.bf16.mxu0 %v1700_v23  ;;  %942 = vmatprep.mubr.bf16.mxu1 %v1512_v60 }
  0x67   :  { %1431 = vmatpush3.bf16.msra.mxu0 %v1700_v23 }
  0x68   :  { %1445 = vmatprep.subr.msk.bf16.mxu0 %vm257_vm0, %v1708_v24 }
  0x6a   :  { %1425 = vmatmul.mubr.msk.bf16.gmra.mrb[36].mxu0 %vm244_vm1, %v1514_v61  ;;  %943 = vmatmul.mubr.bf16.gmra.mrb[36].mxu1 %v1515_v62 }
  0x6b   :  { %1433 = vmatpush3.bf16.msra.mxu0 %v1730_v29  ;;  %950 = vmatprep.mubr.bf16.mxu1 %v1516_v63 }
  0x6c   :  { %1434 = vmatprep.mubr.msk.bf16.mxu0 %vm244_vm1, %v1518_v0 }
  0x72   :  { %951 = vmatmul.mubr.bf16.gmra.mrb[40].mxu1 %v1519_v2  ;;  %1435 = vmatmul.mubr.msk.bf16.vlgmr.msra.gmra.mrb[40].mxu0 %vm244_vm1, %v1520_v3 }
  0x73   :  { %958 = vmatprep.mubr.bf16.mxu1 %v1177_v4  ;;  %1438 = vmatprep.mubr.msk.bf16.mxu0 %vm244_vm1, %v1522_v5 }
  0x7a   :  { %959 = vmatmul.mubr.bf16.gmra.mrb[44].mxu1 %v1176_v6  ;;  %1439 = vmatmul.mubr.msk.bf16.gmra.mrb[44].mxu0 %vm244_vm1, %v1524_v7 }
  0xf5   :  { %v1214_v8 = vpop.f32.mrb[0].mxu0  ;;  %v1261_v9 = vpop.f32.mrb[0].mxu1 }
  0xf6   :  { %v1215_v10 = vpop.f32.mrb[1].mxu0  ;;  %v1262_v11 = vpop.f32.mrb[1].mxu1 }
  0xf7   :  { %v1216_v12 = vadd.f32 %v1215_v10, %v1214_v8  ;;  %v1899_v13 = vadd.f32 %v1262_v11, %v1261_v9  ;;  %v1217_v14 = vpop.f32.mrb[2].mxu0  ;;  %v1264_v15 = vpop.f32.mrb[2].mxu1 }
  0xf8   :  { %v1218_v16 = vpop.f32.mrb[3].mxu0  ;;  %v1265_v17 = vpop.f32.mrb[3].mxu1 }
  0xf9   :  { %v1219_v18 = vadd.f32 %v1218_v16, %v1217_v14  ;;  %v1901_v19 = vadd.f32 %v1265_v17, %v1264_v15 }
  0xfd   :  { %v1220_v20 = vpop.f32.mrb[4].mxu0  ;;  %v1267_v21 = vpop.f32.mrb[4].mxu1 }
  0xfe   :  { %v1221_v22 = vpop.f32.mrb[5].mxu0  ;;  %v1268_v23 = vpop.f32.mrb[5].mxu1 }
  0xff   :  { %v1222_v24 = vadd.f32 %v1221_v22, %v1220_v20  ;;  %v1269_v25 = vadd.f32 %v1268_v23, %v1267_v21  ;;  %v1223_v26 = vpop.f32.mrb[6].mxu0  ;;  %v1270_v27 = vpop.f32.mrb[6].mxu1 }
 0x100   :  { %v1224_v28 = vpop.f32.mrb[7].mxu0  ;;  %v1271_v29 = vpop.f32.mrb[7].mxu1 }
 0x101   :  { %v1225_v30 = vadd.f32 %v1224_v28, %v1223_v26  ;;  %v1272_v31 = vadd.f32 %v1271_v29, %v1270_v27 }
 0x105   :  { %v1226_v32 = vpop.f32.mrb[8].mxu0  ;;  %v1273_v33 = vpop.f32.mrb[8].mxu1 }
 0x106   :  { %v1227_v34 = vpop.f32.mrb[9].mxu0  ;;  %v1274_v35 = vpop.f32.mrb[9].mxu1 }
 0x107   :  { %v1228_v36 = vadd.f32 %v1227_v34, %v1226_v32  ;;  %v1903_v37 = vadd.f32 %v1274_v35, %v1273_v33  ;;  %v1229_v38 = vpop.f32.mrb[10].mxu0  ;;  %v1276_v39 = vpop.f32.mrb[10].mxu1 }
 0x108   :  { %v1230_v40 = vpop.f32.mrb[11].mxu0  ;;  %v1277_v41 = vpop.f32.mrb[11].mxu1 }
 0x109   :  { %v1231_v42 = vadd.f32 %v1230_v40, %v1229_v38  ;;  %v1905_v43 = vadd.f32 %v1277_v41, %v1276_v39 }
 0x10d   :  { %v1232_v44 = vpop.f32.mrb[12].mxu0  ;;  %v1279_v45 = vpop.f32.mrb[12].mxu1 }
 0x10e   :  { %v1233_v46 = vpop.f32.mrb[13].mxu0  ;;  %v1280_v47 = vpop.f32.mrb[13].mxu1 }
 0x10f   :  { %v1234_v48 = vadd.f32 %v1233_v46, %v1232_v44  ;;  %v1281_v49 = vadd.f32 %v1280_v47, %v1279_v45  ;;  %v1235_v50 = vpop.f32.mrb[14].mxu0  ;;  %v1282_v51 = vpop.f32.mrb[14].mxu1 }
 0x110   :  { %v1236_v52 = vpop.f32.mrb[15].mxu0  ;;  %v1283_v53 = vpop.f32.mrb[15].mxu1 }
 0x115   :  { %v1394_v54 = vpop.f32.mrb[16].mxu0  ;;  %v1308_v55 = vpop.f32.mrb[16].mxu1 }
 0x116   :  { %v1907_v56 = vadd.f32 %v1394_v54, %v1222_v24  ;;  %v359_v57 = vpop.f32.mrb[17].mxu0  ;;  %v1309_v58 = vpop.f32.mrb[17].mxu1 }
 0x117   :  { %v1909_v59 = vadd.f32 %v1216_v12, %v359_v57  ;;  %v1310_v60 = vadd.f32 %v1309_v58, %v1308_v55  ;;  %v1395_v61 = vpop.f32.mrb[18].mxu0  ;;  %v1311_v62 = vpop.f32.mrb[18].mxu1 }
 0x118   :  { %v1911_v63 = vadd.f32 %v1395_v61, %v1225_v30  ;;  %v362_v0 = vpop.f32.mrb[19].mxu0  ;;  %v1312_v1 = vpop.f32.mrb[19].mxu1 }
 0x119   :  { %v1913_v2 = vadd.f32 %v1219_v18, %v362_v0  ;;  %v1313_v3 = vadd.f32 %v1312_v1, %v1311_v62 }
 0x11d   :  { %v1398_v4 = vpop.f32.mrb[20].mxu0  ;;  %v1314_v5 = vpop.f32.mrb[20].mxu1 }
 0x11e   :  { %v1915_v6 = vadd.f32 %v1398_v4, %v1234_v48  ;;  %v375_v7 = vpop.f32.mrb[21].mxu0  ;;  %v1315_v8 = vpop.f32.mrb[21].mxu1 }
 0x11f   :  { %v1917_v9 = vadd.f32 %v1228_v36, %v375_v7  ;;  %v1316_v10 = vadd.f32 %v1315_v8, %v1314_v5  ;;  %v1399_v11 = vpop.f32.mrb[22].mxu0  ;;  %v1317_v12 = vpop.f32.mrb[22].mxu1 }
 0x120   :  { %v378_v14 = vpop.f32.mrb[23].mxu0  ;;  %v1318_v15 = vpop.f32.mrb[23].mxu1 }
 0x121   :  { %v1919_v16 = vadd.f32 %v1231_v42, %v378_v14  ;;  %v1319_v17 = vadd.f32 %v1318_v15, %v1317_v12 }
 0x125   :  { %v1408_v20 = vpop.f32.mrb[24].mxu0  ;;  %v1320_v18 = vpop.f32.mrb[24].mxu1 }
 0x126   :  { %v577_v21 = vadd.f32 %v1408_v20, %v1269_v25  ;;  %v568_v22 = vpop.f32.mrb[25].mxu0  ;;  %v1321_v23 = vpop.f32.mrb[25].mxu1 }
 0x127   :  { %v569_v24 = vadd.f32 %v1899_v13, %v568_v22  ;;  %v1322_v26 = vadd.f32 %v1321_v23, %v1320_v18  ;;  %v1409_v27 = vpop.f32.mrb[26].mxu0  ;;  %v1323_v28 = vpop.f32.mrb[26].mxu1 }
 0x128   :  { %v600_v29 = vmax.f32 %v1907_v56, %v577_v21  ;;  %v580_v30 = vadd.f32 %v1409_v27, %v1272_v31  ;;  %v571_v32 = vpop.f32.mrb[27].mxu0  ;;  %v1324_v33 = vpop.f32.mrb[27].mxu1 }
 0x129   :  { %v598_v34 = vmax.f32 %v1909_v59, %v569_v24  ;;  %v572_v35 = vadd.f32 %v1901_v19, %v571_v32  ;;  %v1325_v36 = vadd.f32 %v1324_v33, %v1323_v28 }
 0x12a   :  { %v601_v38 = vmax.f32 %v1911_v63, %v580_v30 }
 0x12b   :  { %v599_v25 = vmax.f32 %v1913_v2, %v572_v35 }
 0x12d   :  { %v1412_v39 = vpop.f32.mrb[28].mxu0  ;;  %v1326_v40 = vpop.f32.mrb[28].mxu1 }
 0x12e   :  { %v593_v13 = vadd.f32 %v1412_v39, %v1281_v49  ;;  %v584_v41 = vpop.f32.mrb[29].mxu0  ;;  %v1327_v42 = vpop.f32.mrb[29].mxu1 }
 0x12f   :  { %v585_v44 = vadd.f32 %v1903_v37, %v584_v41  ;;  %v1328_v45 = vadd.f32 %v1327_v42, %v1326_v40  ;;  %v1413_v31 = vpop.f32.mrb[30].mxu0  ;;  %v1329_v46 = vpop.f32.mrb[30].mxu1 }
 0x130   :  { %v604_v47 = vmax.f32 %v1915_v6, %v593_v13  ;;  %v587_v48 = vpop.f32.mrb[31].mxu0  ;;  %v1330_v50 = vpop.f32.mrb[31].mxu1 }
 0x131   :  { %v602_v19 = vmax.f32 %v1917_v9, %v585_v44  ;;  %v588_v51 = vadd.f32 %v1905_v43, %v587_v48 }
 0x133   :  { %v603_v52 = vmax.f32 %v1919_v16, %v588_v51 }
 0x135   :  { %v1422_v53 = vpop.f32.mrb[32].mxu0  ;;  %v1355_v54 = vpop.f32.mrb[32].mxu1 }
 0x136   :  { %v793_v49 = vadd.f32 %v1422_v53, %v1316_v10  ;;  %v784_v55 = vpop.f32.mrb[33].mxu0  ;;  %v1356_v56 = vpop.f32.mrb[33].mxu1 }
 0x137   :  { %v785_v57 = vadd.f32 %v1310_v60, %v784_v55  ;;  %v1357_v37 = vadd.f32 %v1356_v56, %v1355_v54  ;;  %v1423_v58 = vpop.f32.mrb[34].mxu0  ;;  %v1358_v59 = vpop.f32.mrb[34].mxu1 }
 0x138   :  { %v816_v61 = vmax.f32 %v600_v29, %v793_v49  ;;  %v796_v62 = vadd.f32 %v1423_v58, %v1319_v17  ;;  %v787_v63 = vpop.f32.mrb[35].mxu0  ;;  %v1359_v0 = vpop.f32.mrb[35].mxu1  ;;  %v1183_v29 = vld [vmem:[%s1967_s5] ss:$0 sm:$0xff] }
 0x139   :  { %v814_v1 = vmax.f32 %v598_v34, %v785_v57  ;;  %v788_v2 = vadd.f32 %v1313_v3, %v787_v63  ;;  %v1360_v4 = vadd.f32 %v1359_v0, %v1358_v59 }
 0x13a   :  { %v817_v5 = vmax.f32 %v601_v38, %v796_v62 }
 0x13b   :  { %v815_v43 = vmax.f32 %v599_v25, %v788_v2 }
 0x13d   :  { %v1426_v6 = vpop.f32.mrb[36].mxu0  ;;  %v1361_v7 = vpop.f32.mrb[36].mxu1 }
 0x13e   :  { %v809_v8 = vadd.f32 %v1426_v6, %v1328_v45  ;;  %v800_v9 = vpop.f32.mrb[37].mxu0  ;;  %v1362_v10 = vpop.f32.mrb[37].mxu1 }
 0x13f   :  { %v801_v11 = vadd.f32 %v1322_v26, %v800_v9  ;;  %v1363_v12 = vadd.f32 %v1362_v10, %v1361_v7  ;;  %v1427_v60 = vpop.f32.mrb[38].mxu0  ;;  %v1364_v14 = vpop.f32.mrb[38].mxu1 }
 0x140   :  { %v820_v15 = vmax.f32 %v604_v47, %v809_v8  ;;  %v803_v16 = vpop.f32.mrb[39].mxu0  ;;  %v1365_v20 = vpop.f32.mrb[39].mxu1 }
 0x141   :  { %v818_v17 = vmax.f32 %v602_v19, %v801_v11  ;;  %v804_v18 = vadd.f32 %v1325_v36, %v803_v16  ;;  %v1366_v21 = vadd.f32 %v1365_v20, %v1364_v14 }
 0x143   :  { %v819_v22 = vmax.f32 %v603_v52, %v804_v18 }
 0x145   :  { %v1367_v3 = vpop.f32.mrb[40].mxu1  ;;  %v1436_v23 = vpop.f32.mrb[40].mxu0 }
 0x146   :  { %v1009_v24 = vadd.f32 %v1436_v23, %v1363_v12  ;;  %v1368_v27 = vpop.f32.mrb[41].mxu1  ;;  %v1000_v28 = vpop.f32.mrb[41].mxu0 }
 0x147   :  { %v1369_v26 = vadd.f32 %v1368_v27, %v1367_v3  ;;  %v1001_v30 = vadd.f32 %v1357_v37, %v1000_v28  ;;  %v1370_v32 = vpop.f32.mrb[42].mxu1  ;;  %v1437_v33 = vpop.f32.mrb[42].mxu0 }
 0x148   :  { %v1032_v34 = vmax.f32 %v816_v61, %v1009_v24  ;;  %v1012_v35 = vadd.f32 %v1437_v33, %v1366_v21  ;;  %v1371_v38 = vpop.f32.mrb[43].mxu1  ;;  %v1003_v25 = vpop.f32.mrb[43].mxu0 }
 0x149   :  { %v1030_v36 = vmax.f32 %v814_v1, %v1001_v30  ;;  %v1372_v39 = vadd.f32 %v1371_v38, %v1370_v32  ;;  %v1004_v40 = vadd.f32 %v1360_v4, %v1003_v25 }
 0x14a   :  { %v1046_v13 = vadd.f32 %v1183_v29, %v1032_v34  ;;  %v1033_v41 = vmax.f32 %v817_v5, %v1012_v35 }
 0x14b   :  { %v1044_v42 = vadd.f32 %v1183_v29, %v1030_v36  ;;  %v1031_v44 = vmax.f32 %v815_v43, %v1004_v40 }
 0x14c   :  { %v1053_v45 = vmax.f32 %v1046_v13, 0.0  ;;  %v1047_v31 = vadd.f32 %v1183_v29, %v1033_v41 }
 0x14d   :  { %v1051_v46 = vmax.f32 %v1044_v42, 0.0  ;;  %v1045_v47 = vadd.f32 %v1183_v29, %v1031_v44  ;;  %v1373_v48 = vpop.f32.mrb[44].mxu1  ;;  %v1440_v50 = vpop.f32.mrb[44].mxu0 }
 0x14e   :  { %v1193_v19 = vpack.c.bf16 %v1053_v45, %v1053_v45  ;;  %v1054_v51 = vmax.f32 %v1047_v31, 0.0  ;;  %v1374_v52 = vpop.f32.mrb[45].mxu1  ;;  %v1016_v53 = vpop.f32.mrb[45].mxu0 }
 0x14f   :  { %v1191_v54 = vpack.c.bf16 %v1051_v46, %v1051_v46  ;;  %v1052_v49 = vmax.f32 %v1045_v47, 0.0  ;;  %v1375_v55 = vadd.f32 %v1374_v52, %v1373_v48  ;;  %v1017_v56 = vadd.f32 %v1369_v26, %v1016_v53  ;;  %v1376_v57 = vpop.f32.mrb[46].mxu1  ;;  %v1441_v37 = vpop.f32.mrb[46].mxu0 }
 0x150   :  { %1090 = vst.msk [vmem:[%s1968_s6 + $0x8] sm:$0xf] %vm1087_vm2, %v1193_v19  ;;  %v1194_v58 = vpack.c.bf16 %v1054_v51, %v1054_v51  ;;  %v1377_v59 = vpop.f32.mrb[47].mxu1  ;;  %v1019_v61 = vpop.f32.mrb[47].mxu0 }
 0x151   :  { %1088 = vst.msk [vmem:[%s1968_s6] sm:$0xf] %vm1087_vm2, %v1191_v54  ;;  %v1192_v62 = vpack.c.bf16 %v1052_v49, %v1052_v49  ;;  %v1025_v63 = vadd.f32 %v1440_v50, %v1375_v55  ;;  %v1034_v0 = vmax.f32 %v818_v17, %v1017_v56  ;;  %v1020_v1 = vadd.f32 %v1372_v39, %v1019_v61 }
 0x152   :  { %1091 = vst.msk [vmem:[%s1968_s6 + $0xc] sm:$0xf] %vm1087_vm2, %v1194_v58 }
 0x153   :  { %1089 = vst.msk [vmem:[%s1968_s6 + $0x4] sm:$0xf] %vm1087_vm2, %v1192_v62  ;;  %v1036_v2 = vmax.f32 %v820_v15, %v1025_v63  ;;  %v1048_v4 = vadd.f32 %v1183_v29, %v1034_v0  ;;  %v1035_v5 = vmax.f32 %v819_v22, %v1020_v1 }
 0x155   :  { %v1050_v43 = vadd.f32 %v1183_v29, %v1036_v2  ;;  %v1055_v6 = vmax.f32 %v1048_v4, 0.0  ;;  %v1049_v7 = vadd.f32 %v1183_v29, %v1035_v5 }
 0x157   :  { %v1057_v8 = vmax.f32 %v1050_v43, 0.0  ;;  %v1195_v9 = vpack.c.bf16 %v1055_v6, %v1055_v6  ;;  %v1056_v10 = vmax.f32 %v1049_v7, 0.0 }
 0x159   :  { %v1197_v11 = vpack.c.bf16 %v1057_v8, %v1057_v8  ;;  %1092 = vst.msk [vmem:[%s1968_s6 + $0x10] sm:$0xf] %vm1087_vm2, %v1195_v9  ;;  %v1196_v12 = vpack.c.bf16 %v1056_v10, %v1056_v10 }
 0x15b   :  { %1095 = vst.msk [vmem:[%s1968_s6 + $0x18] sm:$0x1] %vm1094_vm3, %v1197_v11 }
 0x15c   :  { %1093 = vst.msk [vmem:[%s1968_s6 + $0x14] sm:$0xf] %vm1087_vm2, %v1196_v12 }

// kernel: net_forward.5
= control target key start
LH: loop header
LB: loop body
LE: loop exit
PB: predicated region body
PF: predicated region fallthrough
CT: control target
= control target key end

     0   :  { %v770_v1 = vmov 0   ;;  %v98_v20 = vlaneseq  ;;  %v771_v25 = vmov 1966171168   ;;  %vm264_vm0 = vcmask 130048   ;;  %s981_s0 = inlined_call_operand.vmem [shape: bf16[2,400], index: 0, kind: input, shape index: {}]   ;;  %s982_s1 = inlined_call_operand.vmem [shape: bf16[400,120], index: 1, kind: input, shape index: {}]   ;;  %s983_s2 = inlined_call_operand.vmem [shape: f32[1,120], index: 2, kind: input, shape index: {}]   ;;  %s984_s3 = inlined_call_operand.vmem [shape: bf16[120,84], index: 3, kind: input, shape index: {}]   ;;  %s985_s4 = inlined_call_operand.vmem [shape: f32[1,84], index: 4, kind: input, shape index: {}]   ;;  %s986_s5 = inlined_call_operand.vmem [shape: bf16[84,10], index: 5, kind: input, shape index: {}]   ;;  %s987_s6 = inlined_call_operand.vmem [shape: f32[1,10], index: 6, kind: input, shape index: {}]   ;;  %s988_s7 = inlined_call_operand.hbm [shape: f32[2,10], index: 7, kind: output, shape index: {}]  }
   0x1   :  { %v707_v0 = vld [vmem:[%s982_s1 + $0x40] sm:$0xff]   ;;  %308 = vmatprep.subr.bf16.mxu1 %v770_v1  ;;  %v710_v4 = vld [vmem:[%s982_s1 + $0x48] sm:$0xff]   ;;  %v713_v7 = vld [vmem:[%s982_s1 + $0x50] sm:$0xff]   ;;  %v96_v26 = vunpack.c.l.s4 %v771_v25  ;;  %v772_v38 = vmov 0.0  }
   0x2   :  { %v708_v2 = vld [vmem:[%s982_s1 + $0x80] sm:$0xff]   ;;  %628 = vmatprep.subr.bf16.mxu0 %v707_v0  ;;  %v711_v5 = vld [vmem:[%s982_s1 + $0x88] sm:$0xff]   ;;  %v714_v8 = vld [vmem:[%s982_s1 + $0x90] sm:$0xff]   ;;  %v99_v27 = vshrl.u32 %v98_v20, 7 }
   0x3   :  { %v709_v3 = vld [vmem:[%s982_s1] sm:$0xff]   ;;  %309 = vmatpush1.bf16.msra.mxu1 %v708_v2  ;;  %v712_v6 = vld [vmem:[%s982_s1 + $0x8] sm:$0xff]   ;;  %v715_v9 = vld [vmem:[%s982_s1 + $0x10] sm:$0xff]   ;;  %v97_v30 = vunpack.c.0.s8 %v96_v26 }
   0x4   :  { %629 = vmatpush3.bf16.msra.mxu0 %v709_v3  ;;  %310 = vmatprep.subr.bf16.mxu1 %v770_v1  ;;  %v716_v10 = vld [vmem:[%s982_s1 + $0x58] sm:$0xff]   ;;  %v719_v13 = vld [vmem:[%s982_s1 + $0x60] sm:$0xff]   ;;  %v722_v16 = vld [vmem:[%s982_s1 + $0x68] sm:$0xff]  }
   0x5   :  { %630 = vmatprep.subr.bf16.mxu0 %v710_v4  ;;  %v717_v11 = vld [vmem:[%s982_s1 + $0x98] sm:$0xff]   ;;  %v720_v14 = vld [vmem:[%s982_s1 + $0xa0] sm:$0xff]   ;;  %v723_v17 = vld [vmem:[%s982_s1 + $0xa8] sm:$0xff]   ;;  %v100_v32 = vsub.s32 %v97_v30, %v99_v27 }
   0x6   :  { %v718_v12 = vld [vmem:[%s982_s1 + $0x18] sm:$0xff]   ;;  %v721_v15 = vld [vmem:[%s982_s1 + $0x20] sm:$0xff]   ;;  %v724_v18 = vld [vmem:[%s982_s1 + $0x28] sm:$0xff]  }
   0x7   :  { %311 = vmatpush1.bf16.msra.mxu1 %v711_v5  ;;  %v725_v19 = vld [vmem:[%s982_s1 + $0x70] sm:$0xff]   ;;  %v583_v23 = vld.sshfl [vmem:[%s981_s0] sm:$0x33 pattern:$0x75316420]  ;;  %v728_v24 = vld [vmem:[%s982_s1 + $0x78] sm:$0xff]  }
   0x8   :  { %631 = vmatpush3.bf16.msra.mxu0 %v712_v6  ;;  %312 = vmatprep.subr.bf16.mxu1 %v770_v1  ;;  %v726_v21 = vld [vmem:[%s982_s1 + $0xb0] sm:$0xff]   ;;  %v729_v28 = vld [vmem:[%s982_s1 + $0xb8] sm:$0xff]   ;;  %v94_v29 = vcombine.high %v583_v23, %v583_v23  ;;  %v731_v33 = vld [vmem:[%s982_s1 + $0xc0] sm:$0xff]   ;;  %v101_v36 = vrot.slane %v583_v23, %v100_v32 }
   0x9   :  { %632 = vmatprep.subr.bf16.mxu0 %v713_v7  ;;  %v727_v22 = vld [vmem:[%s982_s1 + $0x30] sm:$0xff]   ;;  %v730_v31 = vld [vmem:[%s982_s1 + $0x38] sm:$0xff]   ;;  %v732_v34 = vld [vmem:[%s984_s3] sm:$0xff]  }
   0xa   :  { %v108_v35 = vrot.slane %v94_v29, %v100_v32  ;;  %v109_v39 = vcombine.high %v101_v36, %v101_v36  ;;  %v733_v40 = vld [vmem:[%s984_s3 + $0x8] sm:$0xff]  }
   0xb   :  { %313 = vmatpush1.bf16.msra.mxu1 %v714_v8 }
   0xc   :  { %633 = vmatpush3.bf16.msra.mxu0 %v715_v9  ;;  %314 = vmatprep.subr.bf16.mxu1 %v770_v1  ;;  %v110_v37 = vcombine.high %v108_v35, %v108_v35 }
   0xd   :  { %634 = vmatprep.subr.bf16.mxu0 %v716_v10  ;;  %300 = vmatprep.mubr.bf16.mxu0 %v108_v35 }
   0xe   :  { %609 = vmatprep.mubr.msk.bf16.mxu1 %vm264_vm0, %v110_v37 }
   0xf   :  { %315 = vmatpush1.bf16.msra.mxu1 %v717_v11 }
  0x10   :  { %635 = vmatpush3.bf16.msra.mxu0 %v718_v12  ;;  %316 = vmatprep.subr.bf16.mxu1 %v770_v1 }
  0x11   :  { %636 = vmatprep.subr.bf16.mxu0 %v719_v13 }
  0x13   :  { %317 = vmatpush1.bf16.msra.mxu1 %v720_v14 }
  0x14   :  { %637 = vmatpush3.bf16.msra.mxu0 %v721_v15  ;;  %318 = vmatprep.subr.bf16.mxu1 %v770_v1 }
  0x15   :  { %638 = vmatprep.subr.bf16.mxu0 %v722_v16 }
  0x17   :  { %319 = vmatpush1.bf16.msra.mxu1 %v723_v17 }
  0x18   :  { %639 = vmatpush3.bf16.msra.mxu0 %v724_v18  ;;  %320 = vmatprep.subr.bf16.mxu1 %v770_v1 }
  0x19   :  { %640 = vmatprep.subr.bf16.mxu0 %v725_v19 }
  0x1b   :  { %321 = vmatpush1.bf16.msra.mxu1 %v726_v21 }
  0x1c   :  { %641 = vmatpush3.bf16.msra.mxu0 %v727_v22  ;;  %322 = vmatprep.subr.bf16.mxu1 %v770_v1 }
  0x1d   :  { %642 = vmatprep.subr.bf16.mxu0 %v728_v24 }
  0x1f   :  { %323 = vmatpush1.bf16.msra.mxu1 %v729_v28 }
  0x20   :  { %643 = vmatpush3.bf16.msra.mxu0 %v730_v31  ;;  %324 = vmatprep.subr.bf16.mxu1 %v770_v1 }
  0x21   :  { %666 = vmatprep.subr.bf16.mxu0 %v772_v38 }
  0x23   :  { %301 = vmatmul.mubr.bf16.vlgmr.msra.gmra.mrb[0].mxu0 %v101_v36  ;;  %325 = vmatpush1.bf16.msra.mxu1 %v731_v33 }
  0x24   :  { %667 = vmatpush3.bf16.msra.mxu0 %v732_v34 }
  0x25   :  { %12 = vsyncpa [#allocation3], 0  ;;  %668 = vmatprep.subr.bf16.mxu0 %v772_v38  ;;  %686 = vmatprep.subr.bf16.mxu1 %v772_v38  ;;  %v734_v41 = vld [vmem:[%s984_s3 + $0x10] sm:$0xff]   ;;  %v735_v42 = vld [vmem:[%s984_s3 + $0x18] sm:$0xff]   ;;  %vm421_vm1 = vcmask 1043456   ;;  %vm773_vm2 = vmmov 0  }
  0x26   :  { %341 = vmatmul.mubr.bf16.vlgmr.msra.gmra.mrb[0].mxu1 %v109_v39  ;;  %v736_v43 = vld [vmem:[%s984_s3 + $0x20] sm:$0xff]   ;;  %v737_v44 = vld [vmem:[%s984_s3 + $0x28] sm:$0xff]   ;;  %v738_v45 = vld [vmem:[%s984_s3 + $0x30] sm:$0xff]   ;;  %682 = vmatprep.mubr.msk.bf16.mxu0 %vm773_vm2, %v772_v38  ;;  %vm417_vm3 = vcmask 982016   ;;  %vm522_vm4 = vcmask 1041408   ;;  %vm518_vm5 = vcmask 687104  }
  0x27   :  { %v739_v46 = vld [vmem:[%s984_s3 + $0x38] ss:$0 sps:$4 sm:$0xff]   ;;  %698 = vmatprep.mubr.msk.bf16.mxu1 %vm773_vm2, %v772_v38  ;;  %v740_v48 = vld [vmem:[%s986_s5] sm:$0xff]   ;;  %v741_v49 = vld [vmem:[%s986_s5 + $0x8] sm:$0xff]   ;;  %vm566_vm6 = vcmask 74752  }
  0x28   :  { %669 = vmatpush3.bf16.msra.mxu0 %v733_v40  ;;  %v423_v47 = vsel %vm421_vm1, %v739_v46, 0  ;;  %687 = vmatpush3.bf16.msra.mxu1 %v740_v48  ;;  %v742_v50 = vld [vmem:[%s986_s5 + $0x10] sm:$0xff]   ;;  %v743_v51 = vld [vmem:[%s986_s5 + $0x18] sm:$0xff]   ;;  %v582_v54 = vld [vmem:[%s983_s2] ss:$0 sm:$0xff] }
  0x29   :  { %670 = vmatprep.subr.bf16.mxu0 %v772_v38  ;;  %688 = vmatprep.subr.bf16.mxu1 %v772_v38  ;;  %v744_v2 = vld [vmem:[%s986_s5 + $0x20] sm:$0xff]   ;;  %v745_v3 = vld [vmem:[%s986_s5 + $0x28] ss:$0 sps:$4 sm:$0x33]   ;;  %s774_s5 = smov [#allocation2]  }
  0x2a   :  { %v524_v4 = vsel %vm522_vm4, %v745_v3, 0  ;;  %v610_v5 = vld [vmem:[%s985_s4] ss:$0 sm:$0xff]  ;;  %s574_s12 = sshll.u32 %s774_s5, 4  ;;  %s575_s12 = int_to_ptr.vmem [resolvable:$true] %s574_s12 }
  0x2b   :  { %v620_v13 = vld [vmem:[%s987_s6] ss:$0 sm:$0xff]  ;;  %s746_s4 = scalar_lea.vmem %s575_s12, 32  ;;  %p751_p1 = scmp.lt.s32.totalorder %s575_s12, %s575_s12 }
  0x2c   :  { %671 = vmatpush3.bf16.msra.mxu0 %v734_v41  ;;  %689 = vmatpush3.bf16.msra.mxu1 %v741_v49  ;;  %p747_p0 = scmp.ne.s32.totalorder %s575_s12, %s746_s4  ;;  %p752_p2 = scmp.lt.s32.totalorder %s746_s4, %s746_s4 }
  0x2d   :  { %672 = vmatprep.subr.bf16.mxu0 %v772_v38  ;;  %690 = vmatprep.subr.bf16.mxu1 %v772_v38 }
  0x2e   :  { %p753_p3 = por %p752_p2, %p751_p1 }
  0x30   :  { %673 = vmatpush3.bf16.msra.mxu0 %v735_v42  ;;  %691 = vmatpush3.bf16.msra.mxu1 %v742_v50  ;;  %p754_p4 = pnand %p753_p3, %p747_p0 }
  0x31   :  { %674 = vmatprep.subr.bf16.mxu0 %v772_v38  ;;  %692 = vmatprep.subr.bf16.mxu1 %v772_v38 }
  0x34   :  { %675 = vmatpush3.bf16.msra.mxu0 %v736_v43  ;;  %693 = vmatpush3.bf16.msra.mxu1 %v743_v51 }
  0x35   :  { %676 = vmatprep.subr.bf16.mxu0 %v772_v38  ;;  %694 = vmatprep.subr.bf16.mxu1 %v772_v38 }
  0x38   :  { %677 = vmatpush3.bf16.msra.mxu0 %v737_v44  ;;  %695 = vmatpush3.bf16.msra.mxu1 %v744_v2 }
  0x39   :  { %678 = vmatprep.subr.bf16.mxu0 %v772_v38  ;;  %696 = vmatprep.subr.bf16.mxu1 %v772_v38 }
  0x3c   :  { %679 = vmatpush3.bf16.msra.mxu0 %v738_v45  ;;  %697 = vmatpush3.bf16.msra.mxu1 %v524_v4 }
  0x3d   :  { %680 = vmatprep.subr.bf16.mxu0 %v772_v38 }
  0x40   :  { %681 = vmatpush3.bf16.msra.mxu0 %v423_v47 }
  0xf6   :  { %v644_v52 = vpop.f32.mrb[0].mxu0 }
  0xf7   :  { %v645_v53 = vpop.f32.mrb[1].mxu0 }
  0xf8   :  { %v646_v55 = vadd.f32 %v645_v53, %v644_v52  ;;  %v647_v56 = vpop.f32.mrb[2].mxu0 }
  0xf9   :  { %v648_v57 = vpop.f32.mrb[3].mxu0  ;;  %v342_v58 = vpop.f32.mrb[0].mxu1 }
  0xfa   :  { %v303_v59 = vadd.f32 %v646_v55, %v582_v54  ;;  %v344_v60 = vpop.f32.mrb[1].mxu1 }
  0xfb   :  { %v345_v61 = vpop.f32.mrb[2].mxu1 }
  0xfc   :  { %v343_v62 = vadd.f32 %v342_v58, %v303_v59  ;;  %v346_v63 = vpop.f32.mrb[3].mxu1 }
  0xfe   :  { %v348_v0 = vmax.f32 %v343_v62, 0.0 }
 0x100   :  { %v349_v1 = vpack.c.bf16 %v348_v0, %v348_v0 }
 0x102   :  { %683 = vmatmul.mubr.msk.bf16.vlgmr.msra.gmra.mrb[4].mxu0 %vm417_vm3, %v349_v1 }
 0x1d5   :  { %v459_v6 = vpop.f32.mrb[4].mxu0 }
 0x1d6   :  { %v460_v7 = vadd.f32 %v610_v5, %v459_v6  ;;  %v684_v8 = vpop.f32.mrb[5].mxu0 }
 0x1d7   :  { %v462_v9 = vpop.f32.mrb[6].mxu0 }
 0x1d8   :  { %v465_v10 = vmax.f32 %v460_v7, 0.0  ;;  %v685_v11 = vpop.f32.mrb[7].mxu0 }
 0x1da   :  { %v466_v12 = vpack.c.bf16 %v465_v10, %v465_v10 }
 0x1dc   :  { %699 = vmatmul.mubr.msk.bf16.vlgmr.msra.gmra.mrb[4].mxu1 %vm518_vm5, %v466_v12 }
 0x2af   :  { %v560_v14 = vpop.f32.mrb[4].mxu1 }
 0x2b0   :  { %v561_v15 = vadd.f32 %v620_v13, %v560_v14  ;;  %v700_v16 = vpop.f32.mrb[5].mxu1 }
 0x2b1   :  { %v563_v17 = vpop.f32.mrb[6].mxu1 }
 0x2b2   :  { %v701_v18 = vpop.f32.mrb[7].mxu1  ;;  %567 = vst.msk [vmem:[#allocation2] sm:$0x3] %vm566_vm6, %v561_v15 }
 0x2b3   :  { %757 = shalt.err (!%p754_p4)
}
 0x2b4   :  { %s758_s6 = scalar_lea.hbm %s988_s7, 32 }
 0x2b5   :  { %p759_p5 = scmp.ne.s32.totalorder %s988_s7, %s758_s6  ;;  %p762_p6 = scmp.lt.u32.totalorder %s758_s6, %s988_s7 }
 0x2b7   :  { %p764_p7 = pnand %p762_p6, %p759_p5 }
 0x2b9   :  { %767 = shalt.err (!%p764_p7)
}
 0x2ba   :  { %577 = dma.vmem_to_hbm [thread:$0]  %s575_s12, 32, %s988_s7, [#allocation3]  }
 0x2bb   :  { %768 = dma.done.wait [#allocation3], 32  }
 0x2bc   :  { %769 = vsyncadd [#allocation3], 4294967264 }
 0x2bd   :  { %581 = vsyncpa [#allocation3], 1 }

</bundles_post_ra>
